<compile_context>
chip_gen: v6e
topology: v6e:2x2x1
jax: 0.10.0
libtpu: 0.0.40
codegen_flags: <defaults>
</compile_context>

<pallas_src>
import math
import functools

import jax
import jax.numpy as jnp
from jax.experimental import pallas as pl
from jax.experimental.pallas import tpu as pltpu


# ----------------------------- in-kernel helpers -----------------------------

def _channel_ln(z, g, b, eps=1e-5):
    # LayerNorm over channels (last dim), matching ActionFormer LayerNorm; rsqrt -> EUP slot.
    mu = jnp.mean(z, axis=-1, keepdims=True)
    zc = z - mu
    var = jnp.mean(zc * zc, axis=-1, keepdims=True)
    return zc * jax.lax.rsqrt(var + eps) * g + b


def _erf(x):
    # TODO(synk): Mosaic has no erf lowering; A&S 7.1.26 polynomial reproduces torch's exact GELU to f32 accuracy.
    p = 0.3275911
    a1, a2, a3, a4, a5 = 0.254829592, -0.284496736, 1.421413741, -1.453152027, 1.061405429
    s = jnp.where(x >= 0.0, 1.0, -1.0)
    ax = jnp.abs(x)
    t = 1.0 / (1.0 + p * ax)
    poly = ((((a5 * t + a4) * t + a3) * t + a2) * t + a1) * t
    return s * (1.0 - poly * jnp.exp(-ax * ax))


def _gelu(x):
    return 0.5 * x * (1.0 + _erf(x * 0.7071067811865476))


def _shift_rows(x, d):
    # s[r] = x[r + d] (cyclic along the sublane axis, XLU rotate); callers mask the wrapped rows.
    n = x.shape[0]
    return pltpu.roll(x, (-d) % n, 0)


def _dot_bf16(a, b):
    # bf16 MXU operands, f32 accumulation.
    return jnp.dot(a.astype(jnp.bfloat16), b.astype(jnp.bfloat16),
                   preferred_element_type=jnp.float32)


# --------------------------------- kernels -----------------------------------

def _make_conv_stack_kernel(n_layers, ksize):
    """Whole MaskedConv1D->LN->ReLU stack on a flattened (B*T, C) block, single grid step."""
    def kernel(x_ref, m_ref, sv_ref, *rest):
        *wgb, o_ref = rest
        x = x_ref[...].astype(jnp.float32)          # (B*T, C_in)
        m = m_ref[...]                              # (B*T, 1) validity mask
        sv = sv_ref[...]                            # (K, B*T, 1) shift validity (seq edges / batch wrap)
        for l in range(n_layers):
            w = wgb[3 * l][...]                     # (K, C_in_l, C_out)
            g = wgb[3 * l + 1][...]                 # (1, C_out)
            b = wgb[3 * l + 2][...]                 # (1, C_out)
            acc = None
            for kk in range(ksize):
                d = kk - ksize // 2
                xs = x if d == 0 else _shift_rows(x, d)
                xs = xs * sv[kk]                    # zero-pad outside [0, T) and across batch wrap
                t = _dot_bf16(xs, w[kk])
                acc = t if acc is None else acc + t
            acc = acc * m                           # MaskedConv1D masks its output
            x = jnp.maximum(_channel_ln(acc, g, b), 0.0)   # LayerNorm(C) + ReLU (dropout = identity)
        o_ref[...] = x
    return kernel


def encoder_stack_kernel(x_ref, mc_ref, mr_ref,
                         ln1g_ref, ln1b_ref, dw_ref, lnqg_ref, lnqb_ref,
                         wqkv_ref, bqkv_ref, wp_ref, bp_ref,
                         ln2g_ref, ln2b_ref, w1_ref, c1_ref, w2_ref, c2_ref,
                         o_ref, *, n_head, n_layers, scale):
    """All TransformerBlocks for one batch element, fully fused (q/k/v/scores stay in VMEM)."""
    # TODO(synk): for production T (~2k) switch to flash-style key tiling + explicit vmem_limit_bytes
    # (v7x has 64 MiB VMEM); full (T,T) scores are fine at these toy sizes.
    x = x_ref[0].astype(jnp.float32)      # (T, C)
    m = mc_ref[0]                         # (T, 1)  validity mask (column form)
    mr = mr_ref[0]                        # (1, T)  key validity mask (row form)
    T, C = x.shape
    hc = C // n_head

    # sequence-edge masks for the depthwise 3-tap conv (zero padding outside [0, T))
    tt = jax.lax.broadcasted_iota(jnp.int32, (T, 1), 0)
    has_prev = (tt > 0).astype(jnp.float32)
    has_next = (tt < T - 1).astype(jnp.float32)

    for l in range(n_layers):
        # ---------------- MaskedMHCA ----------------
        y = _channel_ln(x, ln1g_ref[l], ln1b_ref[l])
        y_prev = _shift_rows(y, -1) * has_prev       # y[t-1]
        y_next = _shift_rows(y, +1) * has_next       # y[t+1]

        dw_l = dw_ref[l]            # (3 branches [q,k,v], 3 taps, C)
        lnqg_l = lnqg_ref[l]        # (3, C)
        lnqb_l = lnqb_ref[l]        # (3, C)
        zs = []
        for j in range(3):          # per-branch depthwise conv + mask + LayerNorm (VPU work)
            z = dw_l[j, 0] * y_prev + dw_l[j, 1] * y + dw_l[j, 2] * y_next
            z = z * m
            zs.append(_channel_ln(z, lnqg_l[j], lnqb_l[j]))
        zcat = jnp.concatenate(zs, axis=-1)                        # (T, 3C)
        qkv = _dot_bf16(zcat, wqkv_ref[l]) + bqkv_ref[l]           # one (T,3C)@(3C,3C) MXU pass
        q, k, v = qkv[:, :C], qkv[:, C:2 * C], qkv[:, 2 * C:]
        vm = v * m                                                 # masked values

        heads = []
        for h in range(n_head):     # heads sliced on the lane dim; never leaves VMEM
            sl = slice(h * hc, (h + 1) * hc)
            s = jax.lax.dot_general((q[:, sl] * scale).astype(jnp.bfloat16),
                                    k[:, sl].astype(jnp.bfloat16),
                                    (((1,), (1,)), ((), ())),
                                    preferred_element_type=jnp.float32)    # (T, T)
            s = jnp.where(mr > 0.0, s, -1e30)          # finite sentinel: no NaN on all-masked rows
            p = jnp.exp(s - jnp.max(s, axis=-1, keepdims=True))
            inv = pl.reciprocal(jnp.sum(p, axis=-1, keepdims=True), approx=True)
            heads.append(_dot_bf16(p * inv, vm[:, sl]))
        a = jnp.concatenate(heads, axis=-1)            # (T, C), heads back on lanes

        o = _dot_bf16(a, wp_ref[l]) + bp_ref[l]        # output projection
        out = x * m + o * m                            # masked residual (drop_path = identity)

        # ---------------- FFN ----------------
        z2 = _channel_ln(out, ln2g_ref[l], ln2b_ref[l])
        h1 = _gelu(_dot_bf16(z2, w1_ref[l]) + c1_ref[l])
        f = _dot_bf16(h1, w2_ref[l]) + c2_ref[l]
        x = out + f * m                                # masked residual

    o_ref[0] = x


# -------------------------------- wrappers -----------------------------------

def conv_stack(x_flat, m_flat, sv, conv_params):
    n_layers = len(conv_params)
    ksize = conv_params[0]["w"].shape[0]
    cout = conv_params[0]["w"].shape[2]
    bt = x_flat.shape[0]
    args = [x_flat, m_flat, sv]
    for cp in conv_params:
        args += [cp["w"], cp["g"], cp["b"]]
    # Tiny problem: one grid step, whole arrays resident in VMEM (no blocking needed).
    return pl.pallas_call(
        _make_conv_stack_kernel(n_layers, ksize),
        out_shape=jax.ShapeDtypeStruct((bt, cout), jnp.float32),
    )(*args)


def encoder_stack(x, m_col, m_row, p, n_head):
    B, T, C = x.shape
    L = p["ln1_g"].shape[0]
    if L == 0:
        return x
    assert C % n_head == 0
    hc = C // n_head
    scale = 1.0 / math.sqrt(hc)

    # Collapse the three q/k/v 1x1 projections into one (3C, 3C) block-diagonal weight per layer
    # (z_q/z_k/z_v differ after their depthwise conv + LN, so a plain (C,3C) concat is not valid).
    w_qkv = p["w_qkv"]                                     # (L, 3, C, C)
    wqkv_bd = jnp.zeros((L, 3 * C, 3 * C), jnp.float32)
    for j in range(3):
        wqkv_bd = wqkv_bd.at[:, j * C:(j + 1) * C, j * C:(j + 1) * C].set(w_qkv[:, j])
    bqkv_cat = p["b_qkv"].reshape(L, 3 * C)

    param_args = [p["ln1_g"], p["ln1_b"], p["dw"], p["ln_qkv_g"], p["ln_qkv_b"],
                  wqkv_bd, bqkv_cat, p["wp"], p["bp"], p["ln2_g"], p["ln2_b"],
                  p["w1"], p["c1"], p["w2"], p["c2"]]

    def _const_spec(arr):
        nd = arr.ndim
        return pl.BlockSpec(arr.shape, lambda bb, _nd=nd: (0,) * _nd)

    kernel = functools.partial(encoder_stack_kernel, n_head=n_head, n_layers=L, scale=scale)
    return pl.pallas_call(
        kernel,
        out_shape=jax.ShapeDtypeStruct((B, T, C), jnp.float32),
        grid=(B,),
        in_specs=[pl.BlockSpec((1, T, C), lambda bb: (bb, 0, 0)),
                  pl.BlockSpec((1, T, 1), lambda bb: (bb, 0, 0)),
                  pl.BlockSpec((1, 1, T), lambda bb: (bb, 0, 0))]
                 + [_const_spec(a) for a in param_args],
        out_specs=pl.BlockSpec((1, T, C), lambda bb: (bb, 0, 0)),
        compiler_params=pltpu.CompilerParams(dimension_semantics=("parallel",)),
    )(x, m_col, m_row, *param_args)


def conv_encoder_backbone(x_bct, mask_b1t, params, n_head):
    """Full forward. x_bct: (B, C_in, T) float32, mask_b1t: (B, 1, T) bool. Returns (x, mask)."""
    x = jnp.transpose(x_bct, (0, 2, 1)).astype(jnp.float32)          # (B, T, C)
    B, T, _ = x.shape
    m_col = jnp.transpose(mask_b1t, (0, 2, 1)).astype(jnp.float32)   # (B, T, 1)
    m_row = mask_b1t.astype(jnp.float32)                             # (B, 1, T)

    # ---- embedding conv stack: one fused kernel over (B*T, C) rows ----
    K = params["conv"][0]["w"].shape[0]
    t_idx = jnp.arange(T)
    offs = jnp.arange(K) - K // 2
    valid = (t_idx[None, :] + offs[:, None] >= 0) & (t_idx[None, :] + offs[:, None] <= T - 1)  # (K, T)
    sv = jnp.broadcast_to(valid[:, None, :], (K, B, T)).reshape(K, B * T, 1).astype(jnp.float32)

    x_flat = x.reshape(B * T, -1)
    m_flat = m_col.reshape(B * T, 1)
    y_flat = conv_stack(x_flat, m_flat, sv, params["conv"])
    x = y_flat.reshape(B, T, -1)

    # pos_embd is None in this config -> identity.
    # ---- encoder blocks: one fused kernel, grid over batch ----
    x = encoder_stack(x, m_col, m_row, params["enc"], n_head)

    return jnp.transpose(x, (0, 2, 1)), mask_b1t


# ------------------------ deterministic parameter init ------------------------

def init_params(key, n_in, n_embd, ks, n_conv_layers, n_enc_layers):
    keys = iter(jax.random.split(key, n_conv_layers + 8))

    def nrm(shape):  # matches __init_weights__: normal(0, 0.02) for conv/linear weights, zero bias
        return (0.02 * jax.random.normal(next(keys), shape)).astype(jnp.float32)

    ones = lambda s: jnp.ones(s, jnp.float32)
    zeros = lambda s: jnp.zeros(s, jnp.float32)

    conv, cin = [], n_in
    for _ in range(n_conv_layers):
        conv.append({"w": nrm((ks, cin, n_embd)),                    # conv weight as (k, c_in, c_out)
                     "g": ones((1, n_embd)), "b": zeros((1, n_embd))})
        cin = n_embd

    C, L = n_embd, n_enc_layers
    enc = {
        "ln1_g": ones((L, C)), "ln1_b": zeros((L, C)),
        "dw": nrm((L, 3, 3, C)),                                     # depthwise 3-tap weights for q,k,v
        "ln_qkv_g": ones((L, 3, C)), "ln_qkv_b": zeros((L, 3, C)),
        "w_qkv": nrm((L, 3, C, C)), "b_qkv": zeros((L, 3, C)),       # 1x1 conv q/k/v (c_in, c_out)
        "wp": nrm((L, C, C)), "bp": zeros((L, C)),                   # output projection
        "ln2_g": ones((L, C)), "ln2_b": zeros((L, C)),
        "w1": nrm((L, C, C)), "c1": zeros((L, C)),                   # MLP fc1 (n_hidden = n_embd)
        "w2": nrm((L, C, C)), "c2": zeros((L, C)),                   # MLP fc2
    }
    return {"conv": conv, "enc": enc}


# ----------------------------------- main -------------------------------------

if __name__ == "__main__":
    B, C_IN, T = 2, 16, 16
    N_EMBD, KS, N_CONV, N_ENC, N_HEAD = 32, 3, 2, 1, 4

    key = jax.random.PRNGKey(0)
    kx, kp = jax.random.split(key)
    x = jax.random.normal(kx, (B, C_IN, T), jnp.float32)          # PyTorch-style (B, C, T)
    lengths = jnp.array([T, 11])
    mask = jnp.arange(T)[None, None, :] < lengths[:, None, None]  # (B, 1, T) bool

    params = init_params(kp, C_IN, N_EMBD, KS, N_CONV, N_ENC)

    fwd = jax.jit(functools.partial(conv_encoder_backbone, n_head=N_HEAD))
    out_x, out_mask = fwd(x, mask, params)
    jax.block_until_ready((out_x, out_mask))

    assert out_x.shape == (B, N_EMBD, T)
    assert out_mask.shape == (B, 1, T) and out_mask.dtype == jnp.bool_
    assert bool(jnp.all(jnp.isfinite(out_x)))
    print("KERNEL_OK")
</pallas_src>

<mosaic_0001>
module attributes {stable_mosaic.version = 11 : i64} {
  func.func @kernel(%arg0: memref<32x16xf32, #tpu.memory_space<vmem>>, %arg1: memref<32x1xf32, #tpu.memory_space<vmem>>, %arg2: memref<3x32x1xf32, #tpu.memory_space<vmem>>, %arg3: memref<3x16x32xf32, #tpu.memory_space<vmem>>, %arg4: memref<1x32xf32, #tpu.memory_space<vmem>>, %arg5: memref<1x32xf32, #tpu.memory_space<vmem>>, %arg6: memref<3x32x32xf32, #tpu.memory_space<vmem>>, %arg7: memref<1x32xf32, #tpu.memory_space<vmem>>, %arg8: memref<1x32xf32, #tpu.memory_space<vmem>>, %arg9: memref<32x32xf32, #tpu.memory_space<vmem>>) attributes {dimension_semantics = [], scalar_prefetch = 0 : i64, scratch_operands = 0 : i64, tpu.core_type = #tpu.core_type<tc>} {
    %c0 = arith.constant 0 : index
    %c0_0 = arith.constant 0 : index
    %0 = vector.load %arg0[%c0, %c0_0] : memref<32x16xf32, #tpu.memory_space<vmem>>, vector<32x16xf32>
    %c0_1 = arith.constant 0 : index
    %c0_2 = arith.constant 0 : index
    %1 = vector.load %arg1[%c0_1, %c0_2] : memref<32x1xf32, #tpu.memory_space<vmem>>, vector<32x1xf32>
    %c0_3 = arith.constant 0 : index
    %c0_4 = arith.constant 0 : index
    %c0_5 = arith.constant 0 : index
    %2 = vector.load %arg2[%c0_3, %c0_4, %c0_5] : memref<3x32x1xf32, #tpu.memory_space<vmem>>, vector<3x32x1xf32>
    %c0_6 = arith.constant 0 : index
    %c0_7 = arith.constant 0 : index
    %c0_8 = arith.constant 0 : index
    %3 = vector.load %arg3[%c0_6, %c0_7, %c0_8] : memref<3x16x32xf32, #tpu.memory_space<vmem>>, vector<3x16x32xf32>
    %c0_9 = arith.constant 0 : index
    %c0_10 = arith.constant 0 : index
    %4 = vector.load %arg4[%c0_9, %c0_10] : memref<1x32xf32, #tpu.memory_space<vmem>>, vector<1x32xf32>
    %c0_11 = arith.constant 0 : index
    %c0_12 = arith.constant 0 : index
    %5 = vector.load %arg5[%c0_11, %c0_12] : memref<1x32xf32, #tpu.memory_space<vmem>>, vector<1x32xf32>
    %c1_i32 = arith.constant 1 : i32
    %6 = tpu.dynamic_rotate %0 by %c1_i32 dim 0 : vector<32x16xf32>, i32 -> vector<32x16xf32>
    %7 = vector.extract_strided_slice %2 {offsets = [0, 0, 0], sizes = [1, 32, 1], strides = [1, 1, 1]} : vector<3x32x1xf32> to vector<1x32x1xf32>
    %8 = vector.shape_cast %7 : vector<1x32x1xf32> to vector<32x1xf32>
    %9 = vector.broadcast %8 : vector<32x1xf32> to vector<32x16xf32>
    %10 = arith.mulf %6, %9 : vector<32x16xf32>
    %11 = vector.extract_strided_slice %3 {offsets = [0, 0, 0], sizes = [1, 16, 32], strides = [1, 1, 1]} : vector<3x16x32xf32> to vector<1x16x32xf32>
    %12 = vector.shape_cast %11 : vector<1x16x32xf32> to vector<16x32xf32>
    %13 = arith.truncf %10 : vector<32x16xf32> to vector<32x16xbf16>
    %14 = arith.truncf %12 : vector<16x32xf32> to vector<16x32xbf16>
    %cst = arith.constant dense<0.000000e+00> : vector<32x32xf32>
    %15 = tpu.matmul %13, %14, %cst {dimension_numbers = #tpu.dot_dimension_numbers<[1], [0], [0], [1], [0, 0, 1, 1], [], []>} : vector<32x16xbf16>, vector<16x32xbf16>, vector<32x32xf32> -> vector<32x32xf32>
    %16 = vector.extract_strided_slice %2 {offsets = [1, 0, 0], sizes = [1, 32, 1], strides = [1, 1, 1]} : vector<3x32x1xf32> to vector<1x32x1xf32>
    %17 = vector.shape_cast %16 : vector<1x32x1xf32> to vector<32x1xf32>
    %18 = vector.broadcast %17 : vector<32x1xf32> to vector<32x16xf32>
    %19 = arith.mulf %0, %18 : vector<32x16xf32>
    %20 = vector.extract_strided_slice %3 {offsets = [1, 0, 0], sizes = [1, 16, 32], strides = [1, 1, 1]} : vector<3x16x32xf32> to vector<1x16x32xf32>
    %21 = vector.shape_cast %20 : vector<1x16x32xf32> to vector<16x32xf32>
    %22 = arith.truncf %19 : vector<32x16xf32> to vector<32x16xbf16>
    %23 = arith.truncf %21 : vector<16x32xf32> to vector<16x32xbf16>
    %cst_13 = arith.constant dense<0.000000e+00> : vector<32x32xf32>
    %24 = tpu.matmul %22, %23, %cst_13 {dimension_numbers = #tpu.dot_dimension_numbers<[1], [0], [0], [1], [0, 0, 1, 1], [], []>} : vector<32x16xbf16>, vector<16x32xbf16>, vector<32x32xf32> -> vector<32x32xf32>
    %25 = arith.addf %15, %24 : vector<32x32xf32>
    %c31_i32 = arith.constant 31 : i32
    %26 = tpu.dynamic_rotate %0 by %c31_i32 dim 0 : vector<32x16xf32>, i32 -> vector<32x16xf32>
    %27 = vector.extract_strided_slice %2 {offsets = [2, 0, 0], sizes = [1, 32, 1], strides = [1, 1, 1]} : vector<3x32x1xf32> to vector<1x32x1xf32>
    %28 = vector.shape_cast %27 : vector<1x32x1xf32> to vector<32x1xf32>
    %29 = vector.broadcast %28 : vector<32x1xf32> to vector<32x16xf32>
    %30 = arith.mulf %26, %29 : vector<32x16xf32>
    %31 = vector.extract_strided_slice %3 {offsets = [2, 0, 0], sizes = [1, 16, 32], strides = [1, 1, 1]} : vector<3x16x32xf32> to vector<1x16x32xf32>
    %32 = vector.shape_cast %31 : vector<1x16x32xf32> to vector<16x32xf32>
    %33 = arith.truncf %30 : vector<32x16xf32> to vector<32x16xbf16>
    %34 = arith.truncf %32 : vector<16x32xf32> to vector<16x32xbf16>
    %cst_14 = arith.constant dense<0.000000e+00> : vector<32x32xf32>
    %35 = tpu.matmul %33, %34, %cst_14 {dimension_numbers = #tpu.dot_dimension_numbers<[1], [0], [0], [1], [0, 0, 1, 1], [], []>} : vector<32x16xbf16>, vector<16x32xbf16>, vector<32x32xf32> -> vector<32x32xf32>
    %36 = arith.addf %25, %35 : vector<32x32xf32>
    %37 = vector.broadcast %1 : vector<32x1xf32> to vector<32x32xf32>
    %38 = arith.mulf %36, %37 : vector<32x32xf32>
    %cst_15 = arith.constant dense<0.000000e+00> : vector<32xf32>
    %39 = vector.multi_reduction <add>, %38, %cst_15 [1] : vector<32x32xf32> to vector<32xf32>
    %40 = vector.shape_cast %39 : vector<32xf32> to vector<32x1xf32>
    %cst_16 = arith.constant 3.200000e+01 : f32
    %41 = vector.broadcast %cst_16 : f32 to vector<32x1xf32>
    %42 = arith.divf %40, %41 : vector<32x1xf32>
    %43 = vector.broadcast %42 : vector<32x1xf32> to vector<32x32xf32>
    %44 = arith.subf %38, %43 : vector<32x32xf32>
    %45 = arith.mulf %44, %44 : vector<32x32xf32>
    %cst_17 = arith.constant dense<0.000000e+00> : vector<32xf32>
    %46 = vector.multi_reduction <add>, %45, %cst_17 [1] : vector<32x32xf32> to vector<32xf32>
    %47 = vector.shape_cast %46 : vector<32xf32> to vector<32x1xf32>
    %cst_18 = arith.constant 3.200000e+01 : f32
    %48 = vector.broadcast %cst_18 : f32 to vector<32x1xf32>
    %49 = arith.divf %47, %48 : vector<32x1xf32>
    %cst_19 = arith.constant 9.99999974E-6 : f32
    %50 = vector.broadcast %cst_19 : f32 to vector<32x1xf32>
    %51 = arith.addf %49, %50 : vector<32x1xf32>
    %52 = math.rsqrt %51 : vector<32x1xf32>
    %53 = vector.broadcast %52 : vector<32x1xf32> to vector<32x32xf32>
    %54 = arith.mulf %44, %53 : vector<32x32xf32>
    %55 = vector.broadcast %4 : vector<1x32xf32> to vector<32x32xf32>
    %56 = arith.mulf %54, %55 : vector<32x32xf32>
    %57 = vector.broadcast %5 : vector<1x32xf32> to vector<32x32xf32>
    %58 = arith.addf %56, %57 : vector<32x32xf32>
    %cst_20 = arith.constant 0.000000e+00 : f32
    %59 = vector.broadcast %cst_20 : f32 to vector<32x32xf32>
    %60 = arith.maximumf %58, %59 : vector<32x32xf32>
    %c0_21 = arith.constant 0 : index
    %c0_22 = arith.constant 0 : index
    %c0_23 = arith.constant 0 : index
    %61 = vector.load %arg6[%c0_21, %c0_22, %c0_23] : memref<3x32x32xf32, #tpu.memory_space<vmem>>, vector<3x32x32xf32>
    %c0_24 = arith.constant 0 : index
    %c0_25 = arith.constant 0 : index
    %62 = vector.load %arg7[%c0_24, %c0_25] : memref<1x32xf32, #tpu.memory_space<vmem>>, vector<1x32xf32>
    %c0_26 = arith.constant 0 : index
    %c0_27 = arith.constant 0 : index
    %63 = vector.load %arg8[%c0_26, %c0_27] : memref<1x32xf32, #tpu.memory_space<vmem>>, vector<1x32xf32>
    %c1_i32_28 = arith.constant 1 : i32
    %64 = tpu.dynamic_rotate %60 by %c1_i32_28 dim 0 : vector<32x32xf32>, i32 -> vector<32x32xf32>
    %65 = vector.extract_strided_slice %2 {offsets = [0, 0, 0], sizes = [1, 32, 1], strides = [1, 1, 1]} : vector<3x32x1xf32> to vector<1x32x1xf32>
    %66 = vector.shape_cast %65 : vector<1x32x1xf32> to vector<32x1xf32>
    %67 = vector.broadcast %66 : vector<32x1xf32> to vector<32x32xf32>
    %68 = arith.mulf %64, %67 : vector<32x32xf32>
    %69 = vector.extract_strided_slice %61 {offsets = [0, 0, 0], sizes = [1, 32, 32], strides = [1, 1, 1]} : vector<3x32x32xf32> to vector<1x32x32xf32>
    %70 = vector.shape_cast %69 : vector<1x32x32xf32> to vector<32x32xf32>
    %71 = arith.truncf %68 : vector<32x32xf32> to vector<32x32xbf16>
    %72 = arith.truncf %70 : vector<32x32xf32> to vector<32x32xbf16>
    %cst_29 = arith.constant dense<0.000000e+00> : vector<32x32xf32>
    %73 = tpu.matmul %71, %72, %cst_29 {dimension_numbers = #tpu.dot_dimension_numbers<[1], [0], [0], [1], [0, 0, 1, 1], [], []>} : vector<32x32xbf16>, vector<32x32xbf16>, vector<32x32xf32> -> vector<32x32xf32>
    %74 = vector.extract_strided_slice %2 {offsets = [1, 0, 0], sizes = [1, 32, 1], strides = [1, 1, 1]} : vector<3x32x1xf32> to vector<1x32x1xf32>
    %75 = vector.shape_cast %74 : vector<1x32x1xf32> to vector<32x1xf32>
    %76 = vector.broadcast %75 : vector<32x1xf32> to vector<32x32xf32>
    %77 = arith.mulf %60, %76 : vector<32x32xf32>
    %78 = vector.extract_strided_slice %61 {offsets = [1, 0, 0], sizes = [1, 32, 32], strides = [1, 1, 1]} : vector<3x32x32xf32> to vector<1x32x32xf32>
    %79 = vector.shape_cast %78 : vector<1x32x32xf32> to vector<32x32xf32>
    %80 = arith.truncf %77 : vector<32x32xf32> to vector<32x32xbf16>
    %81 = arith.truncf %79 : vector<32x32xf32> to vector<32x32xbf16>
    %cst_30 = arith.constant dense<0.000000e+00> : vector<32x32xf32>
    %82 = tpu.matmul %80, %81, %cst_30 {dimension_numbers = #tpu.dot_dimension_numbers<[1], [0], [0], [1], [0, 0, 1, 1], [], []>} : vector<32x32xbf16>, vector<32x32xbf16>, vector<32x32xf32> -> vector<32x32xf32>
    %83 = arith.addf %73, %82 : vector<32x32xf32>
    %c31_i32_31 = arith.constant 31 : i32
    %84 = tpu.dynamic_rotate %60 by %c31_i32_31 dim 0 : vector<32x32xf32>, i32 -> vector<32x32xf32>
    %85 = vector.extract_strided_slice %2 {offsets = [2, 0, 0], sizes = [1, 32, 1], strides = [1, 1, 1]} : vector<3x32x1xf32> to vector<1x32x1xf32>
    %86 = vector.shape_cast %85 : vector<1x32x1xf32> to vector<32x1xf32>
    %87 = vector.broadcast %86 : vector<32x1xf32> to vector<32x32xf32>
    %88 = arith.mulf %84, %87 : vector<32x32xf32>
    %89 = vector.extract_strided_slice %61 {offsets = [2, 0, 0], sizes = [1, 32, 32], strides = [1, 1, 1]} : vector<3x32x32xf32> to vector<1x32x32xf32>
    %90 = vector.shape_cast %89 : vector<1x32x32xf32> to vector<32x32xf32>
    %91 = arith.truncf %88 : vector<32x32xf32> to vector<32x32xbf16>
    %92 = arith.truncf %90 : vector<32x32xf32> to vector<32x32xbf16>
    %cst_32 = arith.constant dense<0.000000e+00> : vector<32x32xf32>
    %93 = tpu.matmul %91, %92, %cst_32 {dimension_numbers = #tpu.dot_dimension_numbers<[1], [0], [0], [1], [0, 0, 1, 1], [], []>} : vector<32x32xbf16>, vector<32x32xbf16>, vector<32x32xf32> -> vector<32x32xf32>
    %94 = arith.addf %83, %93 : vector<32x32xf32>
    %95 = vector.broadcast %1 : vector<32x1xf32> to vector<32x32xf32>
    %96 = arith.mulf %94, %95 : vector<32x32xf32>
    %cst_33 = arith.constant dense<0.000000e+00> : vector<32xf32>
    %97 = vector.multi_reduction <add>, %96, %cst_33 [1] : vector<32x32xf32> to vector<32xf32>
    %98 = vector.shape_cast %97 : vector<32xf32> to vector<32x1xf32>
    %cst_34 = arith.constant 3.200000e+01 : f32
    %99 = vector.broadcast %cst_34 : f32 to vector<32x1xf32>
    %100 = arith.divf %98, %99 : vector<32x1xf32>
    %101 = vector.broadcast %100 : vector<32x1xf32> to vector<32x32xf32>
    %102 = arith.subf %96, %101 : vector<32x32xf32>
    %103 = arith.mulf %102, %102 : vector<32x32xf32>
    %cst_35 = arith.constant dense<0.000000e+00> : vector<32xf32>
    %104 = vector.multi_reduction <add>, %103, %cst_35 [1] : vector<32x32xf32> to vector<32xf32>
    %105 = vector.shape_cast %104 : vector<32xf32> to vector<32x1xf32>
    %cst_36 = arith.constant 3.200000e+01 : f32
    %106 = vector.broadcast %cst_36 : f32 to vector<32x1xf32>
    %107 = arith.divf %105, %106 : vector<32x1xf32>
    %cst_37 = arith.constant 9.99999974E-6 : f32
    %108 = vector.broadcast %cst_37 : f32 to vector<32x1xf32>
    %109 = arith.addf %107, %108 : vector<32x1xf32>
    %110 = math.rsqrt %109 : vector<32x1xf32>
    %111 = vector.broadcast %110 : vector<32x1xf32> to vector<32x32xf32>
    %112 = arith.mulf %102, %111 : vector<32x32xf32>
    %113 = vector.broadcast %62 : vector<1x32xf32> to vector<32x32xf32>
    %114 = arith.mulf %112, %113 : vector<32x32xf32>
    %115 = vector.broadcast %63 : vector<1x32xf32> to vector<32x32xf32>
    %116 = arith.addf %114, %115 : vector<32x32xf32>
    %cst_38 = arith.constant 0.000000e+00 : f32
    %117 = vector.broadcast %cst_38 : f32 to vector<32x32xf32>
    %118 = arith.maximumf %116, %117 : vector<32x32xf32>
    %c0_39 = arith.constant 0 : index
    %c0_40 = arith.constant 0 : index
    %119 = vector.load %arg9[%c0_39, %c0_40] : memref<32x32xf32, #tpu.memory_space<vmem>>, vector<32x32xf32>
    tpu.vector_store %arg9[%c0_39, %c0_40], %118 {strides = array<i32>} : memref<32x32xf32, #tpu.memory_space<vmem>>, vector<32x32xf32>,
    return
  }
}

module attributes {stable_mosaic.version = 11 : i64} {
  func.func @encoder_stack_kernel(%arg0: i32, %arg1: memref<1x16x32xf32, #tpu.memory_space<vmem>>, %arg2: memref<1x16x1xf32, #tpu.memory_space<vmem>>, %arg3: memref<1x1x16xf32, #tpu.memory_space<vmem>>, %arg4: memref<1x32xf32, #tpu.memory_space<vmem>>, %arg5: memref<1x32xf32, #tpu.memory_space<vmem>>, %arg6: memref<1x3x3x32xf32, #tpu.memory_space<vmem>>, %arg7: memref<1x3x32xf32, #tpu.memory_space<vmem>>, %arg8: memref<1x3x32xf32, #tpu.memory_space<vmem>>, %arg9: memref<1x96x96xf32, #tpu.memory_space<vmem>>, %arg10: memref<1x96xf32, #tpu.memory_space<vmem>>, %arg11: memref<1x32x32xf32, #tpu.memory_space<vmem>>, %arg12: memref<1x32xf32, #tpu.memory_space<vmem>>, %arg13: memref<1x32xf32, #tpu.memory_space<vmem>>, %arg14: memref<1x32xf32, #tpu.memory_space<vmem>>, %arg15: memref<1x32x32xf32, #tpu.memory_space<vmem>>, %arg16: memref<1x32xf32, #tpu.memory_space<vmem>>, %arg17: memref<1x32x32xf32, #tpu.memory_space<vmem>>, %arg18: memref<1x32xf32, #tpu.memory_space<vmem>>, %arg19: memref<1x16x32xf32, #tpu.memory_space<vmem>>) attributes {dimension_semantics = [#tpu.dimension_semantics<parallel>], iteration_bounds = array<i64: 2>, scalar_prefetch = 0 : i64, scratch_operands = 0 : i64, tpu.core_type = #tpu.core_type<tc>, window_params = [{transform_indices = @transform_0, window_bounds = array<i64: 1, 16, 32>}, {transform_indices = @transform_1, window_bounds = array<i64: 1, 16, 1>}, {transform_indices = @transform_2, window_bounds = array<i64: 1, 1, 16>}, {pipeline_mode = #tpu.pipeline_mode<synchronous>, transform_indices = @transform_3, window_bounds = array<i64: 1, 32>}, {pipeline_mode = #tpu.pipeline_mode<synchronous>, transform_indices = @transform_4, window_bounds = array<i64: 1, 32>}, {pipeline_mode = #tpu.pipeline_mode<synchronous>, transform_indices = @transform_5, window_bounds = array<i64: 1, 3, 3, 32>}, {pipeline_mode = #tpu.pipeline_mode<synchronous>, transform_indices = @transform_6, window_bounds = array<i64: 1, 3, 32>}, {pipeline_mode = #tpu.pipeline_mode<synchronous>, transform_indices = @transform_7, window_bounds = array<i64: 1, 3, 32>}, {pipeline_mode = #tpu.pipeline_mode<synchronous>, transform_indices = @transform_8, window_bounds = array<i64: 1, 96, 96>}, {pipeline_mode = #tpu.pipeline_mode<synchronous>, transform_indices = @transform_9, window_bounds = array<i64: 1, 96>}, {pipeline_mode = #tpu.pipeline_mode<synchronous>, transform_indices = @transform_10, window_bounds = array<i64: 1, 32, 32>}, {pipeline_mode = #tpu.pipeline_mode<synchronous>, transform_indices = @transform_11, window_bounds = array<i64: 1, 32>}, {pipeline_mode = #tpu.pipeline_mode<synchronous>, transform_indices = @transform_12, window_bounds = array<i64: 1, 32>}, {pipeline_mode = #tpu.pipeline_mode<synchronous>, transform_indices = @transform_13, window_bounds = array<i64: 1, 32>}, {pipeline_mode = #tpu.pipeline_mode<synchronous>, transform_indices = @transform_14, window_bounds = array<i64: 1, 32, 32>}, {pipeline_mode = #tpu.pipeline_mode<synchronous>, transform_indices = @transform_15, window_bounds = array<i64: 1, 32>}, {pipeline_mode = #tpu.pipeline_mode<synchronous>, transform_indices = @transform_16, window_bounds = array<i64: 1, 32, 32>}, {pipeline_mode = #tpu.pipeline_mode<synchronous>, transform_indices = @transform_17, window_bounds = array<i64: 1, 32>}, {transform_indices = @transform_18, window_bounds = array<i64: 1, 16, 32>}]} {
    %c0 = arith.constant 0 : index
    %c0_0 = arith.constant 0 : index
    %c0_1 = arith.constant 0 : index
    %0 = vector.load %arg1[%c0, %c0_0, %c0_1] : memref<1x16x32xf32, #tpu.memory_space<vmem>>, vector<1x16x32xf32>
    %1 = vector.shape_cast %0 : vector<1x16x32xf32> to vector<16x32xf32>
    %c0_2 = arith.constant 0 : index
    %c0_3 = arith.constant 0 : index
    %c0_4 = arith.constant 0 : index
    %2 = vector.load %arg2[%c0_2, %c0_3, %c0_4] : memref<1x16x1xf32, #tpu.memory_space<vmem>>, vector<1x16x1xf32>
    %3 = vector.shape_cast %2 : vector<1x16x1xf32> to vector<16x1xf32>
    %c0_5 = arith.constant 0 : index
    %c0_6 = arith.constant 0 : index
    %c0_7 = arith.constant 0 : index
    %4 = vector.load %arg3[%c0_5, %c0_6, %c0_7] : memref<1x1x16xf32, #tpu.memory_space<vmem>>, vector<1x1x16xf32>
    %5 = vector.shape_cast %4 : vector<1x1x16xf32> to vector<1x16xf32>
    %6 = tpu.iota {dimensions = array<i32: 0>} : vector<16x1xi32>
    %c0_i32 = arith.constant 0 : i32
    %7 = vector.broadcast %c0_i32 : i32 to vector<16x1xi32>
    %8 = arith.cmpi sgt, %6, %7 : vector<16x1xi32>
    %9 = arith.extui %8 : vector<16x1xi1> to vector<16x1xi32>
    %10 = arith.sitofp %9 : vector<16x1xi32> to vector<16x1xf32>
    %c15_i32 = arith.constant 15 : i32
    %11 = vector.broadcast %c15_i32 : i32 to vector<16x1xi32>
    %12 = arith.cmpi slt, %6, %11 : vector<16x1xi32>
    %13 = arith.extui %12 : vector<16x1xi1> to vector<16x1xi32>
    %14 = arith.sitofp %13 : vector<16x1xi32> to vector<16x1xf32>
    %c0_8 = arith.constant 0 : index
    %c0_9 = arith.constant 0 : index
    %15 = vector.load %arg4[%c0_8, %c0_9] : memref<1x32xf32, #tpu.memory_space<vmem>>, vector<1x32xf32>
    %16 = vector.shape_cast %15 : vector<1x32xf32> to vector<32xf32>
    %c0_10 = arith.constant 0 : index
    %c0_11 = arith.constant 0 : index
    %17 = vector.load %arg5[%c0_10, %c0_11] : memref<1x32xf32, #tpu.memory_space<vmem>>, vector<1x32xf32>
    %18 = vector.shape_cast %17 : vector<1x32xf32> to vector<32xf32>
    %cst = arith.constant dense<0.000000e+00> : vector<16xf32>
    %19 = vector.multi_reduction <add>, %1, %cst [1] : vector<16x32xf32> to vector<16xf32>
    %20 = vector.shape_cast %19 : vector<16xf32> to vector<16x1xf32>
    %cst_12 = arith.constant 3.200000e+01 : f32
    %21 = vector.broadcast %cst_12 : f32 to vector<16x1xf32>
    %22 = arith.divf %20, %21 : vector<16x1xf32>
    %23 = vector.broadcast %22 : vector<16x1xf32> to vector<16x32xf32>
    %24 = arith.subf %1, %23 : vector<16x32xf32>
    %25 = arith.mulf %24, %24 : vector<16x32xf32>
    %cst_13 = arith.constant dense<0.000000e+00> : vector<16xf32>
    %26 = vector.multi_reduction <add>, %25, %cst_13 [1] : vector<16x32xf32> to vector<16xf32>
    %27 = vector.shape_cast %26 : vector<16xf32> to vector<16x1xf32>
    %cst_14 = arith.constant 3.200000e+01 : f32
    %28 = vector.broadcast %cst_14 : f32 to vector<16x1xf32>
    %29 = arith.divf %27, %28 : vector<16x1xf32>
    %cst_15 = arith.constant 9.99999974E-6 : f32
    %30 = vector.broadcast %cst_15 : f32 to vector<16x1xf32>
    %31 = arith.addf %29, %30 : vector<16x1xf32>
    %32 = math.rsqrt %31 : vector<16x1xf32>
    %33 = vector.broadcast %32 : vector<16x1xf32> to vector<16x32xf32>
    %34 = arith.mulf %24, %33 : vector<16x32xf32>
    %35 = vector.shape_cast %16 : vector<32xf32> to vector<1x32xf32>
    %36 = vector.broadcast %35 : vector<1x32xf32> to vector<16x32xf32>
    %37 = arith.mulf %34, %36 : vector<16x32xf32>
    %38 = vector.shape_cast %18 : vector<32xf32> to vector<1x32xf32>
    %39 = vector.broadcast %38 : vector<1x32xf32> to vector<16x32xf32>
    %40 = arith.addf %37, %39 : vector<16x32xf32>
    %c1_i32 = arith.constant 1 : i32
    %41 = tpu.dynamic_rotate %40 by %c1_i32 dim 0 : vector<16x32xf32>, i32 -> vector<16x32xf32>
    %42 = vector.broadcast %10 : vector<16x1xf32> to vector<16x32xf32>
    %43 = arith.mulf %41, %42 : vector<16x32xf32>
    %c15_i32_16 = arith.constant 15 : i32
    %44 = tpu.dynamic_rotate %40 by %c15_i32_16 dim 0 : vector<16x32xf32>, i32 -> vector<16x32xf32>
    %45 = vector.broadcast %14 : vector<16x1xf32> to vector<16x32xf32>
    %46 = arith.mulf %44, %45 : vector<16x32xf32>
    %c0_17 = arith.constant 0 : index
    %c0_18 = arith.constant 0 : index
    %c0_19 = arith.constant 0 : index
    %c0_20 = arith.constant 0 : index
    %47 = vector.load %arg6[%c0_17, %c0_18, %c0_19, %c0_20] : memref<1x3x3x32xf32, #tpu.memory_space<vmem>>, vector<1x3x3x32xf32>
    %48 = vector.shape_cast %47 : vector<1x3x3x32xf32> to vector<3x3x32xf32>
    %c0_21 = arith.constant 0 : index
    %c0_22 = arith.constant 0 : index
    %c0_23 = arith.constant 0 : index
    %49 = vector.load %arg7[%c0_21, %c0_22, %c0_23] : memref<1x3x32xf32, #tpu.memory_space<vmem>>, vector<1x3x32xf32>
    %50 = vector.shape_cast %49 : vector<1x3x32xf32> to vector<3x32xf32>
    %c0_24 = arith.constant 0 : index
    %c0_25 = arith.constant 0 : index
    %c0_26 = arith.constant 0 : index
    %51 = vector.load %arg8[%c0_24, %c0_25, %c0_26] : memref<1x3x32xf32, #tpu.memory_space<vmem>>, vector<1x3x32xf32>
    %52 = vector.shape_cast %51 : vector<1x3x32xf32> to vector<3x32xf32>
    %53 = vector.extract_strided_slice %48 {offsets = [0, 0, 0], sizes = [1, 1, 32], strides = [1, 1, 1]} : vector<3x3x32xf32> to vector<1x1x32xf32>
    %54 = vector.shape_cast %53 : vector<1x1x32xf32> to vector<32xf32>
    %55 = vector.shape_cast %54 : vector<32xf32> to vector<1x32xf32>
    %56 = vector.broadcast %55 : vector<1x32xf32> to vector<16x32xf32>
    %57 = arith.mulf %56, %43 : vector<16x32xf32>
    %58 = vector.extract_strided_slice %48 {offsets = [0, 1, 0], sizes = [1, 1, 32], strides = [1, 1, 1]} : vector<3x3x32xf32> to vector<1x1x32xf32>
    %59 = vector.shape_cast %58 : vector<1x1x32xf32> to vector<32xf32>
    %60 = vector.shape_cast %59 : vector<32xf32> to vector<1x32xf32>
    %61 = vector.broadcast %60 : vector<1x32xf32> to vector<16x32xf32>
    %62 = arith.mulf %61, %40 : vector<16x32xf32>
    %63 = arith.addf %57, %62 : vector<16x32xf32>
    %64 = vector.extract_strided_slice %48 {offsets = [0, 2, 0], sizes = [1, 1, 32], strides = [1, 1, 1]} : vector<3x3x32xf32> to vector<1x1x32xf32>
    %65 = vector.shape_cast %64 : vector<1x1x32xf32> to vector<32xf32>
    %66 = vector.shape_cast %65 : vector<32xf32> to vector<1x32xf32>
    %67 = vector.broadcast %66 : vector<1x32xf32> to vector<16x32xf32>
    %68 = arith.mulf %67, %46 : vector<16x32xf32>
    %69 = arith.addf %63, %68 : vector<16x32xf32>
    %70 = vector.broadcast %3 : vector<16x1xf32> to vector<16x32xf32>
    %71 = arith.mulf %69, %70 : vector<16x32xf32>
    %72 = vector.extract_strided_slice %50 {offsets = [0, 0], sizes = [1, 32], strides = [1, 1]} : vector<3x32xf32> to vector<1x32xf32>
    %73 = vector.shape_cast %72 : vector<1x32xf32> to vector<32xf32>
    %74 = vector.extract_strided_slice %52 {offsets = [0, 0], sizes = [1, 32], strides = [1, 1]} : vector<3x32xf32> to vector<1x32xf32>
    %75 = vector.shape_cast %74 : vector<1x32xf32> to vector<32xf32>
    %cst_27 = arith.constant dense<0.000000e+00> : vector<16xf32>
    %76 = vector.multi_reduction <add>, %71, %cst_27 [1] : vector<16x32xf32> to vector<16xf32>
    %77 = vector.shape_cast %76 : vector<16xf32> to vector<16x1xf32>
    %cst_28 = arith.constant 3.200000e+01 : f32
    %78 = vector.broadcast %cst_28 : f32 to vector<16x1xf32>
    %79 = arith.divf %77, %78 : vector<16x1xf32>
    %80 = vector.broadcast %79 : vector<16x1xf32> to vector<16x32xf32>
    %81 = arith.subf %71, %80 : vector<16x32xf32>
    %82 = arith.mulf %81, %81 : vector<16x32xf32>
    %cst_29 = arith.constant dense<0.000000e+00> : vector<16xf32>
    %83 = vector.multi_reduction <add>, %82, %cst_29 [1] : vector<16x32xf32> to vector<16xf32>
    %84 = vector.shape_cast %83 : vector<16xf32> to vector<16x1xf32>
    %cst_30 = arith.constant 3.200000e+01 : f32
    %85 = vector.broadcast %cst_30 : f32 to vector<16x1xf32>
    %86 = arith.divf %84, %85 : vector<16x1xf32>
    %cst_31 = arith.constant 9.99999974E-6 : f32
    %87 = vector.broadcast %cst_31 : f32 to vector<16x1xf32>
    %88 = arith.addf %86, %87 : vector<16x1xf32>
    %89 = math.rsqrt %88 : vector<16x1xf32>
    %90 = vector.broadcast %89 : vector<16x1xf32> to vector<16x32xf32>
    %91 = arith.mulf %81, %90 : vector<16x32xf32>
    %92 = vector.shape_cast %73 : vector<32xf32> to vector<1x32xf32>
    %93 = vector.broadcast %92 : vector<1x32xf32> to vector<16x32xf32>
    %94 = arith.mulf %91, %93 : vector<16x32xf32>
    %95 = vector.shape_cast %75 : vector<32xf32> to vector<1x32xf32>
    %96 = vector.broadcast %95 : vector<1x32xf32> to vector<16x32xf32>
    %97 = arith.addf %94, %96 : vector<16x32xf32>
    %98 = vector.extract_strided_slice %48 {offsets = [1, 0, 0], sizes = [1, 1, 32], strides = [1, 1, 1]} : vector<3x3x32xf32> to vector<1x1x32xf32>
    %99 = vector.shape_cast %98 : vector<1x1x32xf32> to vector<32xf32>
    %100 = vector.shape_cast %99 : vector<32xf32> to vector<1x32xf32>
    %101 = vector.broadcast %100 : vector<1x32xf32> to vector<16x32xf32>
    %102 = arith.mulf %101, %43 : vector<16x32xf32>
    %103 = vector.extract_strided_slice %48 {offsets = [1, 1, 0], sizes = [1, 1, 32], strides = [1, 1, 1]} : vector<3x3x32xf32> to vector<1x1x32xf32>
    %104 = vector.shape_cast %103 : vector<1x1x32xf32> to vector<32xf32>
    %105 = vector.shape_cast %104 : vector<32xf32> to vector<1x32xf32>
    %106 = vector.broadcast %105 : vector<1x32xf32> to vector<16x32xf32>
    %107 = arith.mulf %106, %40 : vector<16x32xf32>
    %108 = arith.addf %102, %107 : vector<16x32xf32>
    %109 = vector.extract_strided_slice %48 {offsets = [1, 2, 0], sizes = [1, 1, 32], strides = [1, 1, 1]} : vector<3x3x32xf32> to vector<1x1x32xf32>
    %110 = vector.shape_cast %109 : vector<1x1x32xf32> to vector<32xf32>
    %111 = vector.shape_cast %110 : vector<32xf32> to vector<1x32xf32>
    %112 = vector.broadcast %111 : vector<1x32xf32> to vector<16x32xf32>
    %113 = arith.mulf %112, %46 : vector<16x32xf32>
    %114 = arith.addf %108, %113 : vector<16x32xf32>
    %115 = vector.broadcast %3 : vector<16x1xf32> to vector<16x32xf32>
    %116 = arith.mulf %114, %115 : vector<16x32xf32>
    %117 = vector.extract_strided_slice %50 {offsets = [1, 0], sizes = [1, 32], strides = [1, 1]} : vector<3x32xf32> to vector<1x32xf32>
    %118 = vector.shape_cast %117 : vector<1x32xf32> to vector<32xf32>
    %119 = vector.extract_strided_slice %52 {offsets = [1, 0], sizes = [1, 32], strides = [1, 1]} : vector<3x32xf32> to vector<1x32xf32>
    %120 = vector.shape_cast %119 : vector<1x32xf32> to vector<32xf32>
    %cst_32 = arith.constant dense<0.000000e+00> : vector<16xf32>
    %121 = vector.multi_reduction <add>, %116, %cst_32 [1] : vector<16x32xf32> to vector<16xf32>
    %122 = vector.shape_cast %121 : vector<16xf32> to vector<16x1xf32>
    %cst_33 = arith.constant 3.200000e+01 : f32
    %123 = vector.broadcast %cst_33 : f32 to vector<16x1xf32>
    %124 = arith.divf %122, %123 : vector<16x1xf32>
    %125 = vector.broadcast %124 : vector<16x1xf32> to vector<16x32xf32>
    %126 = arith.subf %116, %125 : vector<16x32xf32>
    %127 = arith.mulf %126, %126 : vector<16x32xf32>
    %cst_34 = arith.constant dense<0.000000e+00> : vector<16xf32>
    %128 = vector.multi_reduction <add>, %127, %cst_34 [1] : vector<16x32xf32> to vector<16xf32>
    %129 = vector.shape_cast %128 : vector<16xf32> to vector<16x1xf32>
    %cst_35 = arith.constant 3.200000e+01 : f32
    %130 = vector.broadcast %cst_35 : f32 to vector<16x1xf32>
    %131 = arith.divf %129, %130 : vector<16x1xf32>
    %cst_36 = arith.constant 9.99999974E-6 : f32
    %132 = vector.broadcast %cst_36 : f32 to vector<16x1xf32>
    %133 = arith.addf %131, %132 : vector<16x1xf32>
    %134 = math.rsqrt %133 : vector<16x1xf32>
    %135 = vector.broadcast %134 : vector<16x1xf32> to vector<16x32xf32>
    %136 = arith.mulf %126, %135 : vector<16x32xf32>
    %137 = vector.shape_cast %118 : vector<32xf32> to vector<1x32xf32>
    %138 = vector.broadcast %137 : vector<1x32xf32> to vector<16x32xf32>
    %139 = arith.mulf %136, %138 : vector<16x32xf32>
    %140 = vector.shape_cast %120 : vector<32xf32> to vector<1x32xf32>
    %141 = vector.broadcast %140 : vector<1x32xf32> to vector<16x32xf32>
    %142 = arith.addf %139, %141 : vector<16x32xf32>
    %143 = vector.extract_strided_slice %48 {offsets = [2, 0, 0], sizes = [1, 1, 32], strides = [1, 1, 1]} : vector<3x3x32xf32> to vector<1x1x32xf32>
    %144 = vector.shape_cast %143 : vector<1x1x32xf32> to vector<32xf32>
    %145 = vector.shape_cast %144 : vector<32xf32> to vector<1x32xf32>
    %146 = vector.broadcast %145 : vector<1x32xf32> to vector<16x32xf32>
    %147 = arith.mulf %146, %43 : vector<16x32xf32>
    %148 = vector.extract_strided_slice %48 {offsets = [2, 1, 0], sizes = [1, 1, 32], strides = [1, 1, 1]} : vector<3x3x32xf32> to vector<1x1x32xf32>
    %149 = vector.shape_cast %148 : vector<1x1x32xf32> to vector<32xf32>
    %150 = vector.shape_cast %149 : vector<32xf32> to vector<1x32xf32>
    %151 = vector.broadcast %150 : vector<1x32xf32> to vector<16x32xf32>
    %152 = arith.mulf %151, %40 : vector<16x32xf32>
    %153 = arith.addf %147, %152 : vector<16x32xf32>
    %154 = vector.extract_strided_slice %48 {offsets = [2, 2, 0], sizes = [1, 1, 32], strides = [1, 1, 1]} : vector<3x3x32xf32> to vector<1x1x32xf32>
    %155 = vector.shape_cast %154 : vector<1x1x32xf32> to vector<32xf32>
    %156 = vector.shape_cast %155 : vector<32xf32> to vector<1x32xf32>
    %157 = vector.broadcast %156 : vector<1x32xf32> to vector<16x32xf32>
    %158 = arith.mulf %157, %46 : vector<16x32xf32>
    %159 = arith.addf %153, %158 : vector<16x32xf32>
    %160 = vector.broadcast %3 : vector<16x1xf32> to vector<16x32xf32>
    %161 = arith.mulf %159, %160 : vector<16x32xf32>
    %162 = vector.extract_strided_slice %50 {offsets = [2, 0], sizes = [1, 32], strides = [1, 1]} : vector<3x32xf32> to vector<1x32xf32>
    %163 = vector.shape_cast %162 : vector<1x32xf32> to vector<32xf32>
    %164 = vector.extract_strided_slice %52 {offsets = [2, 0], sizes = [1, 32], strides = [1, 1]} : vector<3x32xf32> to vector<1x32xf32>
    %165 = vector.shape_cast %164 : vector<1x32xf32> to vector<32xf32>
    %cst_37 = arith.constant dense<0.000000e+00> : vector<16xf32>
    %166 = vector.multi_reduction <add>, %161, %cst_37 [1] : vector<16x32xf32> to vector<16xf32>
    %167 = vector.shape_cast %166 : vector<16xf32> to vector<16x1xf32>
    %cst_38 = arith.constant 3.200000e+01 : f32
    %168 = vector.broadcast %cst_38 : f32 to vector<16x1xf32>
    %169 = arith.divf %167, %168 : vector<16x1xf32>
    %170 = vector.broadcast %169 : vector<16x1xf32> to vector<16x32xf32>
    %171 = arith.subf %161, %170 : vector<16x32xf32>
    %172 = arith.mulf %171, %171 : vector<16x32xf32>
    %cst_39 = arith.constant dense<0.000000e+00> : vector<16xf32>
    %173 = vector.multi_reduction <add>, %172, %cst_39 [1] : vector<16x32xf32> to vector<16xf32>
    %174 = vector.shape_cast %173 : vector<16xf32> to vector<16x1xf32>
    %cst_40 = arith.constant 3.200000e+01 : f32
    %175 = vector.broadcast %cst_40 : f32 to vector<16x1xf32>
    %176 = arith.divf %174, %175 : vector<16x1xf32>
    %cst_41 = arith.constant 9.99999974E-6 : f32
    %177 = vector.broadcast %cst_41 : f32 to vector<16x1xf32>
    %178 = arith.addf %176, %177 : vector<16x1xf32>
    %179 = math.rsqrt %178 : vector<16x1xf32>
    %180 = vector.broadcast %179 : vector<16x1xf32> to vector<16x32xf32>
    %181 = arith.mulf %171, %180 : vector<16x32xf32>
    %182 = vector.shape_cast %163 : vector<32xf32> to vector<1x32xf32>
    %183 = vector.broadcast %182 : vector<1x32xf32> to vector<16x32xf32>
    %184 = arith.mulf %181, %183 : vector<16x32xf32>
    %185 = vector.shape_cast %165 : vector<32xf32> to vector<1x32xf32>
    %186 = vector.broadcast %185 : vector<1x32xf32> to vector<16x32xf32>
    %187 = arith.addf %184, %186 : vector<16x32xf32>
    %188 = tpu.concatenate %97, %142, %187 in 1 : vector<16x32xf32>, vector<16x32xf32>, vector<16x32xf32> -> vector<16x96xf32>
    %c0_42 = arith.constant 0 : index
    %c0_43 = arith.constant 0 : index
    %c0_44 = arith.constant 0 : index
    %189 = vector.load %arg9[%c0_42, %c0_43, %c0_44] : memref<1x96x96xf32, #tpu.memory_space<vmem>>, vector<1x96x96xf32>
    %190 = vector.shape_cast %189 : vector<1x96x96xf32> to vector<96x96xf32>
    %191 = arith.truncf %188 : vector<16x96xf32> to vector<16x96xbf16>
    %192 = arith.truncf %190 : vector<96x96xf32> to vector<96x96xbf16>
    %cst_45 = arith.constant dense<0.000000e+00> : vector<16x96xf32>
    %193 = tpu.matmul %191, %192, %cst_45 {dimension_numbers = #tpu.dot_dimension_numbers<[1], [0], [0], [1], [0, 0, 1, 1], [], []>} : vector<16x96xbf16>, vector<96x96xbf16>, vector<16x96xf32> -> vector<16x96xf32>
    %c0_46 = arith.constant 0 : index
    %c0_47 = arith.constant 0 : index
    %194 = vector.load %arg10[%c0_46, %c0_47] : memref<1x96xf32, #tpu.memory_space<vmem>>, vector<1x96xf32>
    %195 = vector.shape_cast %194 : vector<1x96xf32> to vector<96xf32>
    %196 = vector.shape_cast %195 : vector<96xf32> to vector<1x96xf32>
    %197 = vector.broadcast %196 : vector<1x96xf32> to vector<16x96xf32>
    %198 = arith.addf %193, %197 : vector<16x96xf32>
    %199 = vector.extract_strided_slice %198 {offsets = [0, 0], sizes = [16, 32], strides = [1, 1]} : vector<16x96xf32> to vector<16x32xf32>
    %200 = vector.extract_strided_slice %198 {offsets = [0, 32], sizes = [16, 32], strides = [1, 1]} : vector<16x96xf32> to vector<16x32xf32>
    %201 = vector.extract_strided_slice %198 {offsets = [0, 64], sizes = [16, 32], strides = [1, 1]} : vector<16x96xf32> to vector<16x32xf32>
    %202 = vector.broadcast %3 : vector<16x1xf32> to vector<16x32xf32>
    %203 = arith.mulf %201, %202 : vector<16x32xf32>
    %204 = vector.extract_strided_slice %199 {offsets = [0, 0], sizes = [16, 8], strides = [1, 1]} : vector<16x32xf32> to vector<16x8xf32>
    %cst_48 = arith.constant 0.353553385 : f32
    %205 = vector.broadcast %cst_48 : f32 to vector<16x8xf32>
    %206 = arith.mulf %204, %205 : vector<16x8xf32>
    %207 = arith.truncf %206 : vector<16x8xf32> to vector<16x8xbf16>
    %208 = vector.extract_strided_slice %200 {offsets = [0, 0], sizes = [16, 8], strides = [1, 1]} : vector<16x32xf32> to vector<16x8xf32>
    %209 = arith.truncf %208 : vector<16x8xf32> to vector<16x8xbf16>
    %cst_49 = arith.constant dense<0.000000e+00> : vector<16x16xf32>
    %210 = tpu.matmul %207, %209, %cst_49 {dimension_numbers = #tpu.dot_dimension_numbers<[1], [1], [0], [0], [0, 0, 1, 0], [], []>} : vector<16x8xbf16>, vector<16x8xbf16>, vector<16x16xf32> -> vector<16x16xf32>
    %cst_50 = arith.constant 0.000000e+00 : f32
    %211 = vector.broadcast %cst_50 : f32 to vector<1x16xf32>
    %212 = arith.cmpf ogt, %5, %211 : vector<1x16xf32>
    %cst_51 = arith.constant -1.000000e+30 : f32
    %213 = vector.shape_cast %212 : vector<1x16xi1> to vector<1x16xi1>
    %214 = vector.broadcast %213 : vector<1x16xi1> to vector<16x16xi1>
    %215 = vector.broadcast %cst_51 : f32 to vector<16x16xf32>
    %216 = arith.select %214, %210, %215 : vector<16x16xi1>, vector<16x16xf32>
    %cst_52 = arith.constant dense<0xFF800000> : vector<16xf32>
    %217 = vector.multi_reduction <maximumf>, %216, %cst_52 [1] : vector<16x16xf32> to vector<16xf32>
    %218 = vector.shape_cast %217 : vector<16xf32> to vector<16x1xf32>
    %219 = vector.broadcast %218 : vector<16x1xf32> to vector<16x16xf32>
    %220 = arith.subf %216, %219 : vector<16x16xf32>
    %221 = math.exp %220 : vector<16x16xf32>
    %cst_53 = arith.constant dense<0.000000e+00> : vector<16xf32>
    %222 = vector.multi_reduction <add>, %221, %cst_53 [1] : vector<16x16xf32> to vector<16xf32>
    %223 = vector.shape_cast %222 : vector<16xf32> to vector<16x1xf32>
    %224 = tpu.reciprocal %223 {approx = true} : vector<16x1xf32> -> vector<16x1xf32>
    %225 = vector.broadcast %224 : vector<16x1xf32> to vector<16x16xf32>
    %226 = arith.mulf %221, %225 : vector<16x16xf32>
    %227 = vector.extract_strided_slice %203 {offsets = [0, 0], sizes = [16, 8], strides = [1, 1]} : vector<16x32xf32> to vector<16x8xf32>
    %228 = arith.truncf %226 : vector<16x16xf32> to vector<16x16xbf16>
    %229 = arith.truncf %227 : vector<16x8xf32> to vector<16x8xbf16>
    %cst_54 = arith.constant dense<0.000000e+00> : vector<16x8xf32>
    %230 = tpu.matmul %228, %229, %cst_54 {dimension_numbers = #tpu.dot_dimension_numbers<[1], [0], [0], [1], [0, 0, 1, 1], [], []>} : vector<16x16xbf16>, vector<16x8xbf16>, vector<16x8xf32> -> vector<16x8xf32>
    %231 = vector.extract_strided_slice %199 {offsets = [0, 8], sizes = [16, 8], strides = [1, 1]} : vector<16x32xf32> to vector<16x8xf32>
    %cst_55 = arith.constant 0.353553385 : f32
    %232 = vector.broadcast %cst_55 : f32 to vector<16x8xf32>
    %233 = arith.mulf %231, %232 : vector<16x8xf32>
    %234 = arith.truncf %233 : vector<16x8xf32> to vector<16x8xbf16>
    %235 = vector.extract_strided_slice %200 {offsets = [0, 8], sizes = [16, 8], strides = [1, 1]} : vector<16x32xf32> to vector<16x8xf32>
    %236 = arith.truncf %235 : vector<16x8xf32> to vector<16x8xbf16>
    %cst_56 = arith.constant dense<0.000000e+00> : vector<16x16xf32>
    %237 = tpu.matmul %234, %236, %cst_56 {dimension_numbers = #tpu.dot_dimension_numbers<[1], [1], [0], [0], [0, 0, 1, 0], [], []>} : vector<16x8xbf16>, vector<16x8xbf16>, vector<16x16xf32> -> vector<16x16xf32>
    %cst_57 = arith.constant 0.000000e+00 : f32
    %238 = vector.broadcast %cst_57 : f32 to vector<1x16xf32>
    %239 = arith.cmpf ogt, %5, %238 : vector<1x16xf32>
    %cst_58 = arith.constant -1.000000e+30 : f32
    %240 = vector.shape_cast %239 : vector<1x16xi1> to vector<1x16xi1>
    %241 = vector.broadcast %240 : vector<1x16xi1> to vector<16x16xi1>
    %242 = vector.broadcast %cst_58 : f32 to vector<16x16xf32>
    %243 = arith.select %241, %237, %242 : vector<16x16xi1>, vector<16x16xf32>
    %cst_59 = arith.constant dense<0xFF800000> : vector<16xf32>
    %244 = vector.multi_reduction <maximumf>, %243, %cst_59 [1] : vector<16x16xf32> to vector<16xf32>
    %245 = vector.shape_cast %244 : vector<16xf32> to vector<16x1xf32>
    %246 = vector.broadcast %245 : vector<16x1xf32> to vector<16x16xf32>
    %247 = arith.subf %243, %246 : vector<16x16xf32>
    %248 = math.exp %247 : vector<16x16xf32>
    %cst_60 = arith.constant dense<0.000000e+00> : vector<16xf32>
    %249 = vector.multi_reduction <add>, %248, %cst_60 [1] : vector<16x16xf32> to vector<16xf32>
    %250 = vector.shape_cast %249 : vector<16xf32> to vector<16x1xf32>
    %251 = tpu.reciprocal %250 {approx = true} : vector<16x1xf32> -> vector<16x1xf32>
    %252 = vector.broadcast %251 : vector<16x1xf32> to vector<16x16xf32>
    %253 = arith.mulf %248, %252 : vector<16x16xf32>
    %254 = vector.extract_strided_slice %203 {offsets = [0, 8], sizes = [16, 8], strides = [1, 1]} : vector<16x32xf32> to vector<16x8xf32>
    %255 = arith.truncf %253 : vector<16x16xf32> to vector<16x16xbf16>
    %256 = arith.truncf %254 : vector<16x8xf32> to vector<16x8xbf16>
    %cst_61 = arith.constant dense<0.000000e+00> : vector<16x8xf32>
    %257 = tpu.matmul %255, %256, %cst_61 {dimension_numbers = #tpu.dot_dimension_numbers<[1], [0], [0], [1], [0, 0, 1, 1], [], []>} : vector<16x16xbf16>, vector<16x8xbf16>, vector<16x8xf32> -> vector<16x8xf32>
    %258 = vector.extract_strided_slice %199 {offsets = [0, 16], sizes = [16, 8], strides = [1, 1]} : vector<16x32xf32> to vector<16x8xf32>
    %cst_62 = arith.constant 0.353553385 : f32
    %259 = vector.broadcast %cst_62 : f32 to vector<16x8xf32>
    %260 = arith.mulf %258, %259 : vector<16x8xf32>
    %261 = arith.truncf %260 : vector<16x8xf32> to vector<16x8xbf16>
    %262 = vector.extract_strided_slice %200 {offsets = [0, 16], sizes = [16, 8], strides = [1, 1]} : vector<16x32xf32> to vector<16x8xf32>
    %263 = arith.truncf %262 : vector<16x8xf32> to vector<16x8xbf16>
    %cst_63 = arith.constant dense<0.000000e+00> : vector<16x16xf32>
    %264 = tpu.matmul %261, %263, %cst_63 {dimension_numbers = #tpu.dot_dimension_numbers<[1], [1], [0], [0], [0, 0, 1, 0], [], []>} : vector<16x8xbf16>, vector<16x8xbf16>, vector<16x16xf32> -> vector<16x16xf32>
    %cst_64 = arith.constant 0.000000e+00 : f32
    %265 = vector.broadcast %cst_64 : f32 to vector<1x16xf32>
    %266 = arith.cmpf ogt, %5, %265 : vector<1x16xf32>
    %cst_65 = arith.constant -1.000000e+30 : f32
    %267 = vector.shape_cast %266 : vector<1x16xi1> to vector<1x16xi1>
    %268 = vector.broadcast %267 : vector<1x16xi1> to vector<16x16xi1>
    %269 = vector.broadcast %cst_65 : f32 to vector<16x16xf32>
    %270 = arith.select %268, %264, %269 : vector<16x16xi1>, vector<16x16xf32>
    %cst_66 = arith.constant dense<0xFF800000> : vector<16xf32>
    %271 = vector.multi_reduction <maximumf>, %270, %cst_66 [1] : vector<16x16xf32> to vector<16xf32>
    %272 = vector.shape_cast %271 : vector<16xf32> to vector<16x1xf32>
    %273 = vector.broadcast %272 : vector<16x1xf32> to vector<16x16xf32>
    %274 = arith.subf %270, %273 : vector<16x16xf32>
    %275 = math.exp %274 : vector<16x16xf32>
    %cst_67 = arith.constant dense<0.000000e+00> : vector<16xf32>
    %276 = vector.multi_reduction <add>, %275, %cst_67 [1] : vector<16x16xf32> to vector<16xf32>
    %277 = vector.shape_cast %276 : vector<16xf32> to vector<16x1xf32>
    %278 = tpu.reciprocal %277 {approx = true} : vector<16x1xf32> -> vector<16x1xf32>
    %279 = vector.broadcast %278 : vector<16x1xf32> to vector<16x16xf32>
    %280 = arith.mulf %275, %279 : vector<16x16xf32>
    %281 = vector.extract_strided_slice %203 {offsets = [0, 16], sizes = [16, 8], strides = [1, 1]} : vector<16x32xf32> to vector<16x8xf32>
    %282 = arith.truncf %280 : vector<16x16xf32> to vector<16x16xbf16>
    %283 = arith.truncf %281 : vector<16x8xf32> to vector<16x8xbf16>
    %cst_68 = arith.constant dense<0.000000e+00> : vector<16x8xf32>
    %284 = tpu.matmul %282, %283, %cst_68 {dimension_numbers = #tpu.dot_dimension_numbers<[1], [0], [0], [1], [0, 0, 1, 1], [], []>} : vector<16x16xbf16>, vector<16x8xbf16>, vector<16x8xf32> -> vector<16x8xf32>
    %285 = vector.extract_strided_slice %199 {offsets = [0, 24], sizes = [16, 8], strides = [1, 1]} : vector<16x32xf32> to vector<16x8xf32>
    %cst_69 = arith.constant 0.353553385 : f32
    %286 = vector.broadcast %cst_69 : f32 to vector<16x8xf32>
    %287 = arith.mulf %285, %286 : vector<16x8xf32>
    %288 = arith.truncf %287 : vector<16x8xf32> to vector<16x8xbf16>
    %289 = vector.extract_strided_slice %200 {offsets = [0, 24], sizes = [16, 8], strides = [1, 1]} : vector<16x32xf32> to vector<16x8xf32>
    %290 = arith.truncf %289 : vector<16x8xf32> to vector<16x8xbf16>
    %cst_70 = arith.constant dense<0.000000e+00> : vector<16x16xf32>
    %291 = tpu.matmul %288, %290, %cst_70 {dimension_numbers = #tpu.dot_dimension_numbers<[1], [1], [0], [0], [0, 0, 1, 0], [], []>} : vector<16x8xbf16>, vector<16x8xbf16>, vector<16x16xf32> -> vector<16x16xf32>
    %cst_71 = arith.constant 0.000000e+00 : f32
    %292 = vector.broadcast %cst_71 : f32 to vector<1x16xf32>
    %293 = arith.cmpf ogt, %5, %292 : vector<1x16xf32>
    %cst_72 = arith.constant -1.000000e+30 : f32
    %294 = vector.shape_cast %293 : vector<1x16xi1> to vector<1x16xi1>
    %295 = vector.broadcast %294 : vector<1x16xi1> to vector<16x16xi1>
    %296 = vector.broadcast %cst_72 : f32 to vector<16x16xf32>
    %297 = arith.select %295, %291, %296 : vector<16x16xi1>, vector<16x16xf32>
    %cst_73 = arith.constant dense<0xFF800000> : vector<16xf32>
    %298 = vector.multi_reduction <maximumf>, %297, %cst_73 [1] : vector<16x16xf32> to vector<16xf32>
    %299 = vector.shape_cast %298 : vector<16xf32> to vector<16x1xf32>
    %300 = vector.broadcast %299 : vector<16x1xf32> to vector<16x16xf32>
    %301 = arith.subf %297, %300 : vector<16x16xf32>
    %302 = math.exp %301 : vector<16x16xf32>
    %cst_74 = arith.constant dense<0.000000e+00> : vector<16xf32>
    %303 = vector.multi_reduction <add>, %302, %cst_74 [1] : vector<16x16xf32> to vector<16xf32>
    %304 = vector.shape_cast %303 : vector<16xf32> to vector<16x1xf32>
    %305 = tpu.reciprocal %304 {approx = true} : vector<16x1xf32> -> vector<16x1xf32>
    %306 = vector.broadcast %305 : vector<16x1xf32> to vector<16x16xf32>
    %307 = arith.mulf %302, %306 : vector<16x16xf32>
    %308 = vector.extract_strided_slice %203 {offsets = [0, 24], sizes = [16, 8], strides = [1, 1]} : vector<16x32xf32> to vector<16x8xf32>
    %309 = arith.truncf %307 : vector<16x16xf32> to vector<16x16xbf16>
    %310 = arith.truncf %308 : vector<16x8xf32> to vector<16x8xbf16>
    %cst_75 = arith.constant dense<0.000000e+00> : vector<16x8xf32>
    %311 = tpu.matmul %309, %310, %cst_75 {dimension_numbers = #tpu.dot_dimension_numbers<[1], [0], [0], [1], [0, 0, 1, 1], [], []>} : vector<16x16xbf16>, vector<16x8xbf16>, vector<16x8xf32> -> vector<16x8xf32>
    %312 = tpu.concatenate %230, %257, %284, %311 in 1 : vector<16x8xf32>, vector<16x8xf32>, vector<16x8xf32>, vector<16x8xf32> -> vector<16x32xf32>
    %c0_76 = arith.constant 0 : index
    %c0_77 = arith.constant 0 : index
    %c0_78 = arith.constant 0 : index
    %313 = vector.load %arg11[%c0_76, %c0_77, %c0_78] : memref<1x32x32xf32, #tpu.memory_space<vmem>>, vector<1x32x32xf32>
    %314 = vector.shape_cast %313 : vector<1x32x32xf32> to vector<32x32xf32>
    %315 = arith.truncf %312 : vector<16x32xf32> to vector<16x32xbf16>
    %316 = arith.truncf %314 : vector<32x32xf32> to vector<32x32xbf16>
    %cst_79 = arith.constant dense<0.000000e+00> : vector<16x32xf32>
    %317 = tpu.matmul %315, %316, %cst_79 {dimension_numbers = #tpu.dot_dimension_numbers<[1], [0], [0], [1], [0, 0, 1, 1], [], []>} : vector<16x32xbf16>, vector<32x32xbf16>, vector<16x32xf32> -> vector<16x32xf32>
    %c0_80 = arith.constant 0 : index
    %c0_81 = arith.constant 0 : index
    %318 = vector.load %arg12[%c0_80, %c0_81] : memref<1x32xf32, #tpu.memory_space<vmem>>, vector<1x32xf32>
    %319 = vector.shape_cast %318 : vector<1x32xf32> to vector<32xf32>
    %320 = vector.shape_cast %319 : vector<32xf32> to vector<1x32xf32>
    %321 = vector.broadcast %320 : vector<1x32xf32> to vector<16x32xf32>
    %322 = arith.addf %317, %321 : vector<16x32xf32>
    %323 = vector.broadcast %3 : vector<16x1xf32> to vector<16x32xf32>
    %324 = arith.mulf %1, %323 : vector<16x32xf32>
    %325 = vector.broadcast %3 : vector<16x1xf32> to vector<16x32xf32>
    %326 = arith.mulf %322, %325 : vector<16x32xf32>
    %327 = arith.addf %324, %326 : vector<16x32xf32>
    %c0_82 = arith.constant 0 : index
    %c0_83 = arith.constant 0 : index
    %328 = vector.load %arg13[%c0_82, %c0_83] : memref<1x32xf32, #tpu.memory_space<vmem>>, vector<1x32xf32>
    %329 = vector.shape_cast %328 : vector<1x32xf32> to vector<32xf32>
    %c0_84 = arith.constant 0 : index
    %c0_85 = arith.constant 0 : index
    %330 = vector.load %arg14[%c0_84, %c0_85] : memref<1x32xf32, #tpu.memory_space<vmem>>, vector<1x32xf32>
    %331 = vector.shape_cast %330 : vector<1x32xf32> to vector<32xf32>
    %cst_86 = arith.constant dense<0.000000e+00> : vector<16xf32>
    %332 = vector.multi_reduction <add>, %327, %cst_86 [1] : vector<16x32xf32> to vector<16xf32>
    %333 = vector.shape_cast %332 : vector<16xf32> to vector<16x1xf32>
    %cst_87 = arith.constant 3.200000e+01 : f32
    %334 = vector.broadcast %cst_87 : f32 to vector<16x1xf32>
    %335 = arith.divf %333, %334 : vector<16x1xf32>
    %336 = vector.broadcast %335 : vector<16x1xf32> to vector<16x32xf32>
    %337 = arith.subf %327, %336 : vector<16x32xf32>
    %338 = arith.mulf %337, %337 : vector<16x32xf32>
    %cst_88 = arith.constant dense<0.000000e+00> : vector<16xf32>
    %339 = vector.multi_reduction <add>, %338, %cst_88 [1] : vector<16x32xf32> to vector<16xf32>
    %340 = vector.shape_cast %339 : vector<16xf32> to vector<16x1xf32>
    %cst_89 = arith.constant 3.200000e+01 : f32
    %341 = vector.broadcast %cst_89 : f32 to vector<16x1xf32>
    %342 = arith.divf %340, %341 : vector<16x1xf32>
    %cst_90 = arith.constant 9.99999974E-6 : f32
    %343 = vector.broadcast %cst_90 : f32 to vector<16x1xf32>
    %344 = arith.addf %342, %343 : vector<16x1xf32>
    %345 = math.rsqrt %344 : vector<16x1xf32>
    %346 = vector.broadcast %345 : vector<16x1xf32> to vector<16x32xf32>
    %347 = arith.mulf %337, %346 : vector<16x32xf32>
    %348 = vector.shape_cast %329 : vector<32xf32> to vector<1x32xf32>
    %349 = vector.broadcast %348 : vector<1x32xf32> to vector<16x32xf32>
    %350 = arith.mulf %347, %349 : vector<16x32xf32>
    %351 = vector.shape_cast %331 : vector<32xf32> to vector<1x32xf32>
    %352 = vector.broadcast %351 : vector<1x32xf32> to vector<16x32xf32>
    %353 = arith.addf %350, %352 : vector<16x32xf32>
    %c0_91 = arith.constant 0 : index
    %c0_92 = arith.constant 0 : index
    %c0_93 = arith.constant 0 : index
    %354 = vector.load %arg15[%c0_91, %c0_92, %c0_93] : memref<1x32x32xf32, #tpu.memory_space<vmem>>, vector<1x32x32xf32>
    %355 = vector.shape_cast %354 : vector<1x32x32xf32> to vector<32x32xf32>
    %356 = arith.truncf %353 : vector<16x32xf32> to vector<16x32xbf16>
    %357 = arith.truncf %355 : vector<32x32xf32> to vector<32x32xbf16>
    %cst_94 = arith.constant dense<0.000000e+00> : vector<16x32xf32>
    %358 = tpu.matmul %356, %357, %cst_94 {dimension_numbers = #tpu.dot_dimension_numbers<[1], [0], [0], [1], [0, 0, 1, 1], [], []>} : vector<16x32xbf16>, vector<32x32xbf16>, vector<16x32xf32> -> vector<16x32xf32>
    %c0_95 = arith.constant 0 : index
    %c0_96 = arith.constant 0 : index
    %359 = vector.load %arg16[%c0_95, %c0_96] : memref<1x32xf32, #tpu.memory_space<vmem>>, vector<1x32xf32>
    %360 = vector.shape_cast %359 : vector<1x32xf32> to vector<32xf32>
    %361 = vector.shape_cast %360 : vector<32xf32> to vector<1x32xf32>
    %362 = vector.broadcast %361 : vector<1x32xf32> to vector<16x32xf32>
    %363 = arith.addf %358, %362 : vector<16x32xf32>
    %cst_97 = arith.constant 5.000000e-01 : f32
    %364 = vector.broadcast %cst_97 : f32 to vector<16x32xf32>
    %365 = arith.mulf %364, %363 : vector<16x32xf32>
    %cst_98 = arith.constant 0.707106769 : f32
    %366 = vector.broadcast %cst_98 : f32 to vector<16x32xf32>
    %367 = arith.mulf %363, %366 : vector<16x32xf32>
    %cst_99 = arith.constant 0.000000e+00 : f32
    %368 = vector.broadcast %cst_99 : f32 to vector<16x32xf32>
    %369 = arith.cmpf oge, %367, %368 : vector<16x32xf32>
    %cst_100 = arith.constant 1.000000e+00 : f32
    %cst_101 = arith.constant -1.000000e+00 : f32
    %370 = vector.broadcast %cst_100 : f32 to vector<16x32xf32>
    %371 = vector.broadcast %cst_101 : f32 to vector<16x32xf32>
    %372 = arith.select %369, %370, %371 : vector<16x32xi1>, vector<16x32xf32>
    %373 = math.absf %367 : vector<16x32xf32>
    %cst_102 = arith.constant 0.327591091 : f32
    %374 = vector.broadcast %cst_102 : f32 to vector<16x32xf32>
    %375 = arith.mulf %374, %373 : vector<16x32xf32>
    %cst_103 = arith.constant 1.000000e+00 : f32
    %376 = vector.broadcast %cst_103 : f32 to vector<16x32xf32>
    %377 = arith.addf %376, %375 : vector<16x32xf32>
    %cst_104 = arith.constant 1.000000e+00 : f32
    %378 = vector.broadcast %cst_104 : f32 to vector<16x32xf32>
    %379 = arith.divf %378, %377 : vector<16x32xf32>
    %cst_105 = arith.constant 1.06140542 : f32
    %380 = vector.broadcast %cst_105 : f32 to vector<16x32xf32>
    %381 = arith.mulf %380, %379 : vector<16x32xf32>
    %cst_106 = arith.constant -1.45315206 : f32
    %382 = vector.broadcast %cst_106 : f32 to vector<16x32xf32>
    %383 = arith.addf %381, %382 : vector<16x32xf32>
    %384 = arith.mulf %383, %379 : vector<16x32xf32>
    %cst_107 = arith.constant 1.42141378 : f32
    %385 = vector.broadcast %cst_107 : f32 to vector<16x32xf32>
    %386 = arith.addf %384, %385 : vector<16x32xf32>
    %387 = arith.mulf %386, %379 : vector<16x32xf32>
    %cst_108 = arith.constant -0.284496725 : f32
    %388 = vector.broadcast %cst_108 : f32 to vector<16x32xf32>
    %389 = arith.addf %387, %388 : vector<16x32xf32>
    %390 = arith.mulf %389, %379 : vector<16x32xf32>
    %cst_109 = arith.constant 0.254829586 : f32
    %391 = vector.broadcast %cst_109 : f32 to vector<16x32xf32>
    %392 = arith.addf %390, %391 : vector<16x32xf32>
    %393 = arith.mulf %392, %379 : vector<16x32xf32>
    %cst_110 = arith.constant 0.000000e+00 : f32
    %394 = vector.broadcast %cst_110 : f32 to vector<16x32xf32>
    %395 = arith.subf %394, %373 : vector<16x32xf32>
    %396 = arith.mulf %395, %373 : vector<16x32xf32>
    %397 = math.exp %396 : vector<16x32xf32>
    %398 = arith.mulf %393, %397 : vector<16x32xf32>
    %cst_111 = arith.constant 1.000000e+00 : f32
    %399 = vector.broadcast %cst_111 : f32 to vector<16x32xf32>
    %400 = arith.subf %399, %398 : vector<16x32xf32>
    %401 = arith.mulf %372, %400 : vector<16x32xf32>
    %cst_112 = arith.constant 1.000000e+00 : f32
    %402 = vector.broadcast %cst_112 : f32 to vector<16x32xf32>
    %403 = arith.addf %402, %401 : vector<16x32xf32>
    %404 = arith.mulf %365, %403 : vector<16x32xf32>
    %c0_113 = arith.constant 0 : index
    %c0_114 = arith.constant 0 : index
    %c0_115 = arith.constant 0 : index
    %405 = vector.load %arg17[%c0_113, %c0_114, %c0_115] : memref<1x32x32xf32, #tpu.memory_space<vmem>>, vector<1x32x32xf32>
    %406 = vector.shape_cast %405 : vector<1x32x32xf32> to vector<32x32xf32>
    %407 = arith.truncf %404 : vector<16x32xf32> to vector<16x32xbf16>
    %408 = arith.truncf %406 : vector<32x32xf32> to vector<32x32xbf16>
    %cst_116 = arith.constant dense<0.000000e+00> : vector<16x32xf32>
    %409 = tpu.matmul %407, %408, %cst_116 {dimension_numbers = #tpu.dot_dimension_numbers<[1], [0], [0], [1], [0, 0, 1, 1], [], []>} : vector<16x32xbf16>, vector<32x32xbf16>, vector<16x32xf32> -> vector<16x32xf32>
    %c0_117 = arith.constant 0 : index
    %c0_118 = arith.constant 0 : index
    %410 = vector.load %arg18[%c0_117, %c0_118] : memref<1x32xf32, #tpu.memory_space<vmem>>, vector<1x32xf32>
    %411 = vector.shape_cast %410 : vector<1x32xf32> to vector<32xf32>
    %412 = vector.shape_cast %411 : vector<32xf32> to vector<1x32xf32>
    %413 = vector.broadcast %412 : vector<1x32xf32> to vector<16x32xf32>
    %414 = arith.addf %409, %413 : vector<16x32xf32>
    %415 = vector.broadcast %3 : vector<16x1xf32> to vector<16x32xf32>
    %416 = arith.mulf %414, %415 : vector<16x32xf32>
    %417 = arith.addf %327, %416 : vector<16x32xf32>
    %c0_119 = arith.constant 0 : index
    %c0_120 = arith.constant 0 : index
    %c0_121 = arith.constant 0 : index
    %418 = vector.load %arg19[%c0_119, %c0_120, %c0_121] : memref<1x16x32xf32, #tpu.memory_space<vmem>>, vector<1x16x32xf32>
    %419 = vector.shape_cast %418 : vector<1x16x32xf32> to vector<16x32xf32>
    %420 = vector.shape_cast %417 : vector<16x32xf32> to vector<1x16x32xf32>
    tpu.vector_store %arg19[%c0_119, %c0_120, %c0_121], %420 {strides = array<i32>} : memref<1x16x32xf32, #tpu.memory_space<vmem>>, vector<1x16x32xf32>,
    return
  }
  func.func @transform_0(%arg0: i32) -> (i32, i32, i32) {
    %c0_i32 = arith.constant 0 : i32
    %c0_i32_0 = arith.constant 0 : i32
    %c0_i32_1 = arith.constant 0 : i32
    return %arg0, %c0_i32, %c0_i32_0 : i32, i32, i32
  }
  func.func @transform_1(%arg0: i32) -> (i32, i32, i32) {
    %c0_i32 = arith.constant 0 : i32
    %c0_i32_0 = arith.constant 0 : i32
    %c0_i32_1 = arith.constant 0 : i32
    return %arg0, %c0_i32, %c0_i32_0 : i32, i32, i32
  }
  func.func @transform_2(%arg0: i32) -> (i32, i32, i32) {
    %c0_i32 = arith.constant 0 : i32
    %c0_i32_0 = arith.constant 0 : i32
    %c0_i32_1 = arith.constant 0 : i32
    return %arg0, %c0_i32, %c0_i32_0 : i32, i32, i32
  }
  func.func @transform_3(%arg0: i32) -> (i32, i32) {
    %c0_i32 = arith.constant 0 : i32
    %c0_i32_0 = arith.constant 0 : i32
    %c0_i32_1 = arith.constant 0 : i32
    return %c0_i32, %c0_i32_0 : i32, i32
  }
  func.func @transform_4(%arg0: i32) -> (i32, i32) {
    %c0_i32 = arith.constant 0 : i32
    %c0_i32_0 = arith.constant 0 : i32
    %c0_i32_1 = arith.constant 0 : i32
    return %c0_i32, %c0_i32_0 : i32, i32
  }
  func.func @transform_5(%arg0: i32) -> (i32, i32, i32, i32) {
    %c0_i32 = arith.constant 0 : i32
    %c0_i32_0 = arith.constant 0 : i32
    %c0_i32_1 = arith.constant 0 : i32
    %c0_i32_2 = arith.constant 0 : i32
    %c0_i32_3 = arith.constant 0 : i32
    return %c0_i32, %c0_i32_0, %c0_i32_1, %c0_i32_2 : i32, i32, i32, i32
  }
  func.func @transform_6(%arg0: i32) -> (i32, i32, i32) {
    %c0_i32 = arith.constant 0 : i32
    %c0_i32_0 = arith.constant 0 : i32
    %c0_i32_1 = arith.constant 0 : i32
    %c0_i32_2 = arith.constant 0 : i32
    return %c0_i32, %c0_i32_0, %c0_i32_1 : i32, i32, i32
  }
  func.func @transform_7(%arg0: i32) -> (i32, i32, i32) {
    %c0_i32 = arith.constant 0 : i32
    %c0_i32_0 = arith.constant 0 : i32
    %c0_i32_1 = arith.constant 0 : i32
    %c0_i32_2 = arith.constant 0 : i32
    return %c0_i32, %c0_i32_0, %c0_i32_1 : i32, i32, i32
  }
  func.func @transform_8(%arg0: i32) -> (i32, i32, i32) {
    %c0_i32 = arith.constant 0 : i32
    %c0_i32_0 = arith.constant 0 : i32
    %c0_i32_1 = arith.constant 0 : i32
    %c0_i32_2 = arith.constant 0 : i32
    return %c0_i32, %c0_i32_0, %c0_i32_1 : i32, i32, i32
  }
  func.func @transform_9(%arg0: i32) -> (i32, i32) {
    %c0_i32 = arith.constant 0 : i32
    %c0_i32_0 = arith.constant 0 : i32
    %c0_i32_1 = arith.constant 0 : i32
    return %c0_i32, %c0_i32_0 : i32, i32
  }
  func.func @transform_10(%arg0: i32) -> (i32, i32, i32) {
    %c0_i32 = arith.constant 0 : i32
    %c0_i32_0 = arith.constant 0 : i32
    %c0_i32_1 = arith.constant 0 : i32
    %c0_i32_2 = arith.constant 0 : i32
    return %c0_i32, %c0_i32_0, %c0_i32_1 : i32, i32, i32
  }
  func.func @transform_11(%arg0: i32) -> (i32, i32) {
    %c0_i32 = arith.constant 0 : i32
    %c0_i32_0 = arith.constant 0 : i32
    %c0_i32_1 = arith.constant 0 : i32
    return %c0_i32, %c0_i32_0 : i32, i32
  }
  func.func @transform_12(%arg0: i32) -> (i32, i32) {
    %c0_i32 = arith.constant 0 : i32
    %c0_i32_0 = arith.constant 0 : i32
    %c0_i32_1 = arith.constant 0 : i32
    return %c0_i32, %c0_i32_0 : i32, i32
  }
  func.func @transform_13(%arg0: i32) -> (i32, i32) {
    %c0_i32 = arith.constant 0 : i32
    %c0_i32_0 = arith.constant 0 : i32
    %c0_i32_1 = arith.constant 0 : i32
    return %c0_i32, %c0_i32_0 : i32, i32
  }
  func.func @transform_14(%arg0: i32) -> (i32, i32, i32) {
    %c0_i32 = arith.constant 0 : i32
    %c0_i32_0 = arith.constant 0 : i32
    %c0_i32_1 = arith.constant 0 : i32
    %c0_i32_2 = arith.constant 0 : i32
    return %c0_i32, %c0_i32_0, %c0_i32_1 : i32, i32, i32
  }
  func.func @transform_15(%arg0: i32) -> (i32, i32) {
    %c0_i32 = arith.constant 0 : i32
    %c0_i32_0 = arith.constant 0 : i32
    %c0_i32_1 = arith.constant 0 : i32
    return %c0_i32, %c0_i32_0 : i32, i32
  }
  func.func @transform_16(%arg0: i32) -> (i32, i32, i32) {
    %c0_i32 = arith.constant 0 : i32
    %c0_i32_0 = arith.constant 0 : i32
    %c0_i32_1 = arith.constant 0 : i32
    %c0_i32_2 = arith.constant 0 : i32
    return %c0_i32, %c0_i32_0, %c0_i32_1 : i32, i32, i32
  }
  func.func @transform_17(%arg0: i32) -> (i32, i32) {
    %c0_i32 = arith.constant 0 : i32
    %c0_i32_0 = arith.constant 0 : i32
    %c0_i32_1 = arith.constant 0 : i32
    return %c0_i32, %c0_i32_0 : i32, i32
  }
  func.func @transform_18(%arg0: i32) -> (i32, i32, i32) {
    %c0_i32 = arith.constant 0 : i32
    %c0_i32_0 = arith.constant 0 : i32
    %c0_i32_1 = arith.constant 0 : i32
    return %arg0, %c0_i32, %c0_i32_0 : i32, i32, i32
  }
}

</mosaic_0001>

<bundles_post_ra>
// kernel: conv_encoder_backbone.2
= control target key start
LH: loop header
LB: loop body
LE: loop exit
PB: predicated region body
PF: predicated region fallthrough
CT: control target
= control target key end

     0   :  { %v843_v0 = vmov 0   ;;  %v65_v26 = vlaneseq  ;;  %vm126_vm1 = vcmask 130048   ;;  %vm356_vm3 = vcmask 261120   ;;  %s1188_s2 = inlined_call_operand.vmem [shape: f32[3,32,1], index: 2, kind: input, shape index: {}]   ;;  %s1189_s3 = inlined_call_operand.vmem [shape: f32[3,16,32], index: 3, kind: input, shape index: {}]   ;;  %s1190_s1 = inlined_call_operand.vmem [shape: f32[32,1], index: 1, kind: input, shape index: {}]   ;;  %s1191_s0 = inlined_call_operand.vmem [shape: f32[32,16], index: 0, kind: input, shape index: {}]   ;;  %s1192_s6 = inlined_call_operand.vmem [shape: f32[3,32,32], index: 6, kind: input, shape index: {}]   ;;  %s1193_s4 = inlined_call_operand.vmem [shape: f32[1,32], index: 4, kind: input, shape index: {}]   ;;  %s1194_s5 = inlined_call_operand.vmem [shape: f32[1,32], index: 5, kind: input, shape index: {}]   ;;  %s1195_s7 = inlined_call_operand.vmem [shape: f32[1,32], index: 7, kind: input, shape index: {}]   ;;  %s1196_s8 = inlined_call_operand.vmem [shape: f32[1,32], index: 8, kind: input, shape index: {}]   ;;  %s1197_s9 = inlined_call_operand.vmem [shape: f32[32,32], index: 9, kind: output, shape index: {}]  }
   0x1   :  { %826 = vset.pattern.permute.xlu1 %v843_v0  ;;  %825 = vset.pattern.permute.xlu0 %v843_v0  ;;  %v47_v1 = vld [vmem:[%s1188_s2 + $0x30] sm:$0xff]  ;;  %v45_v2 = vld [vmem:[%s1188_s2 + $0x20] sm:$0xff]  ;;  %v48_v3 = vld [vmem:[%s1188_s2 + $0x38] sm:$0xff] }
   0x2   :  { %111 = vperm.xlu1 %826, %v47_v1   ;;  %101 = vperm.xlu0 %825, %v45_v2   ;;  %v46_v4 = vld [vmem:[%s1188_s2 + $0x28] sm:$0xff]  ;;  %v41_v6 = vld [vmem:[%s1188_s2] sm:$0xff]  ;;  %v55_v7 = vld [vmem:[%s1189_s3 + $0x10] sm:$0xff]  ;;  %v966_v29 = vshrl.u32 %v65_v26, 7 }
   0x3   :  { %v42_v5 = vld [vmem:[%s1188_s2 + $0x8] sm:$0xff]  ;;  %v56_v8 = vld [vmem:[%s1189_s3 + $0x18] sm:$0xff]  ;;  %v53_v10 = vld [vmem:[%s1189_s3] sm:$0xff] }
   0x4   :  { %v125_v9 = vpack.c.bf16 %v56_v8, %v55_v7  ;;  %v54_v11 = vld [vmem:[%s1189_s3 + $0x8] sm:$0xff]  ;;  %v44_v12 = vld [vmem:[%s1188_s2 + $0x18] sm:$0xff]  ;;  %v43_v13 = vld [vmem:[%s1188_s2 + $0x10] sm:$0xff]  ;;  %vm67_vm0 = vcmp.lt.s32.totalorder %v966_v29, 1  ;;  %vm241_vm2 = vcmp.lt.s32.totalorder %v966_v29, 7 }
   0x5   :  { %v98_v14 = vpack.c.bf16 %v54_v11, %v53_v10  ;;  %v57_v15 = vld [vmem:[%s1189_s3 + $0x20] sm:$0xff]  ;;  %v58_v16 = vld [vmem:[%s1189_s3 + $0x28] sm:$0xff]  ;;  %v52_v20 = vld [vmem:[%s1188_s2 + $0x58] sm:$0xff] }
   0x6   :  { %116 = vperm.xlu1 %826, %v48_v3   ;;  %106 = vperm.xlu0 %825, %v46_v4   ;;  %v272_v17 = vpack.c.bf16 %v58_v16, %v57_v15  ;;  %v50_v18 = vld [vmem:[%s1188_s2 + $0x48] sm:$0xff]  ;;  %v49_v19 = vld [vmem:[%s1188_s2 + $0x40] sm:$0xff]  ;;  %v51_v21 = vld [vmem:[%s1188_s2 + $0x50] sm:$0xff] }
   0x7   :  { %782 = vmatprep.subr.bf16.mxu0 %v125_v9  ;;  %788 = vmatprep.subr.bf16.mxu1 %v98_v14  ;;  %v38_v22 = vld [vmem:[%s1190_s1 + $0x8] sm:$0xff]  ;;  %v37_v23 = vld [vmem:[%s1190_s1] sm:$0xff]  ;;  %v40_v24 = vld [vmem:[%s1190_s1 + $0x18] sm:$0xff] }
   0x8   :  { %783 = vmatpush3.bf16.msra.mxu0 %v125_v9  ;;  %789 = vmatpush3.bf16.msra.mxu1 %v98_v14  ;;  %v39_v25 = vld [vmem:[%s1190_s1 + $0x10] sm:$0xff]  ;;  %v36_v27 = vld [vmem:[%s1191_s0 + $0x18] sm:$0xff]  ;;  %v34_v28 = vld [vmem:[%s1191_s0 + $0x8] sm:$0xff] }
   0x9   :  { %794 = vmatprep.subr.bf16.mxu0 %v272_v17  ;;  %v33_v32 = vld [vmem:[%s1191_s0] sm:$0xff]  ;;  %v35_v33 = vld [vmem:[%s1191_s0 + $0x10] sm:$0xff]  ;;  %v64_v35 = vrot.slane %v36_v27, 7  ;;  %v62_v36 = vrot.slane %v34_v28, 7  ;;  %v238_v54 = vrot.slane %v34_v28, 1  ;;  %v240_v62 = vrot.slane %v36_v27, 1 }
   0xa   :  { %79 = vperm.xlu1 %826, %v42_v5   ;;  %74 = vperm.xlu0 %825, %v41_v6   ;;  %v61_v34 = vrot.slane %v33_v32, 7  ;;  %v63_v43 = vrot.slane %v35_v33, 7  ;;  %v239_v50 = vrot.slane %v35_v33, 1  ;;  %v237_v53 = vrot.slane %v33_v32, 1 }
   0xc   :  { %v70_v44 = vsel %vm67_vm0, %v61_v34, %v62_v36  ;;  %v71_v45 = vsel %vm67_vm0, %v64_v35, %v61_v34  ;;  %v68_v55 = vsel %vm67_vm0, %v63_v43, %v64_v35  ;;  %v69_v56 = vsel %vm67_vm0, %v62_v36, %v63_v43 }
   0xd   :  { %v243_v63 = vsel %vm241_vm2, %v238_v54, %v239_v50  ;;  %v244_v0 = vsel %vm241_vm2, %v237_v53, %v238_v54  ;;  %v245_v6 = vsel %vm241_vm2, %v240_v62, %v237_v53  ;;  %v242_v7 = vsel %vm241_vm2, %v239_v50, %v240_v62 }
   0xe   :  { %89 = vperm.xlu1 %826, %v44_v12   ;;  %84 = vperm.xlu0 %825, %v43_v13  }
  0x12   :  { %253 = vperm.xlu1 %826, %v50_v18   ;;  %248 = vperm.xlu0 %825, %v49_v19  }
  0x16   :  { %263 = vperm.xlu1 %826, %v52_v20   ;;  %258 = vperm.xlu0 %825, %v51_v21  }
  0x1a   :  { %339 = vperm.xlu1 %826, %v38_v22   ;;  %334 = vperm.xlu0 %825, %v37_v23  }
  0x1e   :  { %349 = vperm.xlu1 %826, %v40_v24   ;;  %344 = vperm.xlu0 %825, %v39_v25  }
  0x7d   :  { %v968_v30 = vpop.permute.xlu1 %111  ;;  %v970_v31 = vpop.permute.xlu0 %101 }
  0x7e   :  { %v121_v39 = vmul.f32 %v968_v30, %v35_v33  ;;  %v119_v40 = vmul.f32 %v970_v31, %v33_v32 }
  0x81   :  { %v979_v37 = vpop.permute.xlu1 %116  ;;  %v981_v38 = vpop.permute.xlu0 %106 }
  0x82   :  { %v122_v41 = vmul.f32 %v979_v37, %v36_v27  ;;  %v120_v42 = vmul.f32 %v981_v38, %v34_v28 }
  0x84   :  { %v124_v46 = vpack.c.bf16 %v122_v41, %v121_v39  ;;  %v123_v47 = vpack.c.bf16 %v120_v42, %v119_v40 }
  0x85   :  { %v991_v48 = vpop.permute.xlu1 %79  ;;  %v993_v49 = vpop.permute.xlu0 %74 }
  0x86   :  { %v93_v51 = vmul.f32 %v991_v48, %v70_v44  ;;  %v92_v52 = vmul.f32 %v993_v49, %v71_v45  ;;  %784 = vmatprep.mubr.msk.bf16.mxu0 %vm126_vm1, %v123_v47 }
  0x87   :  { %785 = vmatmul.mubr.msk.bf16.vlgmr.msra.gmra.mxu0 %vm126_vm1, %v124_v46 }
  0x88   :  { %v96_v57 = vpack.c.bf16 %v93_v51, %v92_v52  ;;  %795 = vmatpush3.bf16.msra.mxu0 %v272_v17 }
  0x89   :  { %v1004_v58 = vpop.permute.xlu1 %89  ;;  %v1006_v59 = vpop.permute.xlu0 %84 }
  0x8a   :  { %v95_v60 = vmul.f32 %v1004_v58, %v68_v55  ;;  %v94_v61 = vmul.f32 %v1006_v59, %v69_v56  ;;  %790 = vmatprep.mubr.msk.bf16.mxu1 %vm126_vm1, %v96_v57 }
  0x8c   :  { %v97_v1 = vpack.c.bf16 %v95_v60, %v94_v61 }
  0x8d   :  { %v1015_v2 = vpop.permute.xlu1 %253  ;;  %v1017_v3 = vpop.permute.xlu0 %248 }
  0x8e   :  { %v267_v4 = vmul.f32 %v1015_v2, %v243_v63  ;;  %v266_v5 = vmul.f32 %v1017_v3, %v244_v0  ;;  %791 = vmatmul.mubr.msk.bf16.vlgmr.msra.gmra.mxu1 %vm126_vm1, %v97_v1 }
  0x90   :  { %v270_v8 = vpack.c.bf16 %v267_v4, %v266_v5 }
  0x91   :  { %v1026_v9 = vpop.permute.xlu1 %263  ;;  %v1028_v10 = vpop.permute.xlu0 %258 }
  0x92   :  { %v269_v11 = vmul.f32 %v1026_v9, %v245_v6  ;;  %v268_v12 = vmul.f32 %v1028_v10, %v242_v7  ;;  %796 = vmatprep.mubr.msk.bf16.mxu0 %vm126_vm1, %v270_v8 }
  0x94   :  { %v271_v13 = vpack.c.bf16 %v269_v11, %v268_v12 }
  0x95   :  { %v1034_v21 = vpop.permute.xlu0 %334  ;;  %v1036_v32 = vpop.permute.xlu1 %339 }
  0x96   :  { %797 = vmatmul.mubr.msk.bf16.vlgmr.msra.gmra.mxu0 %vm126_vm1, %v271_v13 }
  0x99   :  { %v1039_v39 = vpop.permute.xlu0 %344  ;;  %v1044_v46 = vpop.permute.xlu1 %349 }
 0x147   :  { %v786_v14 = vpop.f32.mrf.mxu0 }
 0x149   :  { %v167_v15 = vpop.f32.mrf.mxu0 }
 0x14b   :  { %v787_v17 = vpop.f32.mrf.mxu0 }
 0x14d   :  { %v170_v19 = vpop.f32.mrf.mxu0 }
 0x14e   :  { %v792_v16 = vpop.f32.mrf.mxu1 }
 0x14f   :  { %v231_v23 = vadd.f32 %v792_v16, %v786_v14  ;;  %v441_v16 = vld [vmem:[%s1192_s6 + $0x38] sm:$0xff] }
 0x150   :  { %v222_v18 = vpop.f32.mrf.mxu1 }
 0x151   :  { %v223_v24 = vadd.f32 %v222_v18, %v167_v15  ;;  %v440_v15 = vld [vmem:[%s1192_s6 + $0x30] sm:$0xff] }
 0x152   :  { %v793_v20 = vpop.f32.mrf.mxu1  ;;  %v471_v18 = vpack.c.bf16 %v441_v16, %v440_v15 }
 0x153   :  { %v234_v34 = vadd.f32 %v793_v20, %v787_v17  ;;  %v438_v17 = vld [vmem:[%s1192_s6 + $0x20] sm:$0xff] }
 0x154   :  { %v225_v25 = vpop.f32.mrf.mxu1  ;;  %800 = vmatprep.subr.bf16.mxu1 %v471_v18 }
 0x155   :  { %v226_v35 = vadd.f32 %v225_v25, %v170_v19  ;;  %v439_v19 = vld [vmem:[%s1192_s6 + $0x28] sm:$0xff]  ;;  %801 = vmatpush3.bf16.msra.mxu1 %v471_v18  ;;  %v444_v25 = vld [vmem:[%s1192_s6 + $0x50] sm:$0xff] }
 0x156   :  { %v798_v22 = vpop.f32.mrf.mxu0  ;;  %v470_v20 = vpack.c.bf16 %v439_v19, %v438_v17 }
 0x157   :  { %v330_v27 = vadd.f32 %v798_v22, %v231_v23  ;;  %v436_v22 = vld [vmem:[%s1192_s6 + $0x10] sm:$0xff]  ;;  %v437_v23 = vld [vmem:[%s1192_s6 + $0x18] sm:$0xff] }
 0x158   :  { %v313_v26 = vpop.f32.mrf.mxu0  ;;  %802 = vmatprep.subr.bf16.mxu1 %v470_v20 }
 0x159   :  { %v328_v28 = vadd.f32 %v313_v26, %v223_v24  ;;  %v354_v44 = vmul.f32 %v1039_v39, %v330_v27  ;;  %v463_v24 = vpack.c.bf16 %v437_v23, %v436_v22  ;;  %v445_v26 = vld [vmem:[%s1192_s6 + $0x58] sm:$0xff]  ;;  %803 = vmatpush3.bf16.msra.mxu1 %v470_v20 }
 0x15a   :  { %v799_v33 = vpop.f32.mrf.mxu0  ;;  %v1094_v27 = vpack.c.bf16 %v445_v26, %v444_v25 }
 0x15b   :  { %v352_v36 = vmul.f32 %v1034_v21, %v328_v28  ;;  %v331_v41 = vadd.f32 %v799_v33, %v234_v34  ;;  %v363_v50 = vsel %vm356_vm3, %v354_v44, 0.0  ;;  %808 = vmatprep.subr.bf16.mxu0 %v463_v24  ;;  %v434_v28 = vld [vmem:[%s1192_s6] sm:$0xff]  ;;  %v435_v33 = vld [vmem:[%s1192_s6 + $0x8] sm:$0xff] }
 0x15c   :  { %v316_v40 = vpop.f32.mrf.mxu0  ;;  %809 = vmatpush3.bf16.msra.mxu0 %v463_v24  ;;  %v462_v34 = vpack.c.bf16 %v435_v33, %v434_v28  ;;  %816 = vmatprep.subr.bf16.mxu1 %v1094_v27 }
 0x15d   :  { %v329_v42 = vadd.f32 %v316_v40, %v226_v35  ;;  %v357_v43 = vsel %vm356_vm3, %v352_v36, 0.0  ;;  %v355_v51 = vmul.f32 %v1044_v46, %v331_v41 }
 0x15e   :  { %358 = vadd.xlane.f32.xlu0 %v357_v43  ;;  %810 = vmatprep.subr.bf16.mxu0 %v462_v34 }
 0x15f   :  { %v353_v45 = vmul.f32 %v1036_v32, %v329_v42  ;;  %v366_v52 = vsel %vm356_vm3, %v355_v51, 0.0 }
 0x160   :  { %811 = vmatpush3.bf16.msra.mxu0 %v462_v34 }
 0x161   :  { %v360_v47 = vsel %vm356_vm3, %v353_v45, 0.0 }
 0x162   :  { %361 = vadd.xlane.f32.xlu1 %v360_v47  ;;  %364 = vadd.xlane.f32.xlu0 %v363_v50 }
 0x166   :  { %367 = vadd.xlane.f32.xlu0 %v366_v52 }
 0x1e7   :  { %v359_v53 = vpop.xlane.xlu0 %358 }
 0x1e8   :  { %v370_v54 = vmul.f32 0.03125, %v359_v53 }
 0x1ea   :  { %v1050_v55 = vsub.f32 %v352_v36, %v370_v54  ;;  %v751_v54 = vld [vmem:[%s1193_s4] ss:$0 sm:$0xff] }
 0x1eb   :  { %v362_v56 = vpop.xlane.xlu1 %361  ;;  %v365_v57 = vpop.xlane.xlu0 %364 }
 0x1ec   :  { %v371_v60 = vmul.f32 0.03125, %v362_v56  ;;  %v372_v61 = vmul.f32 0.03125, %v365_v57  ;;  %v378_v62 = vmul.f32 %v1050_v55, %v1050_v55  ;;  %v752_v57 = vld [vmem:[%s1194_s5] ss:$0 sm:$0xff] }
 0x1ee   :  { %v1054_v63 = vsub.f32 %v353_v45, %v371_v60  ;;  %v1056_v0 = vsub.f32 %v354_v44, %v372_v61  ;;  %v382_v1 = vsel %vm356_vm3, %v378_v62, 0.0 }
 0x1ef   :  { %383 = vadd.xlane.f32.xlu1 %v382_v1  ;;  %v368_v4 = vpop.xlane.xlu0 %367 }
 0x1f0   :  { %v373_v5 = vmul.f32 0.03125, %v368_v4  ;;  %v379_v6 = vmul.f32 %v1054_v63, %v1054_v63  ;;  %v380_v7 = vmul.f32 %v1056_v0, %v1056_v0 }
 0x1f2   :  { %v1063_v8 = vsub.f32 %v355_v51, %v373_v5  ;;  %v385_v11 = vsel %vm356_vm3, %v379_v6, 0.0  ;;  %v388_v12 = vsel %vm356_vm3, %v380_v7, 0.0 }
 0x1f3   :  { %386 = vadd.xlane.f32.xlu0 %v385_v11  ;;  %389 = vadd.xlane.f32.xlu1 %v388_v12 }
 0x1f4   :  { %v381_v13 = vmul.f32 %v1063_v8, %v1063_v8 }
 0x1f6   :  { %v391_v14 = vsel %vm356_vm3, %v381_v13, 0.0 }
 0x1f7   :  { %392 = vadd.xlane.f32.xlu0 %v391_v14 }
 0x278   :  { %v384_v35 = vpop.xlane.xlu1 %383 }
 0x279   :  { %v394_v36 = vmul.f32 0.03125, %v384_v35 }
 0x27b   :  { %v398_v40 = vadd.f32 1e-05, %v394_v36 }
 0x27c   :  { %v390_v41 = vpop.xlane.xlu1 %389  ;;  %v387_v42 = vpop.xlane.xlu0 %386 }
 0x27d   :  { %827 = vrsqrt.f32 %v398_v40  ;;  %v396_v43 = vmul.f32 0.03125, %v390_v41  ;;  %v395_v44 = vmul.f32 0.03125, %v387_v42 }
 0x27f   :  { %v400_v45 = vadd.f32 1e-05, %v396_v43  ;;  %v399_v47 = vadd.f32 1e-05, %v395_v44 }
 0x280   :  { %v393_v50 = vpop.xlane.xlu0 %392 }
 0x281   :  { %829 = vrsqrt.f32 %v400_v45  ;;  %v397_v51 = vmul.f32 0.03125, %v393_v50 }
 0x282   :  { %831 = vrsqrt.f32 %v399_v47 }
 0x283   :  { %v401_v52 = vadd.f32 1e-05, %v397_v51 }
 0x285   :  { %833 = vrsqrt.f32 %v401_v52 }
 0x28a   :  { %v828_v53 = vpop.eup %827 }
 0x28b   :  { %v406_v56 = vmul.f32 %v828_v53, %v1050_v55 }
 0x28d   :  { %v416_v60 = vmul.f32 %v751_v54, %v406_v56 }
 0x28e   :  { %v830_v61 = vpop.eup %829 }
 0x28f   :  { %v832_v62 = vpop.eup %831  ;;  %v408_v1 = vmul.f32 %v830_v61, %v1056_v0  ;;  %v426_v4 = vadd.f32 %v752_v57, %v416_v60 }
 0x290   :  { %v407_v5 = vmul.f32 %v832_v62, %v1054_v63 }
 0x291   :  { %v418_v6 = vmul.f32 %v751_v54, %v408_v1  ;;  %v430_v12 = vmax.f32 %v426_v4, 0.0 }
 0x292   :  { %v834_v7 = vpop.eup %833  ;;  %v417_v11 = vmul.f32 %v751_v54, %v407_v5 }
 0x293   :  { %v409_v13 = vmul.f32 %v834_v7, %v1063_v8  ;;  %v428_v14 = vadd.f32 %v752_v57, %v418_v6  ;;  %v464_v18 = vmul.f32 %v430_v12, %v970_v31  ;;  %v582_v20 = vrot.slane %v430_v12, 1  ;;  %v442_v8 = vld [vmem:[%s1192_s6 + $0x40] sm:$0xff]  ;;  %v443_v31 = vld [vmem:[%s1192_s6 + $0x48] sm:$0xff] }
 0x294   :  { %v427_v55 = vadd.f32 %v752_v57, %v417_v11  ;;  %v448_v0 = vrot.slane %v430_v12, 7  ;;  %v596_v43 = vpack.c.bf16 %v443_v31, %v442_v8 }
 0x295   :  { %v419_v15 = vmul.f32 %v751_v54, %v409_v13  ;;  %v432_v16 = vmax.f32 %v428_v14, 0.0 }
 0x296   :  { %v431_v17 = vmax.f32 %v427_v55, 0.0 }
 0x297   :  { %v429_v19 = vadd.f32 %v752_v57, %v419_v15  ;;  %v584_v22 = vrot.slane %v432_v16, 1  ;;  %v450_v25 = vrot.slane %v432_v16, 7  ;;  %v466_v28 = vmul.f32 %v432_v16, %v968_v30 }
 0x298   :  { %v465_v23 = vmul.f32 %v431_v17, %v981_v38  ;;  %v583_v63 = vrot.slane %v431_v17, 1  ;;  %v449_v24 = vrot.slane %v431_v17, 7 }
 0x299   :  { %v433_v26 = vmax.f32 %v429_v19, 0.0 }
 0x29a   :  { %v468_v33 = vpack.c.bf16 %v465_v23, %v464_v18  ;;  %v587_v34 = vsel %vm241_vm2, %v583_v63, %v584_v22  ;;  %v588_v38 = vsel %vm241_vm2, %v582_v20, %v583_v63  ;;  %v454_v35 = vsel %vm67_vm0, %v448_v0, %v449_v24 }
 0x29b   :  { %v467_v30 = vmul.f32 %v433_v26, %v979_v37  ;;  %v590_v36 = vmul.f32 %v588_v38, %v1017_v3  ;;  %v591_v40 = vmul.f32 %v587_v34, %v1015_v2  ;;  %v451_v41 = vrot.slane %v433_v26, 7 }
 0x29c   :  { %804 = vmatprep.mubr.msk.bf16.mxu1 %vm356_vm3, %v468_v33  ;;  %v457_v42 = vmul.f32 %v454_v35, %v991_v48  ;;  %v453_v44 = vsel %vm67_vm0, %v449_v24, %v450_v25  ;;  %v585_v45 = vrot.slane %v433_v26, 1 }
 0x29d   :  { %v469_v47 = vpack.c.bf16 %v467_v30, %v466_v28  ;;  %v594_v50 = vpack.c.bf16 %v591_v40, %v590_v36  ;;  %v455_v51 = vsel %vm67_vm0, %v451_v41, %v448_v0  ;;  %v452_v37 = vsel %vm67_vm0, %v450_v25, %v451_v41 }
 0x29e   :  { %v456_v2 = vmul.f32 %v455_v51, %v993_v49  ;;  %v458_v3 = vmul.f32 %v453_v44, %v1006_v59  ;;  %v459_v52 = vmul.f32 %v452_v37, %v1004_v58  ;;  %v586_v48 = vsel %vm241_vm2, %v584_v22, %v585_v45 }
 0x29f   :  { %805 = vmatmul.mubr.msk.bf16.vlgmr.msra.gmra.mxu1 %vm356_vm3, %v469_v47  ;;  %v589_v53 = vsel %vm241_vm2, %v585_v45, %v582_v20  ;;  %v592_v49 = vmul.f32 %v586_v48, %v1028_v10 }
 0x2a0   :  { %817 = vmatpush3.bf16.msra.mxu1 %v1094_v27  ;;  %820 = vmatprep.mubr.msk.bf16.mxu1 %vm356_vm3, %v594_v50  ;;  %v460_v54 = vpack.c.bf16 %v457_v42, %v456_v2  ;;  %v461_v56 = vpack.c.bf16 %v459_v52, %v458_v3  ;;  %v593_v59 = vmul.f32 %v589_v53, %v1026_v9 }
 0x2a1   :  { %818 = vmatprep.subr.bf16.mxu1 %v596_v43 }
 0x2a2   :  { %812 = vmatprep.mubr.msk.bf16.mxu0 %vm356_vm3, %v460_v54  ;;  %v595_v58 = vpack.c.bf16 %v593_v59, %v592_v49  ;;  %v759_v49 = vld [vmem:[%s1195_s7] ss:$0 sm:$0xff] }
 0x2a3   :  { %813 = vmatmul.mubr.msk.bf16.vlgmr.msra.gmra.mxu0 %vm356_vm3, %v461_v56 }
 0x2a4   :  { %819 = vmatpush3.bf16.msra.mxu1 %v596_v43 }
 0x2a7   :  { %821 = vmatmul.mubr.msk.bf16.vlgmr.msra.gmra.mxu1 %vm356_vm3, %v595_v58  ;;  %v760_v58 = vld [vmem:[%s1196_s8] ss:$0 sm:$0xff] }
 0x35f   :  { %v806_v29 = vpop.f32.mrf.mxu1 }
 0x361   :  { %v512_v57 = vpop.f32.mrf.mxu1 }
 0x363   :  { %v807_v27 = vpop.f32.mrf.mxu1  ;;  %v814_v60 = vpop.f32.mrf.mxu0 }
 0x364   :  { %v576_v5 = vadd.f32 %v814_v60, %v806_v29 }
 0x365   :  { %v515_v61 = vpop.f32.mrf.mxu1  ;;  %v567_v62 = vpop.f32.mrf.mxu0 }
 0x366   :  { %v568_v10 = vadd.f32 %v567_v62, %v512_v57 }
 0x367   :  { %v815_v1 = vpop.f32.mrf.mxu0  ;;  %v822_v4 = vpop.f32.mrf.mxu1 }
 0x368   :  { %v655_v7 = vadd.f32 %v822_v4, %v576_v5  ;;  %v579_v13 = vadd.f32 %v815_v1, %v807_v27 }
 0x369   :  { %v570_v6 = vpop.f32.mrf.mxu0  ;;  %v638_v9 = vpop.f32.mrf.mxu1 }
 0x36a   :  { %v653_v11 = vadd.f32 %v638_v9, %v568_v10  ;;  %v571_v14 = vadd.f32 %v570_v6, %v515_v61  ;;  %v659_v19 = vmul.f32 %v655_v7, %v1039_v39 }
 0x36b   :  { %v823_v12 = vpop.f32.mrf.mxu1 }
 0x36c   :  { %v657_v55 = vmul.f32 %v653_v11, %v1034_v21  ;;  %v656_v16 = vadd.f32 %v823_v12, %v579_v13  ;;  %v667_v0 = vsel %vm356_vm3, %v659_v19, 0.0 }
 0x36d   :  { %v641_v15 = vpop.f32.mrf.mxu1 }
 0x36e   :  { %v654_v17 = vadd.f32 %v641_v15, %v571_v14  ;;  %v661_v18 = vsel %vm356_vm3, %v657_v55, 0.0  ;;  %v660_v23 = vmul.f32 %v656_v16, %v1044_v46 }
 0x36f   :  { %662 = vadd.xlane.f32.xlu1 %v661_v18 }
 0x370   :  { %v658_v20 = vmul.f32 %v654_v17, %v1036_v32  ;;  %v670_v21 = vsel %vm356_vm3, %v660_v23, 0.0 }
 0x372   :  { %v664_v22 = vsel %vm356_vm3, %v658_v20, 0.0 }
 0x373   :  { %665 = vadd.xlane.f32.xlu0 %v664_v22  ;;  %668 = vadd.xlane.f32.xlu1 %v667_v0 }
 0x377   :  { %671 = vadd.xlane.f32.xlu0 %v670_v21 }
 0x3f8   :  { %v663_v63 = vpop.xlane.xlu1 %662 }
 0x3f9   :  { %v673_v24 = vmul.f32 0.03125, %v663_v63 }
 0x3fb   :  { %v677_v25 = vsub.f32 %v657_v55, %v673_v24 }
 0x3fc   :  { %v666_v26 = vpop.xlane.xlu0 %665  ;;  %v669_v28 = vpop.xlane.xlu1 %668 }
 0x3fd   :  { %v674_v39 = vmul.f32 0.03125, %v666_v26  ;;  %v675_v8 = vmul.f32 0.03125, %v669_v28  ;;  %v681_v31 = vmul.f32 %v677_v25, %v677_v25 }
 0x3ff   :  { %v678_v32 = vsub.f32 %v658_v20, %v674_v39  ;;  %v679_v33 = vsub.f32 %v659_v19, %v675_v8  ;;  %v685_v34 = vsel %vm356_vm3, %v681_v31, 0.0 }
 0x400   :  { %v672_v38 = vpop.xlane.xlu0 %671  ;;  %686 = vadd.xlane.f32.xlu1 %v685_v34 }
 0x401   :  { %v676_v46 = vmul.f32 0.03125, %v672_v38  ;;  %v682_v35 = vmul.f32 %v678_v32, %v678_v32  ;;  %v683_v30 = vmul.f32 %v679_v33, %v679_v33 }
 0x403   :  { %v680_v36 = vsub.f32 %v660_v23, %v676_v46  ;;  %v688_v40 = vsel %vm356_vm3, %v682_v35, 0.0  ;;  %v691_v41 = vsel %vm356_vm3, %v683_v30, 0.0 }
 0x404   :  { %689 = vadd.xlane.f32.xlu0 %v688_v40  ;;  %692 = vadd.xlane.f32.xlu1 %v691_v41 }
 0x405   :  { %v684_v42 = vmul.f32 %v680_v36, %v680_v36 }
 0x407   :  { %v694_v43 = vsel %vm356_vm3, %v684_v42, 0.0 }
 0x408   :  { %695 = vadd.xlane.f32.xlu0 %v694_v43 }
 0x489   :  { %v687_v44 = vpop.xlane.xlu1 %686 }
 0x48a   :  { %v697_v45 = vmul.f32 0.03125, %v687_v44 }
 0x48c   :  { %v701_v47 = vadd.f32 1e-05, %v697_v45 }
 0x48d   :  { %v690_v50 = vpop.xlane.xlu0 %689  ;;  %v693_v51 = vpop.xlane.xlu1 %692 }
 0x48e   :  { %835 = vrsqrt.f32 %v701_v47  ;;  %v698_v37 = vmul.f32 0.03125, %v690_v50  ;;  %v699_v2 = vmul.f32 0.03125, %v693_v51 }
 0x490   :  { %v702_v3 = vadd.f32 1e-05, %v698_v37  ;;  %v703_v52 = vadd.f32 1e-05, %v699_v2 }
 0x491   :  { %v696_v48 = vpop.xlane.xlu0 %695 }
 0x492   :  { %837 = vrsqrt.f32 %v702_v3  ;;  %v700_v53 = vmul.f32 0.03125, %v696_v48 }
 0x493   :  { %839 = vrsqrt.f32 %v703_v52 }
 0x494   :  { %v704_v54 = vadd.f32 1e-05, %v700_v53 }
 0x496   :  { %841 = vrsqrt.f32 %v704_v54 }
 0x49b   :  { %v836_v56 = vpop.eup %835 }
 0x49c   :  { %v709_v59 = vmul.f32 %v836_v56, %v677_v25 }
 0x49e   :  { %v719_v29 = vmul.f32 %v759_v49, %v709_v59 }
 0x49f   :  { %v838_v57 = vpop.eup %837 }
 0x4a0   :  { %v840_v27 = vpop.eup %839  ;;  %v729_v60 = vadd.f32 %v760_v58, %v719_v29  ;;  %v710_v61 = vmul.f32 %v838_v57, %v678_v32 }
 0x4a1   :  { %v711_v62 = vmul.f32 %v840_v27, %v679_v33 }
 0x4a2   :  { %v733_v1 = vmax.f32 %v729_v60, 0.0  ;;  %v720_v4 = vmul.f32 %v759_v49, %v710_v61 }
 0x4a3   :  { %v842_v5 = vpop.eup %841  ;;  %v721_v10 = vmul.f32 %v759_v49, %v711_v62 }
 0x4a4   :  { %737 = vst.msk [vmem:[%s1197_s9] sm:$0xff] %vm356_vm3, %v733_v1  ;;  %v730_v6 = vadd.f32 %v760_v58, %v720_v4  ;;  %v712_v9 = vmul.f32 %v842_v5, %v680_v36 }
 0x4a5   :  { %v731_v7 = vadd.f32 %v760_v58, %v721_v10 }
 0x4a6   :  { %v734_v11 = vmax.f32 %v730_v6, 0.0  ;;  %v722_v12 = vmul.f32 %v759_v49, %v712_v9 }
 0x4a7   :  { %v735_v13 = vmax.f32 %v731_v7, 0.0 }
 0x4a8   :  { %738 = vst.msk [vmem:[%s1197_s9 + $0x8] sm:$0xff] %vm356_vm3, %v734_v11  ;;  %v732_v14 = vadd.f32 %v760_v58, %v722_v12 }
 0x4a9   :  { %739 = vst.msk [vmem:[%s1197_s9 + $0x10] sm:$0xff] %vm356_vm3, %v735_v13 }
 0x4aa   :  { %v736_v55 = vmax.f32 %v732_v14, 0.0 }
 0x4ac   :  { %740 = vst.msk [vmem:[%s1197_s9 + $0x18] sm:$0xff] %vm356_vm3, %v736_v55 }

// kernel: conv_encoder_backbone.3
= control target key start
LH: loop header
LB: loop body
LE: loop exit
PB: predicated region body
PF: predicated region fallthrough
CT: control target
= control target key end

     0   :  { %s2839_s0 = inlined_call_operand.vmem [shape: f32[2,16,32], index: 0, kind: input, shape index: {}]   ;;  %s2840_s1 = inlined_call_operand.vmem [shape: f32[2,16,1], index: 1, kind: input, shape index: {}]   ;;  %s2841_s2 = inlined_call_operand.vmem [shape: f32[2,1,16], index: 2, kind: input, shape index: {}]   ;;  %s2842_s3 = inlined_call_operand.vmem [shape: f32[1,32], index: 3, kind: input, shape index: {}]   ;;  %s2843_s4 = inlined_call_operand.vmem [shape: f32[1,32], index: 4, kind: input, shape index: {}]   ;;  %s2844_s5 = inlined_call_operand.vmem [shape: f32[1,3,3,32], index: 5, kind: input, shape index: {}]   ;;  %s2845_s6 = inlined_call_operand.vmem [shape: f32[1,3,32], index: 6, kind: input, shape index: {}]   ;;  %s2846_s7 = inlined_call_operand.vmem [shape: f32[1,3,32], index: 7, kind: input, shape index: {}]   ;;  %s2847_s8 = inlined_call_operand.vmem [shape: f32[1,96,96], index: 8, kind: input, shape index: {}]   ;;  %s2848_s9 = inlined_call_operand.vmem [shape: f32[1,96], index: 9, kind: input, shape index: {}]   ;;  %s2849_s10 = inlined_call_operand.vmem [shape: f32[1,32,32], index: 10, kind: input, shape index: {}]   ;;  %s2850_s11 = inlined_call_operand.vmem [shape: f32[1,32], index: 11, kind: input, shape index: {}]   ;;  %s2851_s12 = inlined_call_operand.vmem [shape: f32[1,32], index: 12, kind: input, shape index: {}]   ;;  %s2852_s13 = inlined_call_operand.vmem [shape: f32[1,32], index: 13, kind: input, shape index: {}]   ;;  %s2853_s14 = inlined_call_operand.vmem [shape: f32[1,32,32], index: 14, kind: input, shape index: {}]   ;;  %s2854_s15 = inlined_call_operand.vmem [shape: f32[1,32], index: 15, kind: input, shape index: {}]   ;;  %s2855_s16 = inlined_call_operand.vmem [shape: f32[1,32,32], index: 16, kind: input, shape index: {}]   ;;  %s2856_s17 = inlined_call_operand.vmem [shape: f32[1,32], index: 17, kind: input, shape index: {}]   ;;  %s2857_s18 = inlined_call_operand.hbm [shape: f32[2,16,32], index: 18, kind: output, shape index: {}]  }
   0x1   :  { %2864 = sst [smem:[#allocation10_spill]] %s2839_s0 }
   0x2   :  { %2865 = sst [smem:[#allocation11_spill]] %s2840_s1 }
   0x3   :  { %2866 = sst [smem:[#allocation12_spill]] %s2841_s2 }
   0x4   :  { %23 = vsyncpa [#allocation3], 0 }
   0x5   :  { %25 = vsyncpa [#allocation3 + $0x1], 0  ;;  %s2388_s27 = smov 0   ;;  %s2390_s28 = smov 0  }
   0x6   :  { %s2392_s29 = smov 0   ;;  %s2394_s30 = smov 0  }
   0x7 LB: > { %2867 = sst [smem:[#allocation5_spill]] %s2258_s27  ;;  %s2409_s0 = sadd.s32 4294967295, %s2270_s30   ;;  %s2270_s30 = sphi %s2394_s30, %s2882_s30   ;;  %s2266_s29 = sphi %s2392_s29, %s2884_s29   ;;  %s2262_s28 = sphi %s2390_s28, %s2886_s28   ;;  %s2258_s27 = sphi %s2388_s27, %s2885_s27  }
   0x8   : > { %2868 = sst [smem:[#allocation6_spill]] %s2266_s29  ;;  %s1903_s19 = sadd.s32 4294967294, %s2270_s30  }
   0x9   : > { %s2413_s1 = sadd.s32 1, %s2270_s30   ;;  %s431_s20 = sadd.s32 1, %s2266_s29 }
   0xa   : > { %2869 = sst [smem:[#allocation7_spill]] %s2413_s1  ;;  %s428_s21 = ssub.s32 %s2270_s30, %s2413_s1 }
   0xb   : > { %p441_p0 = scmp.ne.s32.totalorder %s2266_s29, %s2262_s28  ;;  %p429_p1 = scmp.eq.s32.totalorder %s428_s21, 0 }
   0xc   : > { %p442_p2 = scmp.eq.s32.totalorder %s2409_s0, 1  ;;  %p447_p3 = scmp.ne.s32.totalorder %s2262_s28, %s2258_s27 }
   0xd   : > { %p448_p4 = scmp.eq.s32.totalorder %s1903_s19, 1  ;;  %p1906_p7 = scmp.ge.s32.totalorder %s2270_s30, 1 }
   0xe   : > { %s2424_s22 = scalar_select %p429_p1, %s2266_s29, %s431_s20  }
   0xf   : > { %p2426_p5 = por %p442_p2, %p441_p0  ;;  %p2430_p6 = por %p448_p4, %p447_p3 }
  0x10   : > { %2870 = sst [smem:[#allocation8_spill]] %s2424_s22  ;;  %p533_p8 = scmp.lt.s32.totalorder %s2270_s30, 3 }
  0x11   : > { %s2872_s23 = scalar_select %p2430_p6, 1, 0 }
  0x12   : > { %p534_p9 = pnand %p1906_p7, %p533_p8 }
  0x13   : > { %2873 = sst [smem:[#allocation9_spill]] %s2872_s23  ;;  %p595_p10 = scmp.lt.s32.totalorder (!%p534_p9), %s2409_s0, 1 }
  0x14   : > { %537 = sbr.rel (%p534_p9) target bundleno = 3510 (0xdb6), region = 92  ;;  %s2874_s20 = sld [smem:[#allocation10_spill]] (!%p534_p9) }
  0x15   : > { %s2875_s1 = sld [smem:[#allocation12_spill]] (!%p534_p9)  ;;  %s2275_s19 = smov (!%p534_p9), 32  }
  0x16   : > { %s2278_s22 = smov (!%p534_p9), 120   ;;  %s2282_s26 = smov (!%p534_p9), 112  }
  0x17   : > { %s2285_s29 = smov (!%p534_p9), 56  }
  0x19   : > { %s596_s24 = scalar_select %p595_p10, %s2409_s0, 1  ;;  %vm631_vm0 = vcmask 261120   ;;  %v2272_v4 = vmov 0   ;;  %v2273_v19 = vmov 0.0   ;;  %v614_v26 = vlaneseq  ;;  %v1914_v29 = vld [vmem:[%s2842_s3] ss:$0 sm:$0xff] }
  0x1a   : > { %2122 = vset.pattern.permute.xlu1 %v2272_v4  ;;  %2121 = vset.pattern.permute.xlu0 %v2272_v4  ;;  %v1915_v34 = vld [vmem:[%s2843_s4] ss:$0 sm:$0xff]  ;;  %v690_v37 = vld [vmem:[%s2844_s5 + $0x4] sm:$0x7]  ;;  %v691_v39 = vld [vmem:[%s2844_s5 + $0x8] sm:$0x7] }
  0x1b   : > { %s1939_s25 = sshll.u32 %s596_s24, 4  ;;  %s607_s23 = scalar_lea.vmem %s2875_s1, %s596_s24  ;;  %1974 = vmatprep.subr.bf16.mxu0 %v2273_v19  ;;  %1990 = vmatprep.subr.bf16.mxu1 %v2273_v19  ;;  %v615_v28 = vshrl.u32 %v614_v26, 7  ;;  %vm2274_vm6 = vmmov 0   ;;  %vm908_vm7 = vcmask 523264   ;;  %vm937_vm8 = vcmask 785408  }
  0x1c   : > { %s2441_s21 = scalar_lea.vmem %s2874_s20, %s1939_s25  ;;  %v613_v5 = vld [vmem:[%s607_s23] sm:$0x1]  ;;  %s2876_s20 = sld [smem:[#allocation11_spill]]  ;;  %1986 = vmatprep.mubr.msk.bf16.mxu0 %vm2274_vm6, %v2273_v19  ;;  %1992 = vmatprep.mubr.msk.bf16.mxu1 %vm2274_vm6, %v2273_v19  ;;  %vm991_vm9 = vcmask 64512   ;;  %vm1048_vm11 = vcmask 130048   ;;  %vm1519_vm12 = vcmask 195584  }
  0x1d   : > { %v609_v0 = vld [vmem:[%s2441_s21] sm:$0xff]  ;;  %v610_v1 = vld [vmem:[%s2441_s21 + $0x8] sm:$0xff]  ;;  %vm1039_vm1 = vcmp.gt.f32.partialorder %v613_v5, 0.0  ;;  %v616_v31 = vadd.s32 8, %v615_v28  ;;  %v2465_v35 = vsub.s32 1, %v615_v28  ;;  %v2470_v38 = vsub.s32 0, %v615_v28 }
  0x1e   : > { %v632_v2 = vsel %vm631_vm0, %v609_v0, 0.0  ;;  %v635_v3 = vsel %vm631_vm0, %v610_v1, 0.0  ;;  %v2450_v6 = vsel %vm1039_vm1, 1, %v2272_v4  ;;  %vm617_vm3 = vcmp.gt.s32.totalorder %v615_v28, 0  ;;  %s2279_s23 = smov 80   ;;  %s2280_s24 = smov 72  }
  0x1f   : > { %633 = vadd.xlane.f32.xlu0 %v632_v2  ;;  %vm624_vm2 = vcmp.lt.s32.totalorder %v616_v31, 15  ;;  %v2475_v42 = vsub.s32 2, %v615_v28  ;;  %v775_v43 = vrot.slane %v690_v37, %v2465_v35  ;;  %vm677_vm4 = vcmp.lt.s32.totalorder %v615_v28, 1  ;;  %s2286_s1 = smov 40  }
  0x20   : > { %v1913_v45 = vsel %vm624_vm2, 1.0, %v2273_v19  ;;  %v837_v46 = vrot.slane %v691_v39, %v2465_v35  ;;  %vm684_vm5 = vcmp.lt.s32.totalorder %v615_v28, 7  ;;  %v769_v47 = vrot.slane %v690_v37, %v2470_v38 }
  0x21   : > { %v1912_v48 = vsel %vm617_vm3, 1.0, %v2273_v19  ;;  %v831_v49 = vrot.slane %v691_v39, %v2470_v38  ;;  %v783_v54 = vrot.slane %v690_v37, %v2475_v42  ;;  %v845_v55 = vrot.slane %v691_v39, %v2475_v42 }
  0x22   : > { %s604_s27 = scalar_lea.vmem %s2876_s20, %s1939_s25  ;;  %s2276_s20 = smov 64  }
  0x23   : > { %636 = vadd.xlane.f32.xlu0 %v635_v3  ;;  %v611_v7 = vld [vmem:[%s604_s27] sm:$0xff]  ;;  %v612_v18 = vld [vmem:[%s604_s27 + $0x8] sm:$0xff]  ;;  %s2277_s27 = smov 96   ;;  %s2281_s25 = smov 88  }
  0x39   : > { %718 = vperm.xlu0 %2121, %v611_v7  }
  0xa8   : > { %v634_v8 = vpop.xlane.xlu0 %633 }
  0xa9   : > { %v639_v9 = vmul.f32 0.03125, %v634_v8 }
  0xab   : > { %v641_v10 = vsub.f32 %v609_v0, %v639_v9  ;;  %v689_v0 = vld [vmem:[%s2844_s5] sm:$0x7] }
  0xac   : > { %v637_v11 = vpop.xlane.xlu0 %636 }
  0xad   : > { %v640_v12 = vmul.f32 0.03125, %v637_v11  ;;  %v643_v13 = vmul.f32 %v641_v10, %v641_v10 }
  0xaf   : > { %v642_v14 = vsub.f32 %v610_v1, %v640_v12  ;;  %v645_v15 = vsel %vm631_vm0, %v643_v13, 0.0  ;;  %v697_v12 = vrot.slane %v689_v0, %v2470_v38  ;;  %v703_v13 = vrot.slane %v689_v0, %v2465_v35 }
  0xb0   : > { %646 = vadd.xlane.f32.xlu1 %v645_v15 }
  0xb1   : > { %v644_v16 = vmul.f32 %v642_v14, %v642_v14 }
  0xb3   : > { %v648_v17 = vsel %vm631_vm0, %v644_v16, 0.0 }
  0xb4   : > { %649 = vadd.xlane.f32.xlu1 %v648_v17 }
  0xc5   : > { %723 = vperm.xlu1 %2122, %v612_v18   ;;  %v2494_v18 = vpop.permute.xlu0 %718 }
 0x139   : > { %v647_v20 = vpop.xlane.xlu1 %646 }
 0x13a   : > { %v651_v21 = vmul.f32 0.03125, %v647_v20 }
 0x13c   : > { %v653_v22 = vadd.f32 1e-05, %v651_v21 }
 0x13d   : > { %v650_v23 = vpop.xlane.xlu1 %649 }
 0x13e   : > { %2148 = vrsqrt.f32 %v653_v22  ;;  %v652_v24 = vmul.f32 0.03125, %v650_v23 }
 0x140   : > { %v654_v25 = vadd.f32 1e-05, %v652_v24 }
 0x141   : > { %v2490_v9 = vpop.permute.xlu1 %723 }
 0x142   : > { %2150 = vrsqrt.f32 %v654_v25 }
 0x14b   : > { %v2149_v27 = vpop.eup %2148 }
 0x14c   : > { %v657_v30 = vmul.f32 %v2149_v27, %v641_v10 }
 0x14e   : > { %v665_v32 = vmul.f32 %v1914_v29, %v657_v30 }
 0x14f   : > { %v2151_v33 = vpop.eup %2150 }
 0x150   : > { %v658_v36 = vmul.f32 %v2151_v33, %v642_v14  ;;  %v673_v40 = vadd.f32 %v1915_v34, %v665_v32 }
 0x152   : > { %v666_v41 = vmul.f32 %v1914_v29, %v658_v36  ;;  %v675_v50 = vrot.slane %v673_v40, 7  ;;  %v682_v52 = vrot.slane %v673_v40, 1  ;;  %v776_v1 = vmul.f32 %v775_v43, %v673_v40 }
 0x153   : > { %v838_v2 = vmul.f32 %v837_v46, %v673_v40  ;;  %v704_v28 = vmul.f32 %v703_v13, %v673_v40  ;;  %v711_v29 = vrot.slane %v689_v0, %v2475_v42 }
 0x154   : > { %v674_v44 = vadd.f32 %v1915_v34, %v666_v41 }
 0x156   : > { %v676_v51 = vrot.slane %v674_v44, 7  ;;  %v683_v53 = vrot.slane %v674_v44, 1  ;;  %v777_v58 = vmul.f32 %v775_v43, %v674_v44  ;;  %v839_v11 = vmul.f32 %v837_v46, %v674_v44 }
 0x157   : > { %v705_v36 = vmul.f32 %v703_v13, %v674_v44 }
 0x158   : > { %v678_v56 = vsel %vm677_vm4, %v675_v50, %v676_v51  ;;  %v686_v57 = vsel %vm684_vm5, %v683_v53, %v682_v52  ;;  %v679_v59 = vsel %vm677_vm4, %v676_v51, %v675_v50  ;;  %v685_v63 = vsel %vm684_vm5, %v682_v52, %v683_v53 }
 0x159   : > { %v688_v60 = vmul.f32 %v1913_v45, %v686_v57  ;;  %v771_v61 = vmul.f32 %v769_v47, %v678_v56  ;;  %v680_v62 = vmul.f32 %v1912_v48, %v679_v59  ;;  %v833_v3 = vmul.f32 %v831_v49, %v678_v56 }
 0x15a   : > { %v784_v10 = vmul.f32 %v783_v54, %v685_v63  ;;  %v846_v17 = vmul.f32 %v845_v55, %v685_v63  ;;  %v699_v30 = vmul.f32 %v697_v12, %v678_v56  ;;  %v712_v37 = vmul.f32 %v711_v29, %v685_v63 }
 0x15b   : > { %v779_v4 = vadd.f32 %v777_v58, %v771_v61  ;;  %v785_v5 = vmul.f32 %v783_v54, %v688_v60  ;;  %v770_v7 = vmul.f32 %v769_v47, %v680_v62  ;;  %v832_v8 = vmul.f32 %v831_v49, %v680_v62 }
 0x15c   : > { %v841_v20 = vadd.f32 %v839_v11, %v833_v3  ;;  %v847_v21 = vmul.f32 %v845_v55, %v688_v60  ;;  %v698_v25 = vmul.f32 %v697_v12, %v680_v62  ;;  %v707_v39 = vadd.f32 %v705_v36, %v699_v30 }
 0x15d   : > { %v787_v14 = vadd.f32 %v785_v5, %v779_v4  ;;  %v778_v15 = vadd.f32 %v776_v1, %v770_v7  ;;  %v840_v16 = vadd.f32 %v838_v2, %v832_v8  ;;  %v713_v40 = vmul.f32 %v711_v29, %v688_v60 }
 0x15e   : > { %v849_v33 = vadd.f32 %v847_v21, %v841_v20  ;;  %v706_v34 = vadd.f32 %v704_v28, %v698_v25  ;;  %v921_v21 = vld [vmem:[%s2847_s8 + $0x50] sm:$0xff]  ;;  %v920_v25 = vld [vmem:[%s2847_s8 + $0x48] sm:$0xff]  ;;  %v918_v28 = vld [vmem:[%s2847_s8 + $0x38] sm:$0xff] }
 0x15f   : > { %v789_v22 = vmul.f32 %v787_v14, %v2490_v9  ;;  %v786_v23 = vadd.f32 %v784_v10, %v778_v15  ;;  %v848_v24 = vadd.f32 %v846_v17, %v840_v16  ;;  %v715_v48 = vadd.f32 %v713_v40, %v707_v39 }
 0x160   : > { %v851_v43 = vmul.f32 %v849_v33, %v2490_v9  ;;  %v714_v45 = vadd.f32 %v712_v37, %v706_v34 }
 0x161   : > { %v793_v26 = vsel %vm631_vm0, %v789_v22, 0.0  ;;  %v788_v27 = vmul.f32 %v786_v23, %v2494_v18  ;;  %v850_v32 = vmul.f32 %v848_v24, %v2494_v18  ;;  %v727_v50 = vmul.f32 %v2490_v9, %v715_v48  ;;  %v919_v23 = vld [vmem:[%s2847_s8 + $0x40] sm:$0xff] }
 0x162   : > { %794 = vadd.xlane.f32.xlu0 %v793_v26  ;;  %v855_v46 = vsel %vm631_vm0, %v851_v43, 0.0  ;;  %v726_v47 = vmul.f32 %v2494_v18, %v714_v45  ;;  %v928_v26 = vpack.c.bf16 %v920_v25, %v919_v23  ;;  %v692_v48 = vld [vmem:[%s2845_s6] sm:$0x7] }
 0x163   : > { %v790_v31 = vsel %vm631_vm0, %v788_v27, 0.0  ;;  %v852_v41 = vsel %vm631_vm0, %v850_v32, 0.0  ;;  %v731_v44 = vsel %vm631_vm0, %v727_v50, 0.0 }
 0x164   : > { %791 = vadd.xlane.f32.xlu1 %v790_v31  ;;  %v728_v49 = vsel %vm631_vm0, %v726_v47, 0.0 }
 0x168   : > { %853 = vadd.xlane.f32.xlu1 %v852_v41 }
 0x16c   : > { %856 = vadd.xlane.f32.xlu1 %v855_v46 }
 0x170   : > { %729 = vadd.xlane.f32.xlu1 %v728_v49 }
 0x174   : > { %732 = vadd.xlane.f32.xlu1 %v731_v44  ;;  %v916_v44 = vld [vmem:[%s2847_s8 + $0x28] sm:$0xff] }
 0x1eb   : > { %v795_v51 = vpop.xlane.xlu0 %794 }
 0x1ec   : > { %v797_v52 = vmul.f32 0.03125, %v795_v51 }
 0x1ed   : > { %v792_v53 = vpop.xlane.xlu1 %791 }
 0x1ee   : > { %v2509_v54 = vsub.f32 %v789_v22, %v797_v52  ;;  %v796_v55 = vmul.f32 0.03125, %v792_v53  ;;  %v922_v22 = vld [vmem:[%s2847_s8 + $0x58] sm:$0xff] }
 0x1ef   : > { %v929_v24 = vpack.c.bf16 %v922_v22, %v921_v21  ;;  %v757_v22 = vrot.slane %v692_v48, %v2470_v38 }
 0x1f0   : > { %v2511_v56 = vsub.f32 %v788_v27, %v796_v55  ;;  %v801_v57 = vmul.f32 %v2509_v54, %v2509_v54  ;;  %v917_v27 = vld [vmem:[%s2847_s8 + $0x30] sm:$0xff] }
 0x1f1   : > { %v854_v58 = vpop.xlane.xlu1 %853  ;;  %1975 = vmatpush3.bf16.msra.mxu0 %v929_v24  ;;  %v927_v29 = vpack.c.bf16 %v918_v28, %v917_v27 }
 0x1f2   : > { %v858_v59 = vmul.f32 0.03125, %v854_v58  ;;  %v805_v60 = vsel %vm631_vm0, %v801_v57, 0.0  ;;  %v800_v61 = vmul.f32 %v2511_v56, %v2511_v56  ;;  %1976 = vmatprep.subr.bf16.mxu0 %v2273_v19  ;;  %v819_v58 = vrot.slane %v692_v48, %v2465_v35 }
 0x1f3   : > { %806 = vadd.xlane.f32.xlu1 %v805_v60  ;;  %v913_v60 = vld [vmem:[%s2847_s8 + $0x10] sm:$0xff] }
 0x1f4   : > { %v2518_v62 = vsub.f32 %v850_v32, %v858_v59  ;;  %v802_v1 = vsel %vm631_vm0, %v800_v61, 0.0  ;;  %v693_v59 = vld [vmem:[%s2846_s7] sm:$0x7]  ;;  %v914_v61 = vld [vmem:[%s2847_s8 + $0x18] sm:$0xff] }
 0x1f5   : > { %v857_v63 = vpop.xlane.xlu1 %856  ;;  %1977 = vmatpush3.bf16.msra.mxu0 %v928_v26  ;;  %v763_v24 = vrot.slane %v693_v59, %v2470_v38 }
 0x1f6   : > { %v859_v0 = vmul.f32 0.03125, %v857_v63  ;;  %v862_v2 = vmul.f32 %v2518_v62, %v2518_v62  ;;  %1978 = vmatprep.subr.bf16.mxu0 %v2273_v19 }
 0x1f7   : > { %803 = vadd.xlane.f32.xlu1 %v802_v1 }
 0x1f8   : > { %v2523_v3 = vsub.f32 %v851_v43, %v859_v0  ;;  %v864_v4 = vsel %vm631_vm0, %v862_v2, 0.0  ;;  %v925_v0 = vpack.c.bf16 %v914_v61, %v913_v60 }
 0x1f9   : > { %865 = vadd.xlane.f32.xlu0 %v864_v4  ;;  %v730_v5 = vpop.xlane.xlu1 %729  ;;  %1979 = vmatpush3.bf16.msra.mxu0 %v927_v29  ;;  %v825_v4 = vrot.slane %v693_v59, %v2465_v35 }
 0x1fa   : > { %v734_v7 = vmul.f32 0.03125, %v730_v5  ;;  %v863_v8 = vmul.f32 %v2523_v3, %v2523_v3  ;;  %1980 = vmatprep.subr.bf16.mxu0 %v2273_v19 }
 0x1fc   : > { %v2528_v10 = vsub.f32 %v726_v47, %v734_v7  ;;  %v867_v11 = vsel %vm631_vm0, %v863_v8, 0.0 }
 0x1fd   : > { %v733_v12 = vpop.xlane.xlu1 %732  ;;  %868 = vadd.xlane.f32.xlu1 %v867_v11  ;;  %v881_v11 = vrot.slane %v692_v48, %v2475_v42 }
 0x1fe   : > { %v735_v13 = vmul.f32 0.03125, %v733_v12  ;;  %v738_v14 = vmul.f32 %v2528_v10, %v2528_v10  ;;  %v911_v12 = vld [vmem:[%s2847_s8] sm:$0xff] }
 0x200   : > { %v2533_v15 = vsub.f32 %v727_v50, %v735_v13  ;;  %v740_v16 = vsel %vm631_vm0, %v738_v14, 0.0  ;;  %v915_v50 = vld [vmem:[%s2847_s8 + $0x20] sm:$0xff] }
 0x201   : > { %741 = vadd.xlane.f32.xlu0 %v740_v16  ;;  %v926_v53 = vpack.c.bf16 %v916_v44, %v915_v50 }
 0x202   : > { %v739_v17 = vmul.f32 %v2533_v15, %v2533_v15 }
 0x203   : > { %1981 = vmatpush3.bf16.msra.mxu0 %v926_v53 }
 0x204   : > { %v743_v20 = vsel %vm631_vm0, %v739_v17, 0.0  ;;  %1982 = vmatprep.subr.bf16.mxu0 %v2273_v19  ;;  %v887_v17 = vrot.slane %v693_v59, %v2475_v42 }
 0x205   : > { %744 = vadd.xlane.f32.xlu1 %v743_v20 }
 0x207   : > { %1983 = vmatpush3.bf16.msra.mxu0 %v925_v0 }
 0x208   : > { %1984 = vmatprep.subr.bf16.mxu0 %v2273_v19 }
 0x27c   : > { %v807_v30 = vpop.xlane.xlu1 %806 }
 0x27d   : > { %v809_v31 = vmul.f32 0.03125, %v807_v30 }
 0x27f   : > { %v811_v32 = vadd.f32 1e-05, %v809_v31 }
 0x280   : > { %v804_v33 = vpop.xlane.xlu1 %803 }
 0x281   : > { %2152 = vrsqrt.f32 %v811_v32  ;;  %v808_v34 = vmul.f32 0.03125, %v804_v33 }
 0x282   : > { %v866_v36 = vpop.xlane.xlu0 %865 }
 0x283   : > { %v810_v37 = vadd.f32 1e-05, %v808_v34  ;;  %v870_v39 = vmul.f32 0.03125, %v866_v36 }
 0x285   : > { %2154 = vrsqrt.f32 %v810_v37  ;;  %v872_v41 = vadd.f32 1e-05, %v870_v39 }
 0x286   : > { %v869_v43 = vpop.xlane.xlu1 %868 }
 0x287   : > { %2156 = vrsqrt.f32 %v872_v41  ;;  %v871_v45 = vmul.f32 0.03125, %v869_v43 }
 0x289   : > { %v873_v40 = vadd.f32 1e-05, %v871_v45 }
 0x28a   : > { %v742_v46 = vpop.xlane.xlu0 %741 }
 0x28b   : > { %2158 = vrsqrt.f32 %v873_v40  ;;  %v746_v47 = vmul.f32 0.03125, %v742_v46 }
 0x28d   : > { %v748_v49 = vadd.f32 1e-05, %v746_v47 }
 0x28e   : > { %v2153_v51 = vpop.eup %2152  ;;  %v745_v52 = vpop.xlane.xlu1 %744 }
 0x28f   : > { %2160 = vrsqrt.f32 %v748_v49  ;;  %v747_v55 = vmul.f32 0.03125, %v745_v52  ;;  %v815_v57 = vmul.f32 %v2153_v51, %v2509_v54 }
 0x291   : > { %v749_v63 = vadd.f32 1e-05, %v747_v55  ;;  %v821_v2 = vmul.f32 %v819_v58, %v815_v57 }
 0x292   : > { %v2155_v54 = vpop.eup %2154 }
 0x293   : > { %2162 = vrsqrt.f32 %v749_v63  ;;  %v814_v1 = vmul.f32 %v2155_v54, %v2511_v56  ;;  %v912_v56 = vld [vmem:[%s2847_s8 + $0x8] sm:$0xff]  ;;  %v827_v35 = vadd.f32 %v825_v4, %v821_v2  ;;  %v1044_v54 = vrot.slane %v2450_v6, %v2470_v38 }
 0x294   : > { %v2157_v5 = vpop.eup %2156  ;;  %v924_v13 = vpack.c.bf16 %v912_v56, %v911_v12 }
 0x295   : > { %v820_v7 = vmul.f32 %v819_v58, %v814_v1  ;;  %v876_v8 = vmul.f32 %v2157_v5, %v2518_v62  ;;  %vm2622_vm10 = vcmp.eq.s32.totalorder %v1044_v54, 1 }
 0x296   : > { %1985 = vmatpush3.bf16.msra.mxu0 %v924_v13 }
 0x297   : > { %v826_v14 = vadd.f32 %v825_v4, %v820_v7  ;;  %v882_v21 = vmul.f32 %v881_v11, %v876_v8  ;;  %2008 = vmatprep.subr.bf16.mxu0 %v2273_v19 }
 0x298   : > { %v2159_v16 = vpop.eup %2158 }
 0x299   : > { %v2123_v62 = vpack.i.bf16 %v827_v35, %v826_v14  ;;  %v877_v20 = vmul.f32 %v2159_v16, %v2523_v3  ;;  %v888_v25 = vadd.f32 %v887_v17, %v882_v21 }
 0x29b   : > { %2124 = vrot.lane.b32.xlu0 %v2123_v62, %s2275_s19  ;;  %v883_v23 = vmul.f32 %v881_v11, %v877_v20  ;;  %s2283_s19 = smov 104  }
 0x29c   : > { %v2161_v42 = vpop.eup %2160 }
 0x29d   : > { %v889_v26 = vadd.f32 %v887_v17, %v883_v23  ;;  %v752_v27 = vmul.f32 %v2161_v42, %v2528_v10 }
 0x29f   : > { %v2128_v28 = vpack.i.bf16 %v889_v26, %v888_v25  ;;  %v758_v3 = vmul.f32 %v757_v22, %v752_v27 }
 0x2a0   : > { %v2163_v29 = vpop.eup %2162 }
 0x2a1   : > { %2129 = vrot.lane.b32.xlu1 %v2128_v28, %s2276_s20  ;;  %v753_v30 = vmul.f32 %v2163_v29, %v2533_v15  ;;  %v764_v31 = vadd.f32 %v763_v24, %v758_v3  ;;  %v1916_v15 = vld [vmem:[%s2848_s9] ss:$0 sm:$0xff] }
 0x2a3   : > { %v759_v32 = vmul.f32 %v757_v22, %v753_v30 }
 0x2a5   : > { %v765_v33 = vadd.f32 %v763_v24, %v759_v32 }
 0x30d   : > { %v2125_v34 = vpop.permute.xlu0 %2124 }
 0x30e   : > { %v2127_v36 = vunpack.i.h.bf16 %v2125_v34  ;;  %v2126_v37 = vunpack.i.l.bf16 %v2125_v34 }
 0x310   : > { %v907_v10 = vsel %vm631_vm0, %v765_v33, %v2127_v36  ;;  %v906_v45 = vsel %vm631_vm0, %v764_v31, %v2126_v37 }
 0x313   : > { %v2130_v39 = vpop.permute.xlu1 %2129 }
 0x314   : > { %v2132_v41 = vunpack.i.h.bf16 %v2130_v39  ;;  %v2131_v43 = vunpack.i.l.bf16 %v2130_v39 }
 0x316   : > { %v909_v40 = vsel %vm908_vm7, %v906_v45, %v2131_v43  ;;  %v910_v46 = vsel %vm908_vm7, %v907_v10, %v2132_v41 }
 0x317   : > { %v923_v47 = vpack.c.bf16 %v910_v46, %v909_v40 }
 0x319   : > { %1987 = vmatmul.mubr.msk.bf16.vlgmr.msra.gmra.mxu0 %vm937_vm8, %v923_v47 }
 0x31a   : > { %2010 = vmatprep.mubr.msk.bf16.mxu0 %vm2274_vm6, %v2273_v19 }
 0x3d9   : > { %v975_v48 = vpop.f32.mrf.mxu0 }
 0x3da   : > { %v976_v49 = vadd.f32 %v1916_v15, %v975_v48 }
 0x3db   : > { %v1988_v50 = vpop.f32.mrf.mxu0 }
 0x3dc   : > { %v982_v52 = vmul.f32 %v976_v49, %v2494_v18  ;;  %v984_v55 = vmul.f32 0.35355338, %v976_v49 }
 0x3dd   : > { %v978_v44 = vpop.f32.mrf.mxu0 }
 0x3de   : > { %v979_v51 = vadd.f32 %v1916_v15, %v978_v44 }
 0x3df   : > { %v1989_v53 = vpop.f32.mrf.mxu0 }
 0x3e0   : > { %v983_v57 = vmul.f32 %v979_v51, %v2490_v9  ;;  %v985_v58 = vmul.f32 0.35355338, %v979_v51  ;;  %v987_v59 = vpack.c.bf16 %v979_v51, %v976_v49 }
 0x3e2   : > { %v986_v60 = vpack.c.bf16 %v985_v58, %v984_v55  ;;  %v2613_v61 = vpack.c.bf16 %v983_v57, %v982_v52  ;;  %989 = vrot.lane.b32.xlu1 %v987_v59, %s2277_s27  ;;  %s2289_s27 = smov 24  }
 0x454   : > { %v990_v63 = vpop.permute.xlu1 %989 }
 0x455   : > { %v996_v0 = vsel %vm991_vm9, %v990_v63, 0 }
 0x456   : > { %1991 = vmatpush3.bf16.xpose.msra.mxu1 %v996_v0 }
 0x457   : > { %1996 = vmatprep.subr.bf16.mxu1 %v2273_v19 }
 0x45d   : > { %1993 = vmatmul.mubr.msk.bf16.vlgmr.msra.gmra.mxu1 %vm991_vm9, %v986_v60 }
 0x45e   : > { %1998 = vmatprep.mubr.msk.bf16.mxu1 %vm2274_vm6, %v2273_v19 }
 0x51d   : > { %v1032_v2 = vpop.f32.mrf.mxu1 }
 0x51e   : > { %v1046_v4 = vsel %vm2622_vm10, %v1032_v2, -1e+30 }
 0x51f   : > { %v1994_v5 = vpop.f32.mrf.mxu1  ;;  %v1049_v7 = vsel %vm1048_vm11, %v1046_v4, -inf }
 0x520   : > { %1050 = vmax.xlane.f32.xlu0 %v1049_v7 }
 0x521   : > { %v1035_v8 = vpop.f32.mrf.mxu1 }
 0x522   : > { %v1047_v11 = vsel %vm2622_vm10, %v1035_v8, -1e+30 }
 0x523   : > { %v1995_v12 = vpop.f32.mrf.mxu1  ;;  %v1052_v6 = vsel %vm1048_vm11, %v1047_v11, -inf }
 0x524   : > { %1053 = vmax.xlane.f32.xlu1 %v1052_v6 }
 0x535   : > { %1074 = vrot.lane.b32.xlu1 %v2613_v61, %s2276_s20  ;;  %s2284_s20 = smov 48  }
 0x539   : > { %1122 = vrot.lane.b32.xlu1 %v986_v60, %s2278_s22 }
 0x53d   : > { %1247 = vrot.lane.b32.xlu1 %v987_v59, %s2279_s23 }
 0x541   : > { %1370 = vrot.lane.b32.xlu1 %v987_v59, %s2280_s24 }
 0x5a9   : > { %v1051_v38 = vpop.xlane.xlu0 %1050 }
 0x5aa   : > { %v1055_v56 = vsub.f32 %v1046_v4, %v1051_v38 }
 0x5ac   : > { %v1057_v13 = vmul.f32 1.442695, %v1055_v56 }
 0x5ad   : > { %v1054_v14 = vpop.xlane.xlu1 %1053 }
 0x5ae   : > { %2164 = vpow2.f32 %v1057_v13  ;;  %v1056_v35 = vsub.f32 %v1047_v11, %v1054_v14 }
 0x5b0   : > { %v1059_v16 = vmul.f32 1.442695, %v1056_v35 }
 0x5b1   : > { %v1075_v17 = vpop.permute.xlu1 %1074 }
 0x5b2   : > { %2166 = vpow2.f32 %v1059_v16  ;;  %1997 = vmatpush3.bf16.msra.mxu1 %v1075_v17 }
 0x5b3   : > { %2002 = vmatprep.subr.bf16.mxu1 %v2273_v19 }
 0x5b5   : > { %v1123_v29 = vpop.permute.xlu1 %1122 }
 0x5b9   : > { %v1248_v31 = vpop.permute.xlu1 %1247 }
 0x5ba   : > { %v1253_v32 = vsel %vm991_vm9, %v1248_v31, 0 }
 0x5bb   : > { %v2165_v62 = vpop.eup %2164 }
 0x5bc   : > { %v1061_v20 = vsel %vm1048_vm11, %v2165_v62, 0.0 }
 0x5bd   : > { %1062 = vadd.xlane.f32.xlu0 %v1061_v20  ;;  %v1371_v33 = vpop.permute.xlu1 %1370 }
 0x5be   : > { %v1376_v36 = vsel %vm991_vm9, %v1371_v33, 0 }
 0x5bf   : > { %v2167_v21 = vpop.eup %2166 }
 0x5c0   : > { %v1064_v22 = vsel %vm1048_vm11, %v2167_v21, 0.0 }
 0x5c1   : > { %1065 = vadd.xlane.f32.xlu0 %v1064_v22 }
 0x5d7   : > { %1124 = vrot.lane.b32.xlu0 %v987_v59, %s2281_s25  ;;  %s2863_s25 = smov 8  }
 0x5db   : > { %1245 = vrot.lane.b32.xlu0 %v986_v60, %s2282_s26  ;;  %s2288_s26 = smov 16  }
 0x5df   : > { %1368 = vrot.lane.b32.xlu0 %v986_v60, %s2283_s19 }
 0x646   : > { %v1063_v23 = vpop.xlane.xlu0 %1062 }
 0x647   : > { %2168 = vrcp.f32 %v1063_v23 }
 0x64a   : > { %v1066_v42 = vpop.xlane.xlu0 %1065 }
 0x64b   : > { %2170 = vrcp.f32 %v1066_v42 }
 0x64e   : > { %v1125_v28 = vpop.permute.xlu0 %1124 }
 0x64f   : > { %v1130_v30 = vsel %vm991_vm9, %v1125_v28, 0 }
 0x652   : > { %v1246_v34 = vpop.permute.xlu0 %1245 }
 0x654   : > { %v2169_v24 = vpop.eup %2168 }
 0x655   : > { %v1069_v26 = vmul.f32 %v2169_v24, %v2165_v62 }
 0x656   : > { %v1369_v37 = vpop.permute.xlu0 %1368 }
 0x658   : > { %v2171_v25 = vpop.eup %2170 }
 0x659   : > { %v1070_v27 = vmul.f32 %v2171_v25, %v2167_v21 }
 0x65b   : > { %v1071_v3 = vpack.c.bf16 %v1070_v27, %v1069_v26 }
 0x65d   : > { %1999 = vmatmul.mubr.msk.bf16.vlgmr.msra.gmra.mxu1 %vm1048_vm11, %v1071_v3 }
 0x65e   : > { %2003 = vmatpush3.bf16.xpose.msra.mxu1 %v1130_v30  ;;  %2004 = vmatprep.mubr.msk.bf16.mxu1 %vm2274_vm6, %v2273_v19 }
 0x65f   : > { %2014 = vmatprep.subr.bf16.mxu1 %v2273_v19 }
 0x665   : > { %2005 = vmatmul.mubr.msk.bf16.vlgmr.msra.gmra.mxu1 %vm991_vm9, %v1123_v29 }
 0x666   : > { %2015 = vmatpush3.bf16.xpose.msra.mxu1 %v1253_v32  ;;  %2016 = vmatprep.mubr.msk.bf16.mxu1 %vm2274_vm6, %v2273_v19 }
 0x667   : > { %2026 = vmatprep.subr.bf16.mxu1 %v2273_v19 }
 0x66d   : > { %2017 = vmatmul.mubr.msk.bf16.vlgmr.msra.gmra.mxu1 %vm991_vm9, %v1246_v34 }
 0x66e   : > { %2027 = vmatpush3.bf16.xpose.msra.mxu1 %v1376_v36  ;;  %2028 = vmatprep.mubr.msk.bf16.mxu1 %vm2274_vm6, %v2273_v19 }
 0x66f   : > { %2038 = vmatprep.subr.bf16.mxu1 %v2273_v19 }
 0x675   : > { %2029 = vmatmul.mubr.msk.bf16.vlgmr.msra.gmra.mxu1 %vm991_vm9, %v1369_v37 }
 0x676   : > { %2042 = vmatprep.mubr.msk.bf16.mxu1 %vm2274_vm6, %v2273_v19 }
 0x71d   : > { %v2655_v39 = vpop.f32.mrf.mxu1 }
 0x71f   : > { %v2000_v41 = vpop.f32.mrf.mxu1 }
 0x721   : > { %v2657_v43 = vpop.f32.mrf.mxu1 }
 0x723   : > { %v2001_v10 = vpop.f32.mrf.mxu1 }
 0x725   : > { %v1166_v45 = vpop.f32.mrf.mxu1 }
 0x726   : > { %v1173_v40 = vsel %vm2622_vm10, %v1166_v45, -1e+30 }
 0x727   : > { %v2006_v46 = vpop.f32.mrf.mxu1  ;;  %v1175_v47 = vsel %vm1048_vm11, %v1173_v40, -inf }
 0x728   : > { %1176 = vmax.xlane.f32.xlu1 %v1175_v47 }
 0x729   : > { %v1169_v15 = vpop.f32.mrf.mxu1 }
 0x72a   : > { %v1174_v48 = vsel %vm2622_vm10, %v1169_v15, -1e+30 }
 0x72b   : > { %v2007_v49 = vpop.f32.mrf.mxu1  ;;  %v1178_v50 = vsel %vm1048_vm11, %v1174_v48, -inf }
 0x72c   : > { %1179 = vmax.xlane.f32.xlu0 %v1178_v50 }
 0x72d   : > { %v1289_v44 = vpop.f32.mrf.mxu1 }
 0x72e   : > { %v1296_v51 = vsel %vm2622_vm10, %v1289_v44, -1e+30 }
 0x72f   : > { %v2018_v52 = vpop.f32.mrf.mxu1  ;;  %v1298_v53 = vsel %vm1048_vm11, %v1296_v51, -inf }
 0x730   : > { %1299 = vmax.xlane.f32.xlu0 %v1298_v53 }
 0x731   : > { %v1292_v55 = vpop.f32.mrf.mxu1 }
 0x732   : > { %v1297_v57 = vsel %vm2622_vm10, %v1292_v55, -1e+30 }
 0x733   : > { %v2019_v58 = vpop.f32.mrf.mxu1  ;;  %v1301_v59 = vsel %vm1048_vm11, %v1297_v57, -inf }
 0x734   : > { %1302 = vmax.xlane.f32.xlu1 %v1301_v59 }
 0x735   : > { %v1412_v60 = vpop.f32.mrf.mxu1 }
 0x736   : > { %v1419_v63 = vsel %vm2622_vm10, %v1412_v60, -1e+30 }
 0x737   : > { %v2030_v0 = vpop.f32.mrf.mxu1  ;;  %v1421_v54 = vsel %vm1048_vm11, %v1419_v63, -inf }
 0x738   : > { %1422 = vmax.xlane.f32.xlu0 %v1421_v54 }
 0x739   : > { %v1415_v2 = vpop.f32.mrf.mxu1 }
 0x73a   : > { %v1420_v4 = vsel %vm2622_vm10, %v1415_v2, -1e+30 }
 0x73b   : > { %v2031_v5 = vpop.f32.mrf.mxu1  ;;  %v1424_v7 = vsel %vm1048_vm11, %v1420_v4, -inf }
 0x73c   : > { %1425 = vmax.xlane.f32.xlu1 %v1424_v7  ;;  %v1524_v5 = vld [vmem:[%s2849_s10 + $0x10] sm:$0xff]  ;;  %v1525_v7 = vld [vmem:[%s2849_s10 + $0x18] sm:$0xff] }
 0x7b1   : > { %v1177_v8 = vpop.xlane.xlu1 %1176 }
 0x7b2   : > { %v1181_v11 = vsub.f32 %v1173_v40, %v1177_v8 }
 0x7b4   : > { %v1183_v12 = vmul.f32 1.442695, %v1181_v11  ;;  %v1528_v11 = vpack.c.bf16 %v1525_v7, %v1524_v5  ;;  %v1632_v5 = vld [vmem:[%s2853_s14 + $0x10] sm:$0xff]  ;;  %v1633_v7 = vld [vmem:[%s2853_s14 + $0x18] sm:$0xff] }
 0x7b5   : > { %v1180_v6 = vpop.xlane.xlu0 %1179 }
 0x7b6   : > { %2172 = vpow2.f32 %v1183_v12  ;;  %v1182_v38 = vsub.f32 %v1174_v48, %v1180_v6  ;;  %2039 = vmatpush3.bf16.msra.mxu1 %v1528_v11  ;;  %v1636_v11 = vpack.c.bf16 %v1633_v7, %v1632_v5 }
 0x7b7   : > { %2040 = vmatprep.subr.bf16.mxu1 %v2273_v19 }
 0x7b8   : > { %v1185_v56 = vmul.f32 1.442695, %v1182_v38 }
 0x7b9   : > { %v1300_v13 = vpop.xlane.xlu0 %1299 }
 0x7ba   : > { %2174 = vpow2.f32 %v1185_v56  ;;  %v1304_v14 = vsub.f32 %v1296_v51, %v1300_v13 }
 0x7bc   : > { %v1306_v35 = vmul.f32 1.442695, %v1304_v14 }
 0x7bd   : > { %v1303_v16 = vpop.xlane.xlu1 %1302 }
 0x7be   : > { %2176 = vpow2.f32 %v1306_v35  ;;  %v1305_v17 = vsub.f32 %v1297_v57, %v1303_v16  ;;  %v1522_v35 = vld [vmem:[%s2849_s10] sm:$0xff]  ;;  %v1523_v16 = vld [vmem:[%s2849_s10 + $0x8] sm:$0xff] }
 0x7c0   : > { %v1308_v1 = vmul.f32 1.442695, %v1305_v17  ;;  %v1527_v17 = vpack.c.bf16 %v1523_v16, %v1522_v35 }
 0x7c1   : > { %v1423_v62 = vpop.xlane.xlu0 %1422 }
 0x7c2   : > { %2178 = vpow2.f32 %v1308_v1  ;;  %v1427_v20 = vsub.f32 %v1419_v63, %v1423_v62  ;;  %2041 = vmatpush3.bf16.msra.mxu1 %v1527_v17 }
 0x7c3   : > { %v2173_v21 = vpop.eup %2172  ;;  %2054 = vmatprep.subr.bf16.mxu1 %v2273_v19 }
 0x7c4   : > { %v1429_v22 = vmul.f32 1.442695, %v1427_v20  ;;  %v1187_v23 = vsel %vm1048_vm11, %v2173_v21, 0.0 }
 0x7c5   : > { %1188 = vadd.xlane.f32.xlu0 %v1187_v23  ;;  %v1426_v30 = vpop.xlane.xlu1 %1425 }
 0x7c6   : > { %2180 = vpow2.f32 %v1429_v22  ;;  %v1428_v31 = vsub.f32 %v1420_v4, %v1426_v30 }
 0x7c7   : > { %v2175_v42 = vpop.eup %2174 }
 0x7c8   : > { %v1190_v24 = vsel %vm1048_vm11, %v2175_v42, 0.0  ;;  %v1431_v32 = vmul.f32 1.442695, %v1428_v31 }
 0x7c9   : > { %1191 = vadd.xlane.f32.xlu1 %v1190_v24 }
 0x7ca   : > { %2182 = vpow2.f32 %v1431_v32 }
 0x7cb   : > { %v2177_v25 = vpop.eup %2176 }
 0x7cc   : > { %v1310_v26 = vsel %vm1048_vm11, %v2177_v25, 0.0 }
 0x7cd   : > { %1311 = vadd.xlane.f32.xlu0 %v1310_v26 }
 0x7cf   : > { %v2179_v27 = vpop.eup %2178 }
 0x7d0   : > { %v1313_v28 = vsel %vm1048_vm11, %v2179_v27, 0.0 }
 0x7d1   : > { %1314 = vadd.xlane.f32.xlu1 %v1313_v28 }
 0x7d3   : > { %v2181_v3 = vpop.eup %2180 }
 0x7d4   : > { %v1433_v29 = vsel %vm1048_vm11, %v2181_v3, 0.0 }
 0x7d5   : > { %1434 = vadd.xlane.f32.xlu0 %v1433_v29 }
 0x7d7   : > { %v2183_v33 = vpop.eup %2182 }
 0x7d8   : > { %v1436_v34 = vsel %vm1048_vm11, %v2183_v33, 0.0 }
 0x7e2   : > { %1321 = vrot.lane.b32.xlu1 %v2613_v61, %s2284_s20  ;;  %s2291_s20 = smov [#allocation2]  }
 0x7eb   : > { %1198 = vrot.lane.b32.xlu0 %v2613_v61, %s2285_s29 }
 0x806   : > { %1437 = vadd.xlane.f32.xlu1 %v1436_v34 }
 0x817   : > { %1444 = vrot.lane.b32.xlu1 %v2613_v61, %s2286_s1  ;;  %s1941_s1 = sshll.u32 %s2409_s0, 8 }
 0x818   : > { %s2792_s24 = scalar_lea.hbm %s2857_s18, %s1941_s1 }
 0x84e   : > { %v1189_v36 = vpop.xlane.xlu0 %1188 }
 0x84f   : > { %2184 = vrcp.f32 %v1189_v36 }
 0x852   : > { %v1192_v37 = vpop.xlane.xlu1 %1191 }
 0x853   : > { %2186 = vrcp.f32 %v1192_v37 }
 0x856   : > { %v1312_v41 = vpop.xlane.xlu0 %1311 }
 0x857   : > { %2188 = vrcp.f32 %v1312_v41 }
 0x85a   : > { %v1315_v10 = vpop.xlane.xlu1 %1314 }
 0x85b   : > { %2190 = vrcp.f32 %v1315_v10 }
 0x85c   : > { %v2185_v45 = vpop.eup %2184 }
 0x85d   : > { %v1195_v47 = vmul.f32 %v2185_v45, %v2173_v21  ;;  %v2208_v45 = vld [vmem:[%s2441_s21] sm:$0xff] }
 0x85e   : > { %v1435_v40 = vpop.xlane.xlu0 %1434  ;;  %v1322_v61 = vpop.permute.xlu1 %1321 }
 0x85f   : > { %2192 = vrcp.f32 %v1435_v40  ;;  %v1580_v40 = vmul.f32 %v2208_v45, %v2494_v18 }
 0x860   : > { %v2187_v46 = vpop.eup %2186 }
 0x861   : > { %v1196_v15 = vmul.f32 %v2187_v46, %v2175_v42 }
 0x862   : > { %v1199_v48 = vpop.permute.xlu0 %1198 }
 0x863   : > { %2009 = vmatpush3.bf16.msra.mxu0 %v1199_v48  ;;  %v1197_v49 = vpack.c.bf16 %v1196_v15, %v1195_v47 }
 0x864   : > { %2020 = vmatprep.subr.bf16.mxu0 %v2273_v19  ;;  %v2189_v50 = vpop.eup %2188 }
 0x865   : > { %v1318_v51 = vmul.f32 %v2189_v50, %v2177_v25  ;;  %v2209_v50 = vld [vmem:[%s2441_s21 + $0x8] sm:$0xff] }
 0x866   : > { %2011 = vmatmul.mubr.msk.bf16.vlgmr.msra.gmra.mxu0 %vm1048_vm11, %v1197_v49 }
 0x867   : > { %2021 = vmatpush3.bf16.msra.mxu0 %v1322_v61  ;;  %2022 = vmatprep.mubr.msk.bf16.mxu0 %vm2274_vm6, %v2273_v19  ;;  %v1581_v61 = vmul.f32 %v2209_v50, %v2490_v9 }
 0x868   : > { %v2191_v44 = vpop.eup %2190  ;;  %2032 = vmatprep.subr.bf16.mxu0 %v2273_v19 }
 0x869   : > { %v1319_v52 = vmul.f32 %v2191_v44, %v2179_v27 }
 0x86b   : > { %v1320_v53 = vpack.c.bf16 %v1319_v52, %v1318_v51 }
 0x86c   : > { %v2193_v58 = vpop.eup %2192 }
 0x86d   : > { %v1441_v60 = vmul.f32 %v2193_v58, %v2181_v3 }
 0x86e   : > { %2023 = vmatmul.mubr.msk.bf16.vlgmr.msra.gmra.mxu0 %vm1048_vm11, %v1320_v53 }
 0x86f   : > { %2034 = vmatprep.mubr.msk.bf16.mxu0 %vm2274_vm6, %v2273_v19 }
 0x88f   : > { %v1438_v55 = vpop.xlane.xlu1 %1437 }
 0x890   : > { %2194 = vrcp.f32 %v1438_v55 }
 0x893   : > { %v1445_v57 = vpop.permute.xlu1 %1444 }
 0x894   : > { %2033 = vmatpush3.bf16.msra.mxu0 %v1445_v57 }
 0x895   : > { %2046 = vmatprep.subr.bf16.mxu0 %v2273_v19 }
 0x89d   : > { %v2195_v59 = vpop.eup %2194 }
 0x89e   : > { %v1442_v63 = vmul.f32 %v2195_v59, %v2183_v33 }
 0x8a0   : > { %v1443_v0 = vpack.c.bf16 %v1442_v63, %v1441_v60 }
 0x8a2   : > { %2035 = vmatmul.mubr.msk.bf16.vlgmr.msra.gmra.mxu0 %vm1048_vm11, %v1443_v0 }
 0x8a3   : > { %2050 = vmatprep.mubr.msk.bf16.mxu0 %vm2274_vm6, %v2273_v19  ;;  %2047 = vmatpush3.bf16.msra.mxu0 %v1636_v11 }
 0x8a4   : > { %2048 = vmatprep.subr.bf16.mxu0 %v2273_v19 }
 0x926   : > { %v1238_v54 = vpop.f32.mrf.mxu0 }
 0x928   : > { %v2012_v2 = vpop.f32.mrf.mxu0 }
 0x92a   : > { %v1241_v4 = vpop.f32.mrf.mxu0 }
 0x92b   : > { %v2133_v8 = vpack.i.bf16 %v1241_v4, %v1238_v54 }
 0x92c   : > { %v2013_v12 = vpop.f32.mrf.mxu0 }
 0x92d   : > { %2134 = vrot.lane.b32.xlu0 %v2133_v8, %s2863_s25  ;;  %v1630_v8 = vld [vmem:[%s2853_s14] sm:$0xff]  ;;  %v1631_v12 = vld [vmem:[%s2853_s14 + $0x8] sm:$0xff] }
 0x92e   : > { %v1361_v6 = vpop.f32.mrf.mxu0 }
 0x930   : > { %v2024_v38 = vpop.f32.mrf.mxu0 }
 0x932   : > { %v1364_v56 = vpop.f32.mrf.mxu0 }
 0x933   : > { %v2138_v13 = vpack.i.bf16 %v1364_v56, %v1361_v6  ;;  %v1635_v6 = vpack.c.bf16 %v1631_v12, %v1630_v8 }
 0x934   : > { %v2025_v14 = vpop.f32.mrf.mxu0 }
 0x935   : > { %2139 = vrot.lane.b32.xlu1 %v2138_v13, %s2288_s26  ;;  %2049 = vmatpush3.bf16.msra.mxu0 %v1635_v6  ;;  %s592_s26 = sand.u32 1, %s2262_s28  }
 0x936   : > { %s1907_s29 = sshll.u32 %s592_s26, 4  ;;  %s2798_s0 = scalar_lea.sflag [#allocation3], %s592_s26 }
 0x962   : > { %v1484_v1 = vpop.f32.mrf.mxu0 }
 0x964   : > { %v2036_v62 = vpop.f32.mrf.mxu0 }
 0x965   : > { %v1928_v62 = vld [vmem:[%s2851_s12] ss:$0 sm:$0xff] }
 0x966   : > { %v1487_v20 = vpop.f32.mrf.mxu0 }
 0x967   : > { %v2143_v21 = vpack.i.bf16 %v1487_v20, %v1484_v1 }
 0x968   : > { %v2037_v22 = vpop.f32.mrf.mxu0 }
 0x969   : > { %2144 = vrot.lane.b32.xlu0 %v2143_v21, %s2289_s27  ;;  %s594_s27 = scalar_lea.vmem [#allocation2], %s1907_s29  ;;  %s2214_s29 = sshll.u32 %s2291_s20, 4  ;;  %s2215_s29 = int_to_ptr.vmem [resolvable:$false] %s2214_s29 }
 0x96a   : > { %s1820_s22 = sshll.u32 %s594_s27, 4  ;;  %s2216_s1 = scalar_lea.vmem %s2215_s29, 512  ;;  %s2795_s22 = int_to_ptr.vmem [resolvable:$true] %s1820_s22 }
 0x96b   : > { %s2210_s19 = scalar_lea.vmem %s2795_s22, 256  ;;  %p2217_p0 = scmp.lt.s32.totalorder %s2795_s22, %s2215_s29 }
 0x96c   : > { %p2211_p11 = scmp.ne.s32.totalorder %s2795_s22, %s2210_s19  ;;  %p2218_p1 = scmp.lt.s32.totalorder %s2216_s1, %s2210_s19 }
 0x96e   : > { %p2212_p12 = pnand %p2211_p11, %p2426_p5  ;;  %p2219_p2 = por %p2218_p1, %p2217_p0 }
 0x970   : > { %p2213_p13 = pneg %p2212_p12 }
 0x972   : > { %p2220_p3 = pnand %p2219_p2, %p2213_p13 }
 0x99f   : > { %v2135_v23 = vpop.permute.xlu0 %2134 }
 0x9a0   : > { %v2137_v24 = vunpack.i.h.bf16 %v2135_v23  ;;  %v2136_v25 = vunpack.i.l.bf16 %v2135_v23  ;;  %v1929_v23 = vld [vmem:[%s2852_s13] ss:$0 sm:$0xff] }
 0x9a2   : > { %v1516_v3 = vsel %vm991_vm9, %v2657_v43, %v2137_v24  ;;  %v1515_v29 = vsel %vm991_vm9, %v2655_v39, %v2136_v25  ;;  %v1926_v43 = vld [vmem:[%s2850_s11] ss:$0 sm:$0xff] }
 0x9a7   : > { %v2140_v42 = vpop.permute.xlu1 %2139 }
 0x9a8   : > { %v2142_v26 = vunpack.i.h.bf16 %v2140_v42  ;;  %v2141_v27 = vunpack.i.l.bf16 %v2140_v42 }
 0x9aa   : > { %v1518_v32 = vsel %vm1048_vm11, %v1516_v3, %v2142_v26  ;;  %v1517_v33 = vsel %vm1048_vm11, %v1515_v29, %v2141_v27  ;;  %v1744_v27 = vld [vmem:[%s2855_s16 + $0x10] sm:$0xff]  ;;  %v1742_v29 = vld [vmem:[%s2855_s16] sm:$0xff] }
 0x9db   : > { %v2145_v28 = vpop.permute.xlu0 %2144 }
 0x9dc   : > { %v2147_v30 = vunpack.i.h.bf16 %v2145_v28  ;;  %v2146_v31 = vunpack.i.l.bf16 %v2145_v28  ;;  %v1745_v28 = vld [vmem:[%s2855_s16 + $0x18] sm:$0xff] }
 0x9dd   : > { %v1748_v3 = vpack.c.bf16 %v1745_v28, %v1744_v27 }
 0x9de   : > { %v1521_v34 = vsel %vm1519_vm12, %v1518_v32, %v2147_v30  ;;  %v1520_v36 = vsel %vm1519_vm12, %v1517_v33, %v2146_v31  ;;  %v1743_v30 = vld [vmem:[%s2855_s16 + $0x8] sm:$0xff]  ;;  %v1930_v32 = vld [vmem:[%s2854_s15] ss:$0 sm:$0xff] }
 0x9df   : > { %v1526_v37 = vpack.c.bf16 %v1521_v34, %v1520_v36  ;;  %v1747_v31 = vpack.c.bf16 %v1743_v30, %v1742_v29 }
 0x9e1   : > { %2043 = vmatmul.mubr.msk.bf16.vlgmr.msra.gmra.mxu1 %vm631_vm0, %v1526_v37 }
 0x9e2   : > { %2058 = vmatprep.mubr.msk.bf16.mxu1 %vm2274_vm6, %v2273_v19  ;;  %2055 = vmatpush3.bf16.msra.mxu1 %v1748_v3 }
 0x9e3   : > { %2056 = vmatprep.subr.bf16.mxu1 %v2273_v19 }
 0x9e6   : > { %2057 = vmatpush3.bf16.msra.mxu1 %v1747_v31  ;;  %v1932_v31 = vld [vmem:[%s2856_s17] ss:$0 sm:$0xff] }
 0xaa1   : > { %v1573_v39 = vpop.f32.mrf.mxu1 }
 0xaa2   : > { %v1574_v41 = vadd.f32 %v1926_v43, %v1573_v39 }
 0xaa3   : > { %v2044_v10 = vpop.f32.mrf.mxu1 }
 0xaa4   : > { %v1582_v46 = vmul.f32 %v1574_v41, %v2494_v18 }
 0xaa5   : > { %v1576_v47 = vpop.f32.mrf.mxu1 }
 0xaa6   : > { %v2728_v15 = vadd.f32 %v1582_v46, %v1580_v40  ;;  %v1577_v48 = vadd.f32 %v1926_v43, %v1576_v47 }
 0xaa7   : > { %v2045_v49 = vpop.f32.mrf.mxu1 }
 0xaa8   : > { %v1583_v44 = vmul.f32 %v1577_v48, %v2490_v9  ;;  %v1588_v51 = vsel %vm631_vm0, %v2728_v15, 0.0 }
 0xaa9   : > { %1589 = vadd.xlane.f32.xlu1 %v1588_v51 }
 0xaaa   : > { %v2735_v52 = vadd.f32 %v1583_v44, %v1581_v61 }
 0xaac   : > { %v1591_v53 = vsel %vm631_vm0, %v2735_v52, 0.0 }
 0xaad   : > { %1592 = vadd.xlane.f32.xlu0 %v1591_v53 }
 0xb32   : > { %v1590_v55 = vpop.xlane.xlu1 %1589 }
 0xb33   : > { %v1594_v57 = vmul.f32 0.03125, %v1590_v55 }
 0xb35   : > { %v1596_v58 = vsub.f32 %v2728_v15, %v1594_v57 }
 0xb36   : > { %v1593_v59 = vpop.xlane.xlu0 %1592 }
 0xb37   : > { %v1595_v60 = vmul.f32 0.03125, %v1593_v59  ;;  %v1598_v63 = vmul.f32 %v1596_v58, %v1596_v58 }
 0xb39   : > { %v1597_v0 = vsub.f32 %v2735_v52, %v1595_v60  ;;  %v1600_v54 = vsel %vm631_vm0, %v1598_v63, 0.0 }
 0xb3a   : > { %1601 = vadd.xlane.f32.xlu0 %v1600_v54 }
 0xb3b   : > { %v1599_v2 = vmul.f32 %v1597_v0, %v1597_v0 }
 0xb3d   : > { %v1603_v4 = vsel %vm631_vm0, %v1599_v2, 0.0 }
 0xb3e   : > { %1604 = vadd.xlane.f32.xlu1 %v1603_v4 }
 0xbc3   : > { %v1602_v38 = vpop.xlane.xlu0 %1601 }
 0xbc4   : > { %v1606_v56 = vmul.f32 0.03125, %v1602_v38 }
 0xbc6   : > { %v1608_v13 = vadd.f32 1e-05, %v1606_v56 }
 0xbc7   : > { %v1605_v14 = vpop.xlane.xlu1 %1604 }
 0xbc8   : > { %2196 = vrsqrt.f32 %v1608_v13  ;;  %v1607_v35 = vmul.f32 0.03125, %v1605_v14 }
 0xbca   : > { %v1609_v16 = vadd.f32 1e-05, %v1607_v35 }
 0xbcc   : > { %2198 = vrsqrt.f32 %v1609_v16 }
 0xbd5   : > { %v2197_v17 = vpop.eup %2196 }
 0xbd6   : > { %v1612_v1 = vmul.f32 %v2197_v17, %v1596_v58 }
 0xbd8   : > { %v1620_v22 = vmul.f32 %v1928_v62, %v1612_v1 }
 0xbd9   : > { %v2199_v20 = vpop.eup %2198 }
 0xbda   : > { %v1613_v21 = vmul.f32 %v2199_v20, %v1597_v0  ;;  %v1628_v24 = vadd.f32 %v1929_v23, %v1620_v22 }
 0xbdc   : > { %v1621_v42 = vmul.f32 %v1928_v62, %v1613_v21  ;;  %v2290_v62 = vmov -1.0  }
 0xbde   : > { %v1629_v25 = vadd.f32 %v1929_v23, %v1621_v42 }
 0xbe0   : > { %v1634_v26 = vpack.c.bf16 %v1629_v25, %v1628_v24 }
 0xbe2   : > { %2051 = vmatmul.mubr.msk.bf16.vlgmr.msra.gmra.mxu0 %vm631_vm0, %v1634_v26 }
 0xca2   : > { %v1681_v33 = vpop.f32.mrf.mxu0 }
 0xca3   : > { %v1682_v34 = vadd.f32 %v1930_v32, %v1681_v33 }
 0xca4   : > { %v2052_v36 = vpop.f32.mrf.mxu0 }
 0xca5   : > { %v1690_v37 = vmul.f32 0.70710677, %v1682_v34  ;;  %v1688_v26 = vmul.f32 0.5, %v1682_v34 }
 0xca6   : > { %v1684_v43 = vpop.f32.mrf.mxu0 }
 0xca7   : > { %v1696_v19 = vand.u32 2147483647, %v1690_v37  ;;  %v1685_v39 = vadd.f32 %v1930_v32, %v1684_v43  ;;  %vm1692_vm13 = vcmp.ge.f32.partialorder %v1690_v37, 0.0 }
 0xca8   : > { %v2053_v41 = vpop.f32.mrf.mxu0  ;;  %v1694_v20 = vsel %vm1692_vm13, 1.0, %v2290_v62 }
 0xca9   : > { %v1698_v10 = vmul.f32 0.3275911, %v1696_v19  ;;  %v1691_v45 = vmul.f32 0.70710677, %v1685_v39  ;;  %v1724_v49 = vsub.f32 0.0, %v1696_v19  ;;  %v1689_v27 = vmul.f32 0.5, %v1685_v39 }
 0xcab   : > { %v1700_v40 = vadd.f32 1.0, %v1698_v10  ;;  %v1697_v46 = vand.u32 2147483647, %v1691_v45  ;;  %v1726_v50 = vmul.f32 %v1724_v49, %v1696_v19  ;;  %vm1693_vm14 = vcmp.ge.f32.partialorder %v1691_v45, 0.0 }
 0xcac   : > { %v1695_v42 = vsel %vm1693_vm14, 1.0, %v2290_v62 }
 0xcad   : > { %2200 = vrcp.f32 %v1700_v40  ;;  %v1699_v47 = vmul.f32 0.3275911, %v1697_v46  ;;  %v1725_v61 = vsub.f32 0.0, %v1697_v46  ;;  %v1728_v53 = vmul.f32 1.442695, %v1726_v50 }
 0xcaf   : > { %v1701_v48 = vadd.f32 1.0, %v1699_v47  ;;  %v1727_v55 = vmul.f32 %v1725_v61, %v1697_v46 }
 0xcb1   : > { %2202 = vrcp.f32 %v1701_v48  ;;  %v1730_v63 = vmul.f32 1.442695, %v1727_v55 }
 0xcb2   : > { %2204 = vpow2.f32 %v1728_v53 }
 0xcb3   : > { %2206 = vpow2.f32 %v1730_v63 }
 0xcba   : > { %v2201_v44 = vpop.eup %2200 }
 0xcbb   : > { %v1706_v51 = vmul.f32 1.0614054, %v2201_v44 }
 0xcbd   : > { %v1708_v57 = vadd.f32 -1.4531521, %v1706_v51 }
 0xcbe   : > { %v2203_v58 = vpop.eup %2202 }
 0xcbf   : > { %v1710_v59 = vmul.f32 %v2201_v44, %v1708_v57  ;;  %v1707_v60 = vmul.f32 1.0614054, %v2203_v58  ;;  %v2205_v13 = vpop.eup %2204 }
 0xcc0   : > { %v2207_v1 = vpop.eup %2206 }
 0xcc1   : > { %v1712_v0 = vadd.f32 1.4214138, %v1710_v59  ;;  %v1709_v54 = vadd.f32 -1.4531521, %v1707_v60 }
 0xcc3   : > { %v1714_v2 = vmul.f32 %v2201_v44, %v1712_v0  ;;  %v1711_v4 = vmul.f32 %v2203_v58, %v1709_v54 }
 0xcc5   : > { %v1716_v5 = vadd.f32 -0.28449672, %v1714_v2  ;;  %v1713_v7 = vadd.f32 1.4214138, %v1711_v4 }
 0xcc7   : > { %v1718_v8 = vmul.f32 %v2201_v44, %v1716_v5  ;;  %v1715_v11 = vmul.f32 %v2203_v58, %v1713_v7 }
 0xcc9   : > { %v1720_v12 = vadd.f32 0.2548296, %v1718_v8  ;;  %v1717_v6 = vadd.f32 -0.28449672, %v1715_v11 }
 0xccb   : > { %v1722_v38 = vmul.f32 %v2201_v44, %v1720_v12  ;;  %v1719_v56 = vmul.f32 %v2203_v58, %v1717_v6 }
 0xccd   : > { %v1732_v14 = vmul.f32 %v2205_v13, %v1722_v38  ;;  %v1721_v35 = vadd.f32 0.2548296, %v1719_v56 }
 0xccf   : > { %v1734_v16 = vsub.f32 1.0, %v1732_v14  ;;  %v1723_v17 = vmul.f32 %v2203_v58, %v1721_v35 }
 0xcd1   : > { %v1736_v21 = vmul.f32 %v1734_v16, %v1694_v20  ;;  %v1733_v22 = vmul.f32 %v2207_v1, %v1723_v17 }
 0xcd3   : > { %v1735_v23 = vsub.f32 1.0, %v1733_v22  ;;  %v1738_v24 = vadd.f32 1.0, %v1736_v21 }
 0xcd5   : > { %v1737_v25 = vmul.f32 %v1735_v23, %v1695_v42  ;;  %v1740_v3 = vmul.f32 %v1738_v24, %v1688_v26 }
 0xcd7   : > { %v1739_v28 = vadd.f32 1.0, %v1737_v25 }
 0xcd9   : > { %v1741_v29 = vmul.f32 %v1739_v28, %v1689_v27 }
 0xcdb   : > { %v1746_v30 = vpack.c.bf16 %v1741_v29, %v1740_v3 }
 0xcdd   : > { %2059 = vmatmul.mubr.msk.bf16.vlgmr.msra.gmra.mxu1 %vm631_vm0, %v1746_v30 }
 0xd9d   : > { %v1793_v32 = vpop.f32.mrf.mxu1 }
 0xd9e   : > { %v1794_v33 = vadd.f32 %v1932_v31, %v1793_v32 }
 0xd9f   : > { %v2060_v36 = vpop.f32.mrf.mxu1 }
 0xda0   : > { %v1800_v37 = vmul.f32 %v1794_v33, %v2494_v18 }
 0xda1   : > { %v1796_v34 = vpop.f32.mrf.mxu1 }
 0xda2   : > { %v1802_v43 = vadd.f32 %v1800_v37, %v2728_v15  ;;  %v1797_v19 = vadd.f32 %v1932_v31, %v1796_v34 }
 0xda3   : > { %v2061_v39 = vpop.f32.mrf.mxu1 }
 0xda4   : > { %1804 = vst.msk [vmem:[%s594_s27] sm:$0xff] %vm631_vm0, %v1802_v43  ;;  %v1801_v41 = vmul.f32 %v1797_v19, %v2490_v9 }
 0xda6   : > { %v1803_v18 = vadd.f32 %v1801_v41, %v2735_v52 }
 0xda8   : > { %1805 = vst.msk [vmem:[%s594_s27 + $0x8] sm:$0xff] %vm631_vm0, %v1803_v18 }
 0xda9   : > { %2223 = shalt.err (!%p2220_p3)
}
 0xdaa   : > { %s2224_s26 = scalar_lea.hbm %s2792_s24, 256  ;;  %s2228_s21 = scalar_lea.hbm %s2857_s18, 512 }
 0xdab   : > { %p2225_p4 = scmp.ne.s32.totalorder %s2792_s24, %s2224_s26  ;;  %p2229_p9 = scmp.lt.s32.totalorder %s2792_s24, %s2857_s18 }
 0xdac   : > { %p2230_p10 = scmp.lt.s32.totalorder %s2228_s21, %s2224_s26 }
 0xdad   : > { %p2226_p7 = pnand %p2225_p4, %p2426_p5 }
 0xdae   : > { %p2231_p11 = por %p2230_p10, %p2229_p9 }
 0xdaf   : > { %p2227_p8 = pneg %p2226_p7 }
 0xdb1   : > { %p2232_p12 = pnand %p2231_p11, %p2227_p8 }
 0xdb3   : > { %2235 = shalt.err (!%p2232_p12)
}
 0xdb4   : > { %s2292_s19 = smov 128   ;;  %s2879_s29 = smov 8  }
 0xdb5   : > { %2062 = dma.vmem_to_hbm [thread:$0]  (%p2426_p5), %s2795_s22, 256, %s2792_s24, %s2798_s0, %s2292_s19, %s2292_s19, %s2879_s29  }
 0xdb6 PF: > { %s2880_s1 = sld [smem:[#allocation5_spill]]  ;;  %p2068_p13 = scmp.ge.s32.totalorder %s2270_s30, 2 }
 0xdb8   : > { %p2065_p0 = pnand %p2068_p13, %p2430_p6 }
 0xdba   : > { %p2066_p1 = pneg %p2065_p0 }
 0xdbc   : > { %s1835_s23 = sand.u32 1, %s2880_s1  }
 0xdbd   : > { %s1836_s25 = scalar_lea.sflag [#allocation3], %s1835_s23 }
 0xdbe   : > { %2253 = dma.done.wait (%p2066_p1), %s1836_s25, 256  }
 0xdbf   : > { %2255 = vsyncadd (%p2066_p1), %s1836_s25, 4294967040  ;;  %s2882_s30 = sld [smem:[#allocation7_spill]]  ;;  %s2885_s27 = smov %s2262_s28 }
 0xdc0   : > { %s2883_s2 = sld [smem:[#allocation6_spill]] }
 0xdc1   : > { %s2884_s29 = sld [smem:[#allocation8_spill]] }
 0xdc5   : > { %p28_p2 = scmp.ge.s32.totalorder %s2882_s30, 4  }
 0xdc6   : > { %s2886_s28 = smov %s2883_s2 }
 0xdc7   :  { %30 = sbr.rel (!%p28_p2) target bundleno = 7 (0x7), region = 133 }
 0xdcc   :  { %1841 = vsyncpa [#allocation3], 1 }
 0xdcd   :  { %1843 = vsyncpa [#allocation3 + $0x1], 1 }

</bundles_post_ra>
